<compile_context>
chip_gen: v7x
topology: tpu7x:2x2x1
jax: 0.10.0
libtpu: 0.0.40
codegen_flags: <defaults>
</compile_context>

<pallas_src>
import math
import jax
import jax.numpy as jnp
from jax.experimental import pallas as pl
from jax.experimental.pallas import tpu as pltpu

# ---- small DistilBERT-like config -------------------------------------------
HIDDEN    = 64
N_HEADS   = 4
HEAD_DIM  = HIDDEN // N_HEADS
FFN       = 128
N_LAYERS  = 2
VOCAB     = 100
MAX_POS   = 32
NUM_LABEL = 3
LN_EPS    = 1e-12

BATCH = 2
SEQ   = 16


# ---- math helpers (usable both inside the kernel and in the JAX reference) ---
def _layer_norm(x, g, b):
    mu  = jnp.mean(x, axis=-1, keepdims=True)
    var = jnp.mean((x - mu) ** 2, axis=-1, keepdims=True)
    return (x - mu) * jax.lax.rsqrt(var + LN_EPS) * g + b


def _gelu(x):
    # TODO(synk): HF DistilBERT uses exact erf-GELU; tanh approximation used here
    # because erf has no guaranteed Mosaic lowering.
    c = math.sqrt(2.0 / math.pi)
    return 0.5 * x * (1.0 + jnp.tanh(c * (x + 0.044715 * x * x * x)))


# ---- single fused kernel: embeddings + N_LAYERS transformer blocks + head ----
def fused_classifier_kernel(
        ids_ref, mask_ref, word_emb_ref, pos_ref, emb_g_ref, emb_b_ref,
        wqkv_ref, bqkv_ref, wo_ref, bo_ref, ln1g_ref, ln1b_ref,
        w1_ref, fb1_ref, w2_ref, fb2_ref, ln2g_ref, ln2b_ref,
        clsw_ref, clsb_ref, out_ref):
    BS = ids_ref.shape[0]                    # B * S
    B, _, S = mask_ref.shape
    V, H = word_emb_ref.shape

    # -- embedding: one-hot gather on the MXU + position add + LayerNorm --------
    ids = ids_ref[...]                                                   # (B*S, 1) int32
    one_hot = (ids == jax.lax.broadcasted_iota(jnp.int32, (BS, V), 1)
               ).astype(jnp.float32)                                     # (B*S, V)
    x = jnp.dot(one_hot, word_emb_ref[...], preferred_element_type=jnp.float32)
    x = _layer_norm(x + pos_ref[...], emb_g_ref[...], emb_b_ref[...])    # (B*S, H)

    mask = mask_ref[...]                                                 # (B, 1, S)
    neg = jnp.finfo(jnp.float32).min

    # Static unroll over layers: every layer's weights are VMEM-resident refs.
    for l in range(N_LAYERS):
        # Fused QKV projection (one lane-dense (H, 3H) matmul).
        # The 1/sqrt(head_dim) scale is pre-folded into the Q block of wqkv/bqkv.
        qkv = jnp.dot(x, wqkv_ref[l], preferred_element_type=jnp.float32) + bqkv_ref[l]
        q3 = qkv[:, 0 * H:1 * H].reshape(B, S, H)
        k3 = qkv[:, 1 * H:2 * H].reshape(B, S, H)
        v3 = qkv[:, 2 * H:3 * H].reshape(B, S, H)

        # TODO(synk): a single 'bqhd,bkhd->bhqk' einsum would also batch over heads,
        # but multi-batch-dim dot_general lowering is not guaranteed in Mosaic, so we
        # batch over B only (documented-safe 'bqd,bkd->bqk' pattern) per head.
        head_outs = []
        for n in range(N_HEADS):
            lo = n * HEAD_DIM
            qh = q3[:, :, lo:lo + HEAD_DIM]                              # (B, S, hd)
            kh = k3[:, :, lo:lo + HEAD_DIM]
            vh = v3[:, :, lo:lo + HEAD_DIM]
            sc = jnp.einsum("bqd,bkd->bqk", qh, kh,
                            preferred_element_type=jnp.float32)          # (B, S, S)
            sc = jnp.where(mask > 0, sc, neg)                            # mask keys
            sc = sc - jnp.max(sc, axis=-1, keepdims=True)
            p = jnp.exp(sc)
            p = p * pl.reciprocal(jnp.sum(p, axis=-1, keepdims=True), approx=True)
            head_outs.append(jnp.einsum("bqk,bkd->bqd", p, vh,
                                        preferred_element_type=jnp.float32))
        ctx = jnp.concatenate(head_outs, axis=-1).reshape(BS, H)         # (B*S, H)

        attn = jnp.dot(ctx, wo_ref[l], preferred_element_type=jnp.float32) + bo_ref[l]
        h1 = _layer_norm(x + attn, ln1g_ref[l], ln1b_ref[l])             # post-attn LN
        f = _gelu(jnp.dot(h1, w1_ref[l], preferred_element_type=jnp.float32) + fb1_ref[l])
        f = jnp.dot(f, w2_ref[l], preferred_element_type=jnp.float32) + fb2_ref[l]
        x = _layer_norm(h1 + f, ln2g_ref[l], ln2b_ref[l])                # post-FFN LN

    # -- unmasked mean over seq (matches torch.mean(dim=1)) + classifier --------
    m = jnp.mean(x.reshape(B, S, H), axis=1)                             # (B, H)
    logits = jnp.dot(m, clsw_ref[...], preferred_element_type=jnp.float32) + clsb_ref[...]
    # One lane-dense (B, 2H) output slab: [:, :H] = mean, [:, H:H+NUM_LABEL] = logits.
    out_ref[...] = jnp.concatenate([m, logits], axis=-1)


_VMEM = pl.BlockSpec(memory_space=pltpu.MemorySpace.VMEM)


# ---- host-side weight prep: fuse / fold / pad into kernel-friendly layouts ----
def _prep_kernel_params(params, batch, seq):
    scale = 1.0 / math.sqrt(HEAD_DIM)

    def stack(fn):
        return jnp.stack([fn(lp) for lp in params["layers"]])

    kp = {
        # fused QKV weight/bias with the attention scale folded into the Q block
        "wqkv":  stack(lambda lp: jnp.concatenate(
            [lp["wq"] * scale, lp["wk"], lp["wv"]], axis=1)),            # (L, H, 3H)
        "bqkv":  stack(lambda lp: jnp.concatenate(
            [lp["bq"] * scale, lp["bk"], lp["bv"]], axis=1)),            # (L, 1, 3H)
        "wo":    stack(lambda lp: lp["wo"]),   "bo":    stack(lambda lp: lp["bo"]),
        "ln1_g": stack(lambda lp: lp["ln1_g"]), "ln1_b": stack(lambda lp: lp["ln1_b"]),
        "w1":    stack(lambda lp: lp["w1"]),   "b1":    stack(lambda lp: lp["b1"]),
        "w2":    stack(lambda lp: lp["w2"]),   "b2":    stack(lambda lp: lp["b2"]),
        "ln2_g": stack(lambda lp: lp["ln2_g"]), "ln2_b": stack(lambda lp: lp["ln2_b"]),
        # position embeddings pre-sliced to seq and tiled over batch -> (B*S, H)
        "pos":   jnp.tile(params["pos_emb"][:seq], (batch, 1)),
        # classifier padded to a lane-dense 64-wide output block
        "cls_w": jnp.zeros((HIDDEN, HIDDEN), jnp.float32).at[:, :NUM_LABEL].set(params["cls_w"]),
        "cls_b": jnp.zeros((1, HIDDEN), jnp.float32).at[:, :NUM_LABEL].set(params["cls_b"]),
    }
    return kp


def classifier_forward(params, input_ids, attention_mask):
    B, S = input_ids.shape
    kp = _prep_kernel_params(params, B, S)
    args = (
        input_ids.reshape(B * S, 1).astype(jnp.int32),
        attention_mask.reshape(B, 1, S).astype(jnp.float32),
        params["word_emb"], kp["pos"], params["emb_ln_g"], params["emb_ln_b"],
        kp["wqkv"], kp["bqkv"], kp["wo"], kp["bo"], kp["ln1_g"], kp["ln1_b"],
        kp["w1"], kp["b1"], kp["w2"], kp["b2"], kp["ln2_g"], kp["ln2_b"],
        kp["cls_w"], kp["cls_b"],
    )
    slab = pl.pallas_call(
        fused_classifier_kernel,
        out_shape=jax.ShapeDtypeStruct((B, 2 * HIDDEN), jnp.float32),
        in_specs=[_VMEM] * len(args),
        out_specs=_VMEM,
    )(*args)
    mean = slab[:, :HIDDEN]
    logits = slab[:, HIDDEN:HIDDEN + NUM_LABEL]
    return mean, logits


# ---- parameters (deterministic synthetic init) -------------------------------
def init_params(key):
    def nrm(k, shape, scale=0.02):
        return (scale * jax.random.normal(k, shape)).astype(jnp.float32)

    keys = iter(jax.random.split(key, 8 + N_LAYERS * 6))
    params = {
        "word_emb": nrm(next(keys), (VOCAB, HIDDEN)),
        "pos_emb":  nrm(next(keys), (MAX_POS, HIDDEN)),
        "emb_ln_g": jnp.ones((1, HIDDEN), jnp.float32),
        "emb_ln_b": jnp.zeros((1, HIDDEN), jnp.float32),
        "cls_w":    nrm(next(keys), (HIDDEN, NUM_LABEL)),
        "cls_b":    jnp.zeros((1, NUM_LABEL), jnp.float32),
        "layers":   [],
    }
    for _ in range(N_LAYERS):
        lp = {
            "wq": nrm(next(keys), (HIDDEN, HIDDEN)), "bq": jnp.zeros((1, HIDDEN), jnp.float32),
            "wk": nrm(next(keys), (HIDDEN, HIDDEN)), "bk": jnp.zeros((1, HIDDEN), jnp.float32),
            "wv": nrm(next(keys), (HIDDEN, HIDDEN)), "bv": jnp.zeros((1, HIDDEN), jnp.float32),
            "wo": nrm(next(keys), (HIDDEN, HIDDEN)), "bo": jnp.zeros((1, HIDDEN), jnp.float32),
            "ln1_g": jnp.ones((1, HIDDEN), jnp.float32), "ln1_b": jnp.zeros((1, HIDDEN), jnp.float32),
            "w1": nrm(next(keys), (HIDDEN, FFN)),  "b1": jnp.zeros((1, FFN), jnp.float32),
            "w2": nrm(next(keys), (FFN, HIDDEN)),  "b2": jnp.zeros((1, HIDDEN), jnp.float32),
            "ln2_g": jnp.ones((1, HIDDEN), jnp.float32), "ln2_b": jnp.zeros((1, HIDDEN), jnp.float32),
        }
        params["layers"].append(lp)
    return params


# ---- pure-JAX reference (same math) for a sanity check ------------------------
def reference_forward(params, input_ids, attention_mask):
    B, S = input_ids.shape
    x = params["word_emb"][input_ids] + params["pos_emb"][jnp.arange(S)][None, :, :]
    x = _layer_norm(x, params["emb_ln_g"], params["emb_ln_b"])
    neg = jnp.finfo(jnp.float32).min
    for lp in params["layers"]:
        q = x @ lp["wq"] + lp["bq"]
        k = x @ lp["wk"] + lp["bk"]
        v = x @ lp["wv"] + lp["bv"]
        q = q.reshape(B, S, N_HEADS, HEAD_DIM).transpose(0, 2, 1, 3) / math.sqrt(HEAD_DIM)
        k = k.reshape(B, S, N_HEADS, HEAD_DIM).transpose(0, 2, 1, 3)
        v = v.reshape(B, S, N_HEADS, HEAD_DIM).transpose(0, 2, 1, 3)
        sc = jnp.einsum("bhqd,bhkd->bhqk", q, k)
        sc = jnp.where(attention_mask[:, None, None, :] > 0, sc, neg)
        p = jax.nn.softmax(sc, axis=-1)
        ctx = jnp.einsum("bhqk,bhkd->bhqd", p, v).transpose(0, 2, 1, 3).reshape(B, S, HIDDEN)
        h1 = _layer_norm(x + ctx @ lp["wo"] + lp["bo"], lp["ln1_g"], lp["ln1_b"])
        f = _gelu(h1 @ lp["w1"] + lp["b1"]) @ lp["w2"] + lp["b2"]
        x = _layer_norm(h1 + f, lp["ln2_g"], lp["ln2_b"])
    mean = jnp.mean(x, axis=1)
    return mean, mean @ params["cls_w"] + params["cls_b"]


if __name__ == "__main__":
    key = jax.random.PRNGKey(0)
    k_param, k_ids = jax.random.split(key)
    params = init_params(k_param)

    input_ids = jax.random.randint(k_ids, (BATCH, SEQ), 0, VOCAB, dtype=jnp.int32)
    attention_mask = jnp.ones((BATCH, SEQ), jnp.float32).at[1, -4:].set(0.0)

    mean, logits = classifier_forward(params, input_ids, attention_mask)
    jax.block_until_ready((mean, logits))

    ref_mean, ref_logits = reference_forward(params, input_ids, attention_mask)
    # Tolerance covers the approximate (EUP) reciprocal used in the softmax.
    assert jnp.allclose(mean, ref_mean, atol=2e-3, rtol=2e-3)
    assert jnp.allclose(logits, ref_logits, atol=2e-3, rtol=2e-3)

    print("KERNEL_OK")
</pallas_src>

<mosaic_0001>
module attributes {stable_mosaic.version = 11 : i64} {
  func.func @fused_classifier_kernel(%arg0: memref<32x1xi32, #tpu.memory_space<vmem>>, %arg1: memref<2x1x16xf32, #tpu.memory_space<vmem>>, %arg2: memref<100x64xf32, #tpu.memory_space<vmem>>, %arg3: memref<32x64xf32, #tpu.memory_space<vmem>>, %arg4: memref<1x64xf32, #tpu.memory_space<vmem>>, %arg5: memref<1x64xf32, #tpu.memory_space<vmem>>, %arg6: memref<2x64x192xf32, #tpu.memory_space<vmem>>, %arg7: memref<2x1x192xf32, #tpu.memory_space<vmem>>, %arg8: memref<2x64x64xf32, #tpu.memory_space<vmem>>, %arg9: memref<2x1x64xf32, #tpu.memory_space<vmem>>, %arg10: memref<2x1x64xf32, #tpu.memory_space<vmem>>, %arg11: memref<2x1x64xf32, #tpu.memory_space<vmem>>, %arg12: memref<2x64x128xf32, #tpu.memory_space<vmem>>, %arg13: memref<2x1x128xf32, #tpu.memory_space<vmem>>, %arg14: memref<2x128x64xf32, #tpu.memory_space<vmem>>, %arg15: memref<2x1x64xf32, #tpu.memory_space<vmem>>, %arg16: memref<2x1x64xf32, #tpu.memory_space<vmem>>, %arg17: memref<2x1x64xf32, #tpu.memory_space<vmem>>, %arg18: memref<64x64xf32, #tpu.memory_space<vmem>>, %arg19: memref<1x64xf32, #tpu.memory_space<vmem>>, %arg20: memref<2x128xf32, #tpu.memory_space<vmem>>) attributes {dimension_semantics = [], scalar_prefetch = 0 : i64, scratch_operands = 0 : i64, tpu.core_type = #tpu.core_type<tc>} {
    %c0 = arith.constant 0 : index
    %c0_0 = arith.constant 0 : index
    %0 = vector.load %arg0[%c0, %c0_0] : memref<32x1xi32, #tpu.memory_space<vmem>>, vector<32x1xi32>
    %1 = tpu.iota {dimensions = array<i32: 1>} : vector<32x100xi32>
    %2 = vector.broadcast %0 : vector<32x1xi32> to vector<32x100xi32>
    %3 = arith.cmpi eq, %2, %1 : vector<32x100xi32>
    %4 = arith.extui %3 : vector<32x100xi1> to vector<32x100xi32>
    %5 = arith.sitofp %4 : vector<32x100xi32> to vector<32x100xf32>
    %c0_1 = arith.constant 0 : index
    %c0_2 = arith.constant 0 : index
    %6 = vector.load %arg2[%c0_1, %c0_2] : memref<100x64xf32, #tpu.memory_space<vmem>>, vector<100x64xf32>
    %cst = arith.constant dense<0.000000e+00> : vector<32x64xf32>
    %7 = tpu.matmul %5, %6, %cst {dimension_numbers = #tpu.dot_dimension_numbers<[1], [0], [0], [1], [0, 0, 1, 1], [], []>} : vector<32x100xf32>, vector<100x64xf32>, vector<32x64xf32> -> vector<32x64xf32>
    %c0_3 = arith.constant 0 : index
    %c0_4 = arith.constant 0 : index
    %8 = vector.load %arg3[%c0_3, %c0_4] : memref<32x64xf32, #tpu.memory_space<vmem>>, vector<32x64xf32>
    %9 = arith.addf %7, %8 : vector<32x64xf32>
    %c0_5 = arith.constant 0 : index
    %c0_6 = arith.constant 0 : index
    %10 = vector.load %arg4[%c0_5, %c0_6] : memref<1x64xf32, #tpu.memory_space<vmem>>, vector<1x64xf32>
    %c0_7 = arith.constant 0 : index
    %c0_8 = arith.constant 0 : index
    %11 = vector.load %arg5[%c0_7, %c0_8] : memref<1x64xf32, #tpu.memory_space<vmem>>, vector<1x64xf32>
    %cst_9 = arith.constant dense<0.000000e+00> : vector<32xf32>
    %12 = vector.multi_reduction <add>, %9, %cst_9 [1] : vector<32x64xf32> to vector<32xf32>
    %13 = vector.shape_cast %12 : vector<32xf32> to vector<32x1xf32>
    %cst_10 = arith.constant 6.400000e+01 : f32
    %14 = vector.broadcast %cst_10 : f32 to vector<32x1xf32>
    %15 = arith.divf %13, %14 : vector<32x1xf32>
    %16 = vector.broadcast %15 : vector<32x1xf32> to vector<32x64xf32>
    %17 = arith.subf %9, %16 : vector<32x64xf32>
    %18 = arith.mulf %17, %17 : vector<32x64xf32>
    %cst_11 = arith.constant dense<0.000000e+00> : vector<32xf32>
    %19 = vector.multi_reduction <add>, %18, %cst_11 [1] : vector<32x64xf32> to vector<32xf32>
    %20 = vector.shape_cast %19 : vector<32xf32> to vector<32x1xf32>
    %cst_12 = arith.constant 6.400000e+01 : f32
    %21 = vector.broadcast %cst_12 : f32 to vector<32x1xf32>
    %22 = arith.divf %20, %21 : vector<32x1xf32>
    %23 = vector.broadcast %15 : vector<32x1xf32> to vector<32x64xf32>
    %24 = arith.subf %9, %23 : vector<32x64xf32>
    %cst_13 = arith.constant 9.99999996E-13 : f32
    %25 = vector.broadcast %cst_13 : f32 to vector<32x1xf32>
    %26 = arith.addf %22, %25 : vector<32x1xf32>
    %27 = math.rsqrt %26 : vector<32x1xf32>
    %28 = vector.broadcast %27 : vector<32x1xf32> to vector<32x64xf32>
    %29 = arith.mulf %24, %28 : vector<32x64xf32>
    %30 = vector.broadcast %10 : vector<1x64xf32> to vector<32x64xf32>
    %31 = arith.mulf %29, %30 : vector<32x64xf32>
    %32 = vector.broadcast %11 : vector<1x64xf32> to vector<32x64xf32>
    %33 = arith.addf %31, %32 : vector<32x64xf32>
    %c0_14 = arith.constant 0 : index
    %c0_15 = arith.constant 0 : index
    %c0_16 = arith.constant 0 : index
    %34 = vector.load %arg1[%c0_14, %c0_15, %c0_16] : memref<2x1x16xf32, #tpu.memory_space<vmem>>, vector<2x1x16xf32>
    %c0_17 = arith.constant 0 : index
    %c0_18 = arith.constant 0 : index
    %c0_19 = arith.constant 0 : index
    %35 = vector.load %arg6[%c0_17, %c0_18, %c0_19] : memref<2x64x192xf32, #tpu.memory_space<vmem>>, vector<1x64x192xf32>
    %36 = vector.shape_cast %35 : vector<1x64x192xf32> to vector<64x192xf32>
    %cst_20 = arith.constant dense<0.000000e+00> : vector<32x192xf32>
    %37 = tpu.matmul %33, %36, %cst_20 {dimension_numbers = #tpu.dot_dimension_numbers<[1], [0], [0], [1], [0, 0, 1, 1], [], []>} : vector<32x64xf32>, vector<64x192xf32>, vector<32x192xf32> -> vector<32x192xf32>
    %c0_21 = arith.constant 0 : index
    %c0_22 = arith.constant 0 : index
    %c0_23 = arith.constant 0 : index
    %38 = vector.load %arg7[%c0_21, %c0_22, %c0_23] : memref<2x1x192xf32, #tpu.memory_space<vmem>>, vector<1x1x192xf32>
    %39 = vector.shape_cast %38 : vector<1x1x192xf32> to vector<1x192xf32>
    %40 = vector.broadcast %39 : vector<1x192xf32> to vector<32x192xf32>
    %41 = arith.addf %37, %40 : vector<32x192xf32>
    %42 = vector.extract_strided_slice %41 {offsets = [0, 0], sizes = [32, 64], strides = [1, 1]} : vector<32x192xf32> to vector<32x64xf32>
    %43 = vector.shape_cast %42 : vector<32x64xf32> to vector<2x16x64xf32>
    %44 = vector.extract_strided_slice %41 {offsets = [0, 64], sizes = [32, 64], strides = [1, 1]} : vector<32x192xf32> to vector<32x64xf32>
    %45 = vector.shape_cast %44 : vector<32x64xf32> to vector<2x16x64xf32>
    %46 = vector.extract_strided_slice %41 {offsets = [0, 128], sizes = [32, 64], strides = [1, 1]} : vector<32x192xf32> to vector<32x64xf32>
    %47 = vector.shape_cast %46 : vector<32x64xf32> to vector<2x16x64xf32>
    %48 = vector.extract_strided_slice %43 {offsets = [0, 0, 0], sizes = [2, 16, 16], strides = [1, 1, 1]} : vector<2x16x64xf32> to vector<2x16x16xf32>
    %49 = vector.extract_strided_slice %45 {offsets = [0, 0, 0], sizes = [2, 16, 16], strides = [1, 1, 1]} : vector<2x16x64xf32> to vector<2x16x16xf32>
    %50 = vector.extract_strided_slice %47 {offsets = [0, 0, 0], sizes = [2, 16, 16], strides = [1, 1, 1]} : vector<2x16x64xf32> to vector<2x16x16xf32>
    "tpu.trace_start"() <{level = 10 : i32, message = "bqd,bkd->bqk"}> : () -> ()
    %cst_24 = arith.constant dense<0.000000e+00> : vector<2x16x16xf32>
    %51 = tpu.matmul %48, %49, %cst_24 {dimension_numbers = #tpu.dot_dimension_numbers<[2], [2], [1], [1], [0, 0, 0, 1, 1, 1], [0], [0]>} : vector<2x16x16xf32>, vector<2x16x16xf32>, vector<2x16x16xf32> -> vector<2x16x16xf32>
    %cst_25 = arith.constant 0.000000e+00 : f32
    "tpu.trace_stop"() : () -> ()
    %52 = vector.broadcast %cst_25 : f32 to vector<2x1x16xf32>
    %53 = arith.cmpf ogt, %34, %52 : vector<2x1x16xf32>
    %cst_26 = arith.constant -3.40282347E+38 : f32
    %54 = vector.shape_cast %53 : vector<2x1x16xi1> to vector<2x1x16xi1>
    %55 = vector.broadcast %54 : vector<2x1x16xi1> to vector<2x16x16xi1>
    %56 = vector.broadcast %cst_26 : f32 to vector<2x16x16xf32>
    %57 = arith.select %55, %51, %56 : vector<2x16x16xi1>, vector<2x16x16xf32>
    %cst_27 = arith.constant dense<0xFF800000> : vector<2x16xf32>
    %58 = vector.multi_reduction <maximumf>, %57, %cst_27 [2] : vector<2x16x16xf32> to vector<2x16xf32>
    %59 = vector.shape_cast %58 : vector<2x16xf32> to vector<2x16x1xf32>
    %60 = vector.broadcast %59 : vector<2x16x1xf32> to vector<2x16x16xf32>
    %61 = arith.subf %57, %60 : vector<2x16x16xf32>
    %62 = math.exp %61 : vector<2x16x16xf32>
    %cst_28 = arith.constant dense<0.000000e+00> : vector<2x16xf32>
    %63 = vector.multi_reduction <add>, %62, %cst_28 [2] : vector<2x16x16xf32> to vector<2x16xf32>
    %64 = vector.shape_cast %63 : vector<2x16xf32> to vector<2x16x1xf32>
    %65 = tpu.reciprocal %64 {approx = true} : vector<2x16x1xf32> -> vector<2x16x1xf32>
    %66 = vector.broadcast %65 : vector<2x16x1xf32> to vector<2x16x16xf32>
    %67 = arith.mulf %62, %66 : vector<2x16x16xf32>
    "tpu.trace_start"() <{level = 10 : i32, message = "bqk,bkd->bqd"}> : () -> ()
    %cst_29 = arith.constant dense<0.000000e+00> : vector<2x16x16xf32>
    %68 = tpu.matmul %67, %50, %cst_29 {dimension_numbers = #tpu.dot_dimension_numbers<[2], [1], [1], [2], [0, 0, 0, 1, 1, 2], [0], [0]>} : vector<2x16x16xf32>, vector<2x16x16xf32>, vector<2x16x16xf32> -> vector<2x16x16xf32>
    "tpu.trace_stop"() : () -> ()
    %69 = vector.extract_strided_slice %43 {offsets = [0, 0, 16], sizes = [2, 16, 16], strides = [1, 1, 1]} : vector<2x16x64xf32> to vector<2x16x16xf32>
    %70 = vector.extract_strided_slice %45 {offsets = [0, 0, 16], sizes = [2, 16, 16], strides = [1, 1, 1]} : vector<2x16x64xf32> to vector<2x16x16xf32>
    %71 = vector.extract_strided_slice %47 {offsets = [0, 0, 16], sizes = [2, 16, 16], strides = [1, 1, 1]} : vector<2x16x64xf32> to vector<2x16x16xf32>
    "tpu.trace_start"() <{level = 10 : i32, message = "bqd,bkd->bqk"}> : () -> ()
    %cst_30 = arith.constant dense<0.000000e+00> : vector<2x16x16xf32>
    %72 = tpu.matmul %69, %70, %cst_30 {dimension_numbers = #tpu.dot_dimension_numbers<[2], [2], [1], [1], [0, 0, 0, 1, 1, 1], [0], [0]>} : vector<2x16x16xf32>, vector<2x16x16xf32>, vector<2x16x16xf32> -> vector<2x16x16xf32>
    %cst_31 = arith.constant 0.000000e+00 : f32
    "tpu.trace_stop"() : () -> ()
    %73 = vector.broadcast %cst_31 : f32 to vector<2x1x16xf32>
    %74 = arith.cmpf ogt, %34, %73 : vector<2x1x16xf32>
    %cst_32 = arith.constant -3.40282347E+38 : f32
    %75 = vector.shape_cast %74 : vector<2x1x16xi1> to vector<2x1x16xi1>
    %76 = vector.broadcast %75 : vector<2x1x16xi1> to vector<2x16x16xi1>
    %77 = vector.broadcast %cst_32 : f32 to vector<2x16x16xf32>
    %78 = arith.select %76, %72, %77 : vector<2x16x16xi1>, vector<2x16x16xf32>
    %cst_33 = arith.constant dense<0xFF800000> : vector<2x16xf32>
    %79 = vector.multi_reduction <maximumf>, %78, %cst_33 [2] : vector<2x16x16xf32> to vector<2x16xf32>
    %80 = vector.shape_cast %79 : vector<2x16xf32> to vector<2x16x1xf32>
    %81 = vector.broadcast %80 : vector<2x16x1xf32> to vector<2x16x16xf32>
    %82 = arith.subf %78, %81 : vector<2x16x16xf32>
    %83 = math.exp %82 : vector<2x16x16xf32>
    %cst_34 = arith.constant dense<0.000000e+00> : vector<2x16xf32>
    %84 = vector.multi_reduction <add>, %83, %cst_34 [2] : vector<2x16x16xf32> to vector<2x16xf32>
    %85 = vector.shape_cast %84 : vector<2x16xf32> to vector<2x16x1xf32>
    %86 = tpu.reciprocal %85 {approx = true} : vector<2x16x1xf32> -> vector<2x16x1xf32>
    %87 = vector.broadcast %86 : vector<2x16x1xf32> to vector<2x16x16xf32>
    %88 = arith.mulf %83, %87 : vector<2x16x16xf32>
    "tpu.trace_start"() <{level = 10 : i32, message = "bqk,bkd->bqd"}> : () -> ()
    %cst_35 = arith.constant dense<0.000000e+00> : vector<2x16x16xf32>
    %89 = tpu.matmul %88, %71, %cst_35 {dimension_numbers = #tpu.dot_dimension_numbers<[2], [1], [1], [2], [0, 0, 0, 1, 1, 2], [0], [0]>} : vector<2x16x16xf32>, vector<2x16x16xf32>, vector<2x16x16xf32> -> vector<2x16x16xf32>
    "tpu.trace_stop"() : () -> ()
    %90 = vector.extract_strided_slice %43 {offsets = [0, 0, 32], sizes = [2, 16, 16], strides = [1, 1, 1]} : vector<2x16x64xf32> to vector<2x16x16xf32>
    %91 = vector.extract_strided_slice %45 {offsets = [0, 0, 32], sizes = [2, 16, 16], strides = [1, 1, 1]} : vector<2x16x64xf32> to vector<2x16x16xf32>
    %92 = vector.extract_strided_slice %47 {offsets = [0, 0, 32], sizes = [2, 16, 16], strides = [1, 1, 1]} : vector<2x16x64xf32> to vector<2x16x16xf32>
    "tpu.trace_start"() <{level = 10 : i32, message = "bqd,bkd->bqk"}> : () -> ()
    %cst_36 = arith.constant dense<0.000000e+00> : vector<2x16x16xf32>
    %93 = tpu.matmul %90, %91, %cst_36 {dimension_numbers = #tpu.dot_dimension_numbers<[2], [2], [1], [1], [0, 0, 0, 1, 1, 1], [0], [0]>} : vector<2x16x16xf32>, vector<2x16x16xf32>, vector<2x16x16xf32> -> vector<2x16x16xf32>
    %cst_37 = arith.constant 0.000000e+00 : f32
    "tpu.trace_stop"() : () -> ()
    %94 = vector.broadcast %cst_37 : f32 to vector<2x1x16xf32>
    %95 = arith.cmpf ogt, %34, %94 : vector<2x1x16xf32>
    %cst_38 = arith.constant -3.40282347E+38 : f32
    %96 = vector.shape_cast %95 : vector<2x1x16xi1> to vector<2x1x16xi1>
    %97 = vector.broadcast %96 : vector<2x1x16xi1> to vector<2x16x16xi1>
    %98 = vector.broadcast %cst_38 : f32 to vector<2x16x16xf32>
    %99 = arith.select %97, %93, %98 : vector<2x16x16xi1>, vector<2x16x16xf32>
    %cst_39 = arith.constant dense<0xFF800000> : vector<2x16xf32>
    %100 = vector.multi_reduction <maximumf>, %99, %cst_39 [2] : vector<2x16x16xf32> to vector<2x16xf32>
    %101 = vector.shape_cast %100 : vector<2x16xf32> to vector<2x16x1xf32>
    %102 = vector.broadcast %101 : vector<2x16x1xf32> to vector<2x16x16xf32>
    %103 = arith.subf %99, %102 : vector<2x16x16xf32>
    %104 = math.exp %103 : vector<2x16x16xf32>
    %cst_40 = arith.constant dense<0.000000e+00> : vector<2x16xf32>
    %105 = vector.multi_reduction <add>, %104, %cst_40 [2] : vector<2x16x16xf32> to vector<2x16xf32>
    %106 = vector.shape_cast %105 : vector<2x16xf32> to vector<2x16x1xf32>
    %107 = tpu.reciprocal %106 {approx = true} : vector<2x16x1xf32> -> vector<2x16x1xf32>
    %108 = vector.broadcast %107 : vector<2x16x1xf32> to vector<2x16x16xf32>
    %109 = arith.mulf %104, %108 : vector<2x16x16xf32>
    "tpu.trace_start"() <{level = 10 : i32, message = "bqk,bkd->bqd"}> : () -> ()
    %cst_41 = arith.constant dense<0.000000e+00> : vector<2x16x16xf32>
    %110 = tpu.matmul %109, %92, %cst_41 {dimension_numbers = #tpu.dot_dimension_numbers<[2], [1], [1], [2], [0, 0, 0, 1, 1, 2], [0], [0]>} : vector<2x16x16xf32>, vector<2x16x16xf32>, vector<2x16x16xf32> -> vector<2x16x16xf32>
    "tpu.trace_stop"() : () -> ()
    %111 = vector.extract_strided_slice %43 {offsets = [0, 0, 48], sizes = [2, 16, 16], strides = [1, 1, 1]} : vector<2x16x64xf32> to vector<2x16x16xf32>
    %112 = vector.extract_strided_slice %45 {offsets = [0, 0, 48], sizes = [2, 16, 16], strides = [1, 1, 1]} : vector<2x16x64xf32> to vector<2x16x16xf32>
    %113 = vector.extract_strided_slice %47 {offsets = [0, 0, 48], sizes = [2, 16, 16], strides = [1, 1, 1]} : vector<2x16x64xf32> to vector<2x16x16xf32>
    "tpu.trace_start"() <{level = 10 : i32, message = "bqd,bkd->bqk"}> : () -> ()
    %cst_42 = arith.constant dense<0.000000e+00> : vector<2x16x16xf32>
    %114 = tpu.matmul %111, %112, %cst_42 {dimension_numbers = #tpu.dot_dimension_numbers<[2], [2], [1], [1], [0, 0, 0, 1, 1, 1], [0], [0]>} : vector<2x16x16xf32>, vector<2x16x16xf32>, vector<2x16x16xf32> -> vector<2x16x16xf32>
    %cst_43 = arith.constant 0.000000e+00 : f32
    "tpu.trace_stop"() : () -> ()
    %115 = vector.broadcast %cst_43 : f32 to vector<2x1x16xf32>
    %116 = arith.cmpf ogt, %34, %115 : vector<2x1x16xf32>
    %cst_44 = arith.constant -3.40282347E+38 : f32
    %117 = vector.shape_cast %116 : vector<2x1x16xi1> to vector<2x1x16xi1>
    %118 = vector.broadcast %117 : vector<2x1x16xi1> to vector<2x16x16xi1>
    %119 = vector.broadcast %cst_44 : f32 to vector<2x16x16xf32>
    %120 = arith.select %118, %114, %119 : vector<2x16x16xi1>, vector<2x16x16xf32>
    %cst_45 = arith.constant dense<0xFF800000> : vector<2x16xf32>
    %121 = vector.multi_reduction <maximumf>, %120, %cst_45 [2] : vector<2x16x16xf32> to vector<2x16xf32>
    %122 = vector.shape_cast %121 : vector<2x16xf32> to vector<2x16x1xf32>
    %123 = vector.broadcast %122 : vector<2x16x1xf32> to vector<2x16x16xf32>
    %124 = arith.subf %120, %123 : vector<2x16x16xf32>
    %125 = math.exp %124 : vector<2x16x16xf32>
    %cst_46 = arith.constant dense<0.000000e+00> : vector<2x16xf32>
    %126 = vector.multi_reduction <add>, %125, %cst_46 [2] : vector<2x16x16xf32> to vector<2x16xf32>
    %127 = vector.shape_cast %126 : vector<2x16xf32> to vector<2x16x1xf32>
    %128 = tpu.reciprocal %127 {approx = true} : vector<2x16x1xf32> -> vector<2x16x1xf32>
    %129 = vector.broadcast %128 : vector<2x16x1xf32> to vector<2x16x16xf32>
    %130 = arith.mulf %125, %129 : vector<2x16x16xf32>
    "tpu.trace_start"() <{level = 10 : i32, message = "bqk,bkd->bqd"}> : () -> ()
    %cst_47 = arith.constant dense<0.000000e+00> : vector<2x16x16xf32>
    %131 = tpu.matmul %130, %113, %cst_47 {dimension_numbers = #tpu.dot_dimension_numbers<[2], [1], [1], [2], [0, 0, 0, 1, 1, 2], [0], [0]>} : vector<2x16x16xf32>, vector<2x16x16xf32>, vector<2x16x16xf32> -> vector<2x16x16xf32>
    "tpu.trace_stop"() : () -> ()
    %132 = tpu.concatenate %68, %89, %110, %131 in 2 : vector<2x16x16xf32>, vector<2x16x16xf32>, vector<2x16x16xf32>, vector<2x16x16xf32> -> vector<2x16x64xf32>
    %133 = vector.shape_cast %132 : vector<2x16x64xf32> to vector<32x64xf32>
    %c0_48 = arith.constant 0 : index
    %c0_49 = arith.constant 0 : index
    %c0_50 = arith.constant 0 : index
    %134 = vector.load %arg8[%c0_48, %c0_49, %c0_50] : memref<2x64x64xf32, #tpu.memory_space<vmem>>, vector<1x64x64xf32>
    %135 = vector.shape_cast %134 : vector<1x64x64xf32> to vector<64x64xf32>
    %cst_51 = arith.constant dense<0.000000e+00> : vector<32x64xf32>
    %136 = tpu.matmul %133, %135, %cst_51 {dimension_numbers = #tpu.dot_dimension_numbers<[1], [0], [0], [1], [0, 0, 1, 1], [], []>} : vector<32x64xf32>, vector<64x64xf32>, vector<32x64xf32> -> vector<32x64xf32>
    %c0_52 = arith.constant 0 : index
    %c0_53 = arith.constant 0 : index
    %c0_54 = arith.constant 0 : index
    %137 = vector.load %arg9[%c0_52, %c0_53, %c0_54] : memref<2x1x64xf32, #tpu.memory_space<vmem>>, vector<1x1x64xf32>
    %138 = vector.shape_cast %137 : vector<1x1x64xf32> to vector<1x64xf32>
    %139 = vector.broadcast %138 : vector<1x64xf32> to vector<32x64xf32>
    %140 = arith.addf %136, %139 : vector<32x64xf32>
    %141 = arith.addf %33, %140 : vector<32x64xf32>
    %c0_55 = arith.constant 0 : index
    %c0_56 = arith.constant 0 : index
    %c0_57 = arith.constant 0 : index
    %142 = vector.load %arg10[%c0_55, %c0_56, %c0_57] : memref<2x1x64xf32, #tpu.memory_space<vmem>>, vector<1x1x64xf32>
    %143 = vector.shape_cast %142 : vector<1x1x64xf32> to vector<1x64xf32>
    %c0_58 = arith.constant 0 : index
    %c0_59 = arith.constant 0 : index
    %c0_60 = arith.constant 0 : index
    %144 = vector.load %arg11[%c0_58, %c0_59, %c0_60] : memref<2x1x64xf32, #tpu.memory_space<vmem>>, vector<1x1x64xf32>
    %145 = vector.shape_cast %144 : vector<1x1x64xf32> to vector<1x64xf32>
    %cst_61 = arith.constant dense<0.000000e+00> : vector<32xf32>
    %146 = vector.multi_reduction <add>, %141, %cst_61 [1] : vector<32x64xf32> to vector<32xf32>
    %147 = vector.shape_cast %146 : vector<32xf32> to vector<32x1xf32>
    %cst_62 = arith.constant 6.400000e+01 : f32
    %148 = vector.broadcast %cst_62 : f32 to vector<32x1xf32>
    %149 = arith.divf %147, %148 : vector<32x1xf32>
    %150 = vector.broadcast %149 : vector<32x1xf32> to vector<32x64xf32>
    %151 = arith.subf %141, %150 : vector<32x64xf32>
    %152 = arith.mulf %151, %151 : vector<32x64xf32>
    %cst_63 = arith.constant dense<0.000000e+00> : vector<32xf32>
    %153 = vector.multi_reduction <add>, %152, %cst_63 [1] : vector<32x64xf32> to vector<32xf32>
    %154 = vector.shape_cast %153 : vector<32xf32> to vector<32x1xf32>
    %cst_64 = arith.constant 6.400000e+01 : f32
    %155 = vector.broadcast %cst_64 : f32 to vector<32x1xf32>
    %156 = arith.divf %154, %155 : vector<32x1xf32>
    %157 = vector.broadcast %149 : vector<32x1xf32> to vector<32x64xf32>
    %158 = arith.subf %141, %157 : vector<32x64xf32>
    %cst_65 = arith.constant 9.99999996E-13 : f32
    %159 = vector.broadcast %cst_65 : f32 to vector<32x1xf32>
    %160 = arith.addf %156, %159 : vector<32x1xf32>
    %161 = math.rsqrt %160 : vector<32x1xf32>
    %162 = vector.broadcast %161 : vector<32x1xf32> to vector<32x64xf32>
    %163 = arith.mulf %158, %162 : vector<32x64xf32>
    %164 = vector.broadcast %143 : vector<1x64xf32> to vector<32x64xf32>
    %165 = arith.mulf %163, %164 : vector<32x64xf32>
    %166 = vector.broadcast %145 : vector<1x64xf32> to vector<32x64xf32>
    %167 = arith.addf %165, %166 : vector<32x64xf32>
    %c0_66 = arith.constant 0 : index
    %c0_67 = arith.constant 0 : index
    %c0_68 = arith.constant 0 : index
    %168 = vector.load %arg12[%c0_66, %c0_67, %c0_68] : memref<2x64x128xf32, #tpu.memory_space<vmem>>, vector<1x64x128xf32>
    %169 = vector.shape_cast %168 : vector<1x64x128xf32> to vector<64x128xf32>
    %cst_69 = arith.constant dense<0.000000e+00> : vector<32x128xf32>
    %170 = tpu.matmul %167, %169, %cst_69 {dimension_numbers = #tpu.dot_dimension_numbers<[1], [0], [0], [1], [0, 0, 1, 1], [], []>} : vector<32x64xf32>, vector<64x128xf32>, vector<32x128xf32> -> vector<32x128xf32>
    %c0_70 = arith.constant 0 : index
    %c0_71 = arith.constant 0 : index
    %c0_72 = arith.constant 0 : index
    %171 = vector.load %arg13[%c0_70, %c0_71, %c0_72] : memref<2x1x128xf32, #tpu.memory_space<vmem>>, vector<1x1x128xf32>
    %172 = vector.shape_cast %171 : vector<1x1x128xf32> to vector<1x128xf32>
    %173 = vector.broadcast %172 : vector<1x128xf32> to vector<32x128xf32>
    %174 = arith.addf %170, %173 : vector<32x128xf32>
    %cst_73 = arith.constant 5.000000e-01 : f32
    %175 = vector.broadcast %cst_73 : f32 to vector<32x128xf32>
    %176 = arith.mulf %175, %174 : vector<32x128xf32>
    %cst_74 = arith.constant 4.471500e-02 : f32
    %177 = vector.broadcast %cst_74 : f32 to vector<32x128xf32>
    %178 = arith.mulf %177, %174 : vector<32x128xf32>
    %179 = arith.mulf %178, %174 : vector<32x128xf32>
    %180 = arith.mulf %179, %174 : vector<32x128xf32>
    %181 = arith.addf %174, %180 : vector<32x128xf32>
    %cst_75 = arith.constant 0.797884583 : f32
    %182 = vector.broadcast %cst_75 : f32 to vector<32x128xf32>
    %183 = arith.mulf %182, %181 : vector<32x128xf32>
    %184 = math.tanh %183 : vector<32x128xf32>
    %cst_76 = arith.constant 1.000000e+00 : f32
    %185 = vector.broadcast %cst_76 : f32 to vector<32x128xf32>
    %186 = arith.addf %185, %184 : vector<32x128xf32>
    %187 = arith.mulf %176, %186 : vector<32x128xf32>
    %c0_77 = arith.constant 0 : index
    %c0_78 = arith.constant 0 : index
    %c0_79 = arith.constant 0 : index
    %188 = vector.load %arg14[%c0_77, %c0_78, %c0_79] : memref<2x128x64xf32, #tpu.memory_space<vmem>>, vector<1x128x64xf32>
    %189 = vector.shape_cast %188 : vector<1x128x64xf32> to vector<128x64xf32>
    %cst_80 = arith.constant dense<0.000000e+00> : vector<32x64xf32>
    %190 = tpu.matmul %187, %189, %cst_80 {dimension_numbers = #tpu.dot_dimension_numbers<[1], [0], [0], [1], [0, 0, 1, 1], [], []>} : vector<32x128xf32>, vector<128x64xf32>, vector<32x64xf32> -> vector<32x64xf32>
    %c0_81 = arith.constant 0 : index
    %c0_82 = arith.constant 0 : index
    %c0_83 = arith.constant 0 : index
    %191 = vector.load %arg15[%c0_81, %c0_82, %c0_83] : memref<2x1x64xf32, #tpu.memory_space<vmem>>, vector<1x1x64xf32>
    %192 = vector.shape_cast %191 : vector<1x1x64xf32> to vector<1x64xf32>
    %193 = vector.broadcast %192 : vector<1x64xf32> to vector<32x64xf32>
    %194 = arith.addf %190, %193 : vector<32x64xf32>
    %195 = arith.addf %167, %194 : vector<32x64xf32>
    %c0_84 = arith.constant 0 : index
    %c0_85 = arith.constant 0 : index
    %c0_86 = arith.constant 0 : index
    %196 = vector.load %arg16[%c0_84, %c0_85, %c0_86] : memref<2x1x64xf32, #tpu.memory_space<vmem>>, vector<1x1x64xf32>
    %197 = vector.shape_cast %196 : vector<1x1x64xf32> to vector<1x64xf32>
    %c0_87 = arith.constant 0 : index
    %c0_88 = arith.constant 0 : index
    %c0_89 = arith.constant 0 : index
    %198 = vector.load %arg17[%c0_87, %c0_88, %c0_89] : memref<2x1x64xf32, #tpu.memory_space<vmem>>, vector<1x1x64xf32>
    %199 = vector.shape_cast %198 : vector<1x1x64xf32> to vector<1x64xf32>
    %cst_90 = arith.constant dense<0.000000e+00> : vector<32xf32>
    %200 = vector.multi_reduction <add>, %195, %cst_90 [1] : vector<32x64xf32> to vector<32xf32>
    %201 = vector.shape_cast %200 : vector<32xf32> to vector<32x1xf32>
    %cst_91 = arith.constant 6.400000e+01 : f32
    %202 = vector.broadcast %cst_91 : f32 to vector<32x1xf32>
    %203 = arith.divf %201, %202 : vector<32x1xf32>
    %204 = vector.broadcast %203 : vector<32x1xf32> to vector<32x64xf32>
    %205 = arith.subf %195, %204 : vector<32x64xf32>
    %206 = arith.mulf %205, %205 : vector<32x64xf32>
    %cst_92 = arith.constant dense<0.000000e+00> : vector<32xf32>
    %207 = vector.multi_reduction <add>, %206, %cst_92 [1] : vector<32x64xf32> to vector<32xf32>
    %208 = vector.shape_cast %207 : vector<32xf32> to vector<32x1xf32>
    %cst_93 = arith.constant 6.400000e+01 : f32
    %209 = vector.broadcast %cst_93 : f32 to vector<32x1xf32>
    %210 = arith.divf %208, %209 : vector<32x1xf32>
    %211 = vector.broadcast %203 : vector<32x1xf32> to vector<32x64xf32>
    %212 = arith.subf %195, %211 : vector<32x64xf32>
    %cst_94 = arith.constant 9.99999996E-13 : f32
    %213 = vector.broadcast %cst_94 : f32 to vector<32x1xf32>
    %214 = arith.addf %210, %213 : vector<32x1xf32>
    %215 = math.rsqrt %214 : vector<32x1xf32>
    %216 = vector.broadcast %215 : vector<32x1xf32> to vector<32x64xf32>
    %217 = arith.mulf %212, %216 : vector<32x64xf32>
    %218 = vector.broadcast %197 : vector<1x64xf32> to vector<32x64xf32>
    %219 = arith.mulf %217, %218 : vector<32x64xf32>
    %220 = vector.broadcast %199 : vector<1x64xf32> to vector<32x64xf32>
    %221 = arith.addf %219, %220 : vector<32x64xf32>
    %c1 = arith.constant 1 : index
    %c0_95 = arith.constant 0 : index
    %c0_96 = arith.constant 0 : index
    %222 = vector.load %arg6[%c1, %c0_95, %c0_96] : memref<2x64x192xf32, #tpu.memory_space<vmem>>, vector<1x64x192xf32>
    %223 = vector.shape_cast %222 : vector<1x64x192xf32> to vector<64x192xf32>
    %cst_97 = arith.constant dense<0.000000e+00> : vector<32x192xf32>
    %224 = tpu.matmul %221, %223, %cst_97 {dimension_numbers = #tpu.dot_dimension_numbers<[1], [0], [0], [1], [0, 0, 1, 1], [], []>} : vector<32x64xf32>, vector<64x192xf32>, vector<32x192xf32> -> vector<32x192xf32>
    %c1_98 = arith.constant 1 : index
    %c0_99 = arith.constant 0 : index
    %c0_100 = arith.constant 0 : index
    %225 = vector.load %arg7[%c1_98, %c0_99, %c0_100] : memref<2x1x192xf32, #tpu.memory_space<vmem>>, vector<1x1x192xf32>
    %226 = vector.shape_cast %225 : vector<1x1x192xf32> to vector<1x192xf32>
    %227 = vector.broadcast %226 : vector<1x192xf32> to vector<32x192xf32>
    %228 = arith.addf %224, %227 : vector<32x192xf32>
    %229 = vector.extract_strided_slice %228 {offsets = [0, 0], sizes = [32, 64], strides = [1, 1]} : vector<32x192xf32> to vector<32x64xf32>
    %230 = vector.shape_cast %229 : vector<32x64xf32> to vector<2x16x64xf32>
    %231 = vector.extract_strided_slice %228 {offsets = [0, 64], sizes = [32, 64], strides = [1, 1]} : vector<32x192xf32> to vector<32x64xf32>
    %232 = vector.shape_cast %231 : vector<32x64xf32> to vector<2x16x64xf32>
    %233 = vector.extract_strided_slice %228 {offsets = [0, 128], sizes = [32, 64], strides = [1, 1]} : vector<32x192xf32> to vector<32x64xf32>
    %234 = vector.shape_cast %233 : vector<32x64xf32> to vector<2x16x64xf32>
    %235 = vector.extract_strided_slice %230 {offsets = [0, 0, 0], sizes = [2, 16, 16], strides = [1, 1, 1]} : vector<2x16x64xf32> to vector<2x16x16xf32>
    %236 = vector.extract_strided_slice %232 {offsets = [0, 0, 0], sizes = [2, 16, 16], strides = [1, 1, 1]} : vector<2x16x64xf32> to vector<2x16x16xf32>
    %237 = vector.extract_strided_slice %234 {offsets = [0, 0, 0], sizes = [2, 16, 16], strides = [1, 1, 1]} : vector<2x16x64xf32> to vector<2x16x16xf32>
    "tpu.trace_start"() <{level = 10 : i32, message = "bqd,bkd->bqk"}> : () -> ()
    %cst_101 = arith.constant dense<0.000000e+00> : vector<2x16x16xf32>
    %238 = tpu.matmul %235, %236, %cst_101 {dimension_numbers = #tpu.dot_dimension_numbers<[2], [2], [1], [1], [0, 0, 0, 1, 1, 1], [0], [0]>} : vector<2x16x16xf32>, vector<2x16x16xf32>, vector<2x16x16xf32> -> vector<2x16x16xf32>
    %cst_102 = arith.constant 0.000000e+00 : f32
    "tpu.trace_stop"() : () -> ()
    %239 = vector.broadcast %cst_102 : f32 to vector<2x1x16xf32>
    %240 = arith.cmpf ogt, %34, %239 : vector<2x1x16xf32>
    %cst_103 = arith.constant -3.40282347E+38 : f32
    %241 = vector.shape_cast %240 : vector<2x1x16xi1> to vector<2x1x16xi1>
    %242 = vector.broadcast %241 : vector<2x1x16xi1> to vector<2x16x16xi1>
    %243 = vector.broadcast %cst_103 : f32 to vector<2x16x16xf32>
    %244 = arith.select %242, %238, %243 : vector<2x16x16xi1>, vector<2x16x16xf32>
    %cst_104 = arith.constant dense<0xFF800000> : vector<2x16xf32>
    %245 = vector.multi_reduction <maximumf>, %244, %cst_104 [2] : vector<2x16x16xf32> to vector<2x16xf32>
    %246 = vector.shape_cast %245 : vector<2x16xf32> to vector<2x16x1xf32>
    %247 = vector.broadcast %246 : vector<2x16x1xf32> to vector<2x16x16xf32>
    %248 = arith.subf %244, %247 : vector<2x16x16xf32>
    %249 = math.exp %248 : vector<2x16x16xf32>
    %cst_105 = arith.constant dense<0.000000e+00> : vector<2x16xf32>
    %250 = vector.multi_reduction <add>, %249, %cst_105 [2] : vector<2x16x16xf32> to vector<2x16xf32>
    %251 = vector.shape_cast %250 : vector<2x16xf32> to vector<2x16x1xf32>
    %252 = tpu.reciprocal %251 {approx = true} : vector<2x16x1xf32> -> vector<2x16x1xf32>
    %253 = vector.broadcast %252 : vector<2x16x1xf32> to vector<2x16x16xf32>
    %254 = arith.mulf %249, %253 : vector<2x16x16xf32>
    "tpu.trace_start"() <{level = 10 : i32, message = "bqk,bkd->bqd"}> : () -> ()
    %cst_106 = arith.constant dense<0.000000e+00> : vector<2x16x16xf32>
    %255 = tpu.matmul %254, %237, %cst_106 {dimension_numbers = #tpu.dot_dimension_numbers<[2], [1], [1], [2], [0, 0, 0, 1, 1, 2], [0], [0]>} : vector<2x16x16xf32>, vector<2x16x16xf32>, vector<2x16x16xf32> -> vector<2x16x16xf32>
    "tpu.trace_stop"() : () -> ()
    %256 = vector.extract_strided_slice %230 {offsets = [0, 0, 16], sizes = [2, 16, 16], strides = [1, 1, 1]} : vector<2x16x64xf32> to vector<2x16x16xf32>
    %257 = vector.extract_strided_slice %232 {offsets = [0, 0, 16], sizes = [2, 16, 16], strides = [1, 1, 1]} : vector<2x16x64xf32> to vector<2x16x16xf32>
    %258 = vector.extract_strided_slice %234 {offsets = [0, 0, 16], sizes = [2, 16, 16], strides = [1, 1, 1]} : vector<2x16x64xf32> to vector<2x16x16xf32>
    "tpu.trace_start"() <{level = 10 : i32, message = "bqd,bkd->bqk"}> : () -> ()
    %cst_107 = arith.constant dense<0.000000e+00> : vector<2x16x16xf32>
    %259 = tpu.matmul %256, %257, %cst_107 {dimension_numbers = #tpu.dot_dimension_numbers<[2], [2], [1], [1], [0, 0, 0, 1, 1, 1], [0], [0]>} : vector<2x16x16xf32>, vector<2x16x16xf32>, vector<2x16x16xf32> -> vector<2x16x16xf32>
    %cst_108 = arith.constant 0.000000e+00 : f32
    "tpu.trace_stop"() : () -> ()
    %260 = vector.broadcast %cst_108 : f32 to vector<2x1x16xf32>
    %261 = arith.cmpf ogt, %34, %260 : vector<2x1x16xf32>
    %cst_109 = arith.constant -3.40282347E+38 : f32
    %262 = vector.shape_cast %261 : vector<2x1x16xi1> to vector<2x1x16xi1>
    %263 = vector.broadcast %262 : vector<2x1x16xi1> to vector<2x16x16xi1>
    %264 = vector.broadcast %cst_109 : f32 to vector<2x16x16xf32>
    %265 = arith.select %263, %259, %264 : vector<2x16x16xi1>, vector<2x16x16xf32>
    %cst_110 = arith.constant dense<0xFF800000> : vector<2x16xf32>
    %266 = vector.multi_reduction <maximumf>, %265, %cst_110 [2] : vector<2x16x16xf32> to vector<2x16xf32>
    %267 = vector.shape_cast %266 : vector<2x16xf32> to vector<2x16x1xf32>
    %268 = vector.broadcast %267 : vector<2x16x1xf32> to vector<2x16x16xf32>
    %269 = arith.subf %265, %268 : vector<2x16x16xf32>
    %270 = math.exp %269 : vector<2x16x16xf32>
    %cst_111 = arith.constant dense<0.000000e+00> : vector<2x16xf32>
    %271 = vector.multi_reduction <add>, %270, %cst_111 [2] : vector<2x16x16xf32> to vector<2x16xf32>
    %272 = vector.shape_cast %271 : vector<2x16xf32> to vector<2x16x1xf32>
    %273 = tpu.reciprocal %272 {approx = true} : vector<2x16x1xf32> -> vector<2x16x1xf32>
    %274 = vector.broadcast %273 : vector<2x16x1xf32> to vector<2x16x16xf32>
    %275 = arith.mulf %270, %274 : vector<2x16x16xf32>
    "tpu.trace_start"() <{level = 10 : i32, message = "bqk,bkd->bqd"}> : () -> ()
    %cst_112 = arith.constant dense<0.000000e+00> : vector<2x16x16xf32>
    %276 = tpu.matmul %275, %258, %cst_112 {dimension_numbers = #tpu.dot_dimension_numbers<[2], [1], [1], [2], [0, 0, 0, 1, 1, 2], [0], [0]>} : vector<2x16x16xf32>, vector<2x16x16xf32>, vector<2x16x16xf32> -> vector<2x16x16xf32>
    "tpu.trace_stop"() : () -> ()
    %277 = vector.extract_strided_slice %230 {offsets = [0, 0, 32], sizes = [2, 16, 16], strides = [1, 1, 1]} : vector<2x16x64xf32> to vector<2x16x16xf32>
    %278 = vector.extract_strided_slice %232 {offsets = [0, 0, 32], sizes = [2, 16, 16], strides = [1, 1, 1]} : vector<2x16x64xf32> to vector<2x16x16xf32>
    %279 = vector.extract_strided_slice %234 {offsets = [0, 0, 32], sizes = [2, 16, 16], strides = [1, 1, 1]} : vector<2x16x64xf32> to vector<2x16x16xf32>
    "tpu.trace_start"() <{level = 10 : i32, message = "bqd,bkd->bqk"}> : () -> ()
    %cst_113 = arith.constant dense<0.000000e+00> : vector<2x16x16xf32>
    %280 = tpu.matmul %277, %278, %cst_113 {dimension_numbers = #tpu.dot_dimension_numbers<[2], [2], [1], [1], [0, 0, 0, 1, 1, 1], [0], [0]>} : vector<2x16x16xf32>, vector<2x16x16xf32>, vector<2x16x16xf32> -> vector<2x16x16xf32>
    %cst_114 = arith.constant 0.000000e+00 : f32
    "tpu.trace_stop"() : () -> ()
    %281 = vector.broadcast %cst_114 : f32 to vector<2x1x16xf32>
    %282 = arith.cmpf ogt, %34, %281 : vector<2x1x16xf32>
    %cst_115 = arith.constant -3.40282347E+38 : f32
    %283 = vector.shape_cast %282 : vector<2x1x16xi1> to vector<2x1x16xi1>
    %284 = vector.broadcast %283 : vector<2x1x16xi1> to vector<2x16x16xi1>
    %285 = vector.broadcast %cst_115 : f32 to vector<2x16x16xf32>
    %286 = arith.select %284, %280, %285 : vector<2x16x16xi1>, vector<2x16x16xf32>
    %cst_116 = arith.constant dense<0xFF800000> : vector<2x16xf32>
    %287 = vector.multi_reduction <maximumf>, %286, %cst_116 [2] : vector<2x16x16xf32> to vector<2x16xf32>
    %288 = vector.shape_cast %287 : vector<2x16xf32> to vector<2x16x1xf32>
    %289 = vector.broadcast %288 : vector<2x16x1xf32> to vector<2x16x16xf32>
    %290 = arith.subf %286, %289 : vector<2x16x16xf32>
    %291 = math.exp %290 : vector<2x16x16xf32>
    %cst_117 = arith.constant dense<0.000000e+00> : vector<2x16xf32>
    %292 = vector.multi_reduction <add>, %291, %cst_117 [2] : vector<2x16x16xf32> to vector<2x16xf32>
    %293 = vector.shape_cast %292 : vector<2x16xf32> to vector<2x16x1xf32>
    %294 = tpu.reciprocal %293 {approx = true} : vector<2x16x1xf32> -> vector<2x16x1xf32>
    %295 = vector.broadcast %294 : vector<2x16x1xf32> to vector<2x16x16xf32>
    %296 = arith.mulf %291, %295 : vector<2x16x16xf32>
    "tpu.trace_start"() <{level = 10 : i32, message = "bqk,bkd->bqd"}> : () -> ()
    %cst_118 = arith.constant dense<0.000000e+00> : vector<2x16x16xf32>
    %297 = tpu.matmul %296, %279, %cst_118 {dimension_numbers = #tpu.dot_dimension_numbers<[2], [1], [1], [2], [0, 0, 0, 1, 1, 2], [0], [0]>} : vector<2x16x16xf32>, vector<2x16x16xf32>, vector<2x16x16xf32> -> vector<2x16x16xf32>
    "tpu.trace_stop"() : () -> ()
    %298 = vector.extract_strided_slice %230 {offsets = [0, 0, 48], sizes = [2, 16, 16], strides = [1, 1, 1]} : vector<2x16x64xf32> to vector<2x16x16xf32>
    %299 = vector.extract_strided_slice %232 {offsets = [0, 0, 48], sizes = [2, 16, 16], strides = [1, 1, 1]} : vector<2x16x64xf32> to vector<2x16x16xf32>
    %300 = vector.extract_strided_slice %234 {offsets = [0, 0, 48], sizes = [2, 16, 16], strides = [1, 1, 1]} : vector<2x16x64xf32> to vector<2x16x16xf32>
    "tpu.trace_start"() <{level = 10 : i32, message = "bqd,bkd->bqk"}> : () -> ()
    %cst_119 = arith.constant dense<0.000000e+00> : vector<2x16x16xf32>
    %301 = tpu.matmul %298, %299, %cst_119 {dimension_numbers = #tpu.dot_dimension_numbers<[2], [2], [1], [1], [0, 0, 0, 1, 1, 1], [0], [0]>} : vector<2x16x16xf32>, vector<2x16x16xf32>, vector<2x16x16xf32> -> vector<2x16x16xf32>
    %cst_120 = arith.constant 0.000000e+00 : f32
    "tpu.trace_stop"() : () -> ()
    %302 = vector.broadcast %cst_120 : f32 to vector<2x1x16xf32>
    %303 = arith.cmpf ogt, %34, %302 : vector<2x1x16xf32>
    %cst_121 = arith.constant -3.40282347E+38 : f32
    %304 = vector.shape_cast %303 : vector<2x1x16xi1> to vector<2x1x16xi1>
    %305 = vector.broadcast %304 : vector<2x1x16xi1> to vector<2x16x16xi1>
    %306 = vector.broadcast %cst_121 : f32 to vector<2x16x16xf32>
    %307 = arith.select %305, %301, %306 : vector<2x16x16xi1>, vector<2x16x16xf32>
    %cst_122 = arith.constant dense<0xFF800000> : vector<2x16xf32>
    %308 = vector.multi_reduction <maximumf>, %307, %cst_122 [2] : vector<2x16x16xf32> to vector<2x16xf32>
    %309 = vector.shape_cast %308 : vector<2x16xf32> to vector<2x16x1xf32>
    %310 = vector.broadcast %309 : vector<2x16x1xf32> to vector<2x16x16xf32>
    %311 = arith.subf %307, %310 : vector<2x16x16xf32>
    %312 = math.exp %311 : vector<2x16x16xf32>
    %cst_123 = arith.constant dense<0.000000e+00> : vector<2x16xf32>
    %313 = vector.multi_reduction <add>, %312, %cst_123 [2] : vector<2x16x16xf32> to vector<2x16xf32>
    %314 = vector.shape_cast %313 : vector<2x16xf32> to vector<2x16x1xf32>
    %315 = tpu.reciprocal %314 {approx = true} : vector<2x16x1xf32> -> vector<2x16x1xf32>
    %316 = vector.broadcast %315 : vector<2x16x1xf32> to vector<2x16x16xf32>
    %317 = arith.mulf %312, %316 : vector<2x16x16xf32>
    "tpu.trace_start"() <{level = 10 : i32, message = "bqk,bkd->bqd"}> : () -> ()
    %cst_124 = arith.constant dense<0.000000e+00> : vector<2x16x16xf32>
    %318 = tpu.matmul %317, %300, %cst_124 {dimension_numbers = #tpu.dot_dimension_numbers<[2], [1], [1], [2], [0, 0, 0, 1, 1, 2], [0], [0]>} : vector<2x16x16xf32>, vector<2x16x16xf32>, vector<2x16x16xf32> -> vector<2x16x16xf32>
    "tpu.trace_stop"() : () -> ()
    %319 = tpu.concatenate %255, %276, %297, %318 in 2 : vector<2x16x16xf32>, vector<2x16x16xf32>, vector<2x16x16xf32>, vector<2x16x16xf32> -> vector<2x16x64xf32>
    %320 = vector.shape_cast %319 : vector<2x16x64xf32> to vector<32x64xf32>
    %c1_125 = arith.constant 1 : index
    %c0_126 = arith.constant 0 : index
    %c0_127 = arith.constant 0 : index
    %321 = vector.load %arg8[%c1_125, %c0_126, %c0_127] : memref<2x64x64xf32, #tpu.memory_space<vmem>>, vector<1x64x64xf32>
    %322 = vector.shape_cast %321 : vector<1x64x64xf32> to vector<64x64xf32>
    %cst_128 = arith.constant dense<0.000000e+00> : vector<32x64xf32>
    %323 = tpu.matmul %320, %322, %cst_128 {dimension_numbers = #tpu.dot_dimension_numbers<[1], [0], [0], [1], [0, 0, 1, 1], [], []>} : vector<32x64xf32>, vector<64x64xf32>, vector<32x64xf32> -> vector<32x64xf32>
    %c1_129 = arith.constant 1 : index
    %c0_130 = arith.constant 0 : index
    %c0_131 = arith.constant 0 : index
    %324 = vector.load %arg9[%c1_129, %c0_130, %c0_131] : memref<2x1x64xf32, #tpu.memory_space<vmem>>, vector<1x1x64xf32>
    %325 = vector.shape_cast %324 : vector<1x1x64xf32> to vector<1x64xf32>
    %326 = vector.broadcast %325 : vector<1x64xf32> to vector<32x64xf32>
    %327 = arith.addf %323, %326 : vector<32x64xf32>
    %328 = arith.addf %221, %327 : vector<32x64xf32>
    %c1_132 = arith.constant 1 : index
    %c0_133 = arith.constant 0 : index
    %c0_134 = arith.constant 0 : index
    %329 = vector.load %arg10[%c1_132, %c0_133, %c0_134] : memref<2x1x64xf32, #tpu.memory_space<vmem>>, vector<1x1x64xf32>
    %330 = vector.shape_cast %329 : vector<1x1x64xf32> to vector<1x64xf32>
    %c1_135 = arith.constant 1 : index
    %c0_136 = arith.constant 0 : index
    %c0_137 = arith.constant 0 : index
    %331 = vector.load %arg11[%c1_135, %c0_136, %c0_137] : memref<2x1x64xf32, #tpu.memory_space<vmem>>, vector<1x1x64xf32>
    %332 = vector.shape_cast %331 : vector<1x1x64xf32> to vector<1x64xf32>
    %cst_138 = arith.constant dense<0.000000e+00> : vector<32xf32>
    %333 = vector.multi_reduction <add>, %328, %cst_138 [1] : vector<32x64xf32> to vector<32xf32>
    %334 = vector.shape_cast %333 : vector<32xf32> to vector<32x1xf32>
    %cst_139 = arith.constant 6.400000e+01 : f32
    %335 = vector.broadcast %cst_139 : f32 to vector<32x1xf32>
    %336 = arith.divf %334, %335 : vector<32x1xf32>
    %337 = vector.broadcast %336 : vector<32x1xf32> to vector<32x64xf32>
    %338 = arith.subf %328, %337 : vector<32x64xf32>
    %339 = arith.mulf %338, %338 : vector<32x64xf32>
    %cst_140 = arith.constant dense<0.000000e+00> : vector<32xf32>
    %340 = vector.multi_reduction <add>, %339, %cst_140 [1] : vector<32x64xf32> to vector<32xf32>
    %341 = vector.shape_cast %340 : vector<32xf32> to vector<32x1xf32>
    %cst_141 = arith.constant 6.400000e+01 : f32
    %342 = vector.broadcast %cst_141 : f32 to vector<32x1xf32>
    %343 = arith.divf %341, %342 : vector<32x1xf32>
    %344 = vector.broadcast %336 : vector<32x1xf32> to vector<32x64xf32>
    %345 = arith.subf %328, %344 : vector<32x64xf32>
    %cst_142 = arith.constant 9.99999996E-13 : f32
    %346 = vector.broadcast %cst_142 : f32 to vector<32x1xf32>
    %347 = arith.addf %343, %346 : vector<32x1xf32>
    %348 = math.rsqrt %347 : vector<32x1xf32>
    %349 = vector.broadcast %348 : vector<32x1xf32> to vector<32x64xf32>
    %350 = arith.mulf %345, %349 : vector<32x64xf32>
    %351 = vector.broadcast %330 : vector<1x64xf32> to vector<32x64xf32>
    %352 = arith.mulf %350, %351 : vector<32x64xf32>
    %353 = vector.broadcast %332 : vector<1x64xf32> to vector<32x64xf32>
    %354 = arith.addf %352, %353 : vector<32x64xf32>
    %c1_143 = arith.constant 1 : index
    %c0_144 = arith.constant 0 : index
    %c0_145 = arith.constant 0 : index
    %355 = vector.load %arg12[%c1_143, %c0_144, %c0_145] : memref<2x64x128xf32, #tpu.memory_space<vmem>>, vector<1x64x128xf32>
    %356 = vector.shape_cast %355 : vector<1x64x128xf32> to vector<64x128xf32>
    %cst_146 = arith.constant dense<0.000000e+00> : vector<32x128xf32>
    %357 = tpu.matmul %354, %356, %cst_146 {dimension_numbers = #tpu.dot_dimension_numbers<[1], [0], [0], [1], [0, 0, 1, 1], [], []>} : vector<32x64xf32>, vector<64x128xf32>, vector<32x128xf32> -> vector<32x128xf32>
    %c1_147 = arith.constant 1 : index
    %c0_148 = arith.constant 0 : index
    %c0_149 = arith.constant 0 : index
    %358 = vector.load %arg13[%c1_147, %c0_148, %c0_149] : memref<2x1x128xf32, #tpu.memory_space<vmem>>, vector<1x1x128xf32>
    %359 = vector.shape_cast %358 : vector<1x1x128xf32> to vector<1x128xf32>
    %360 = vector.broadcast %359 : vector<1x128xf32> to vector<32x128xf32>
    %361 = arith.addf %357, %360 : vector<32x128xf32>
    %cst_150 = arith.constant 5.000000e-01 : f32
    %362 = vector.broadcast %cst_150 : f32 to vector<32x128xf32>
    %363 = arith.mulf %362, %361 : vector<32x128xf32>
    %cst_151 = arith.constant 4.471500e-02 : f32
    %364 = vector.broadcast %cst_151 : f32 to vector<32x128xf32>
    %365 = arith.mulf %364, %361 : vector<32x128xf32>
    %366 = arith.mulf %365, %361 : vector<32x128xf32>
    %367 = arith.mulf %366, %361 : vector<32x128xf32>
    %368 = arith.addf %361, %367 : vector<32x128xf32>
    %cst_152 = arith.constant 0.797884583 : f32
    %369 = vector.broadcast %cst_152 : f32 to vector<32x128xf32>
    %370 = arith.mulf %369, %368 : vector<32x128xf32>
    %371 = math.tanh %370 : vector<32x128xf32>
    %cst_153 = arith.constant 1.000000e+00 : f32
    %372 = vector.broadcast %cst_153 : f32 to vector<32x128xf32>
    %373 = arith.addf %372, %371 : vector<32x128xf32>
    %374 = arith.mulf %363, %373 : vector<32x128xf32>
    %c1_154 = arith.constant 1 : index
    %c0_155 = arith.constant 0 : index
    %c0_156 = arith.constant 0 : index
    %375 = vector.load %arg14[%c1_154, %c0_155, %c0_156] : memref<2x128x64xf32, #tpu.memory_space<vmem>>, vector<1x128x64xf32>
    %376 = vector.shape_cast %375 : vector<1x128x64xf32> to vector<128x64xf32>
    %cst_157 = arith.constant dense<0.000000e+00> : vector<32x64xf32>
    %377 = tpu.matmul %374, %376, %cst_157 {dimension_numbers = #tpu.dot_dimension_numbers<[1], [0], [0], [1], [0, 0, 1, 1], [], []>} : vector<32x128xf32>, vector<128x64xf32>, vector<32x64xf32> -> vector<32x64xf32>
    %c1_158 = arith.constant 1 : index
    %c0_159 = arith.constant 0 : index
    %c0_160 = arith.constant 0 : index
    %378 = vector.load %arg15[%c1_158, %c0_159, %c0_160] : memref<2x1x64xf32, #tpu.memory_space<vmem>>, vector<1x1x64xf32>
    %379 = vector.shape_cast %378 : vector<1x1x64xf32> to vector<1x64xf32>
    %380 = vector.broadcast %379 : vector<1x64xf32> to vector<32x64xf32>
    %381 = arith.addf %377, %380 : vector<32x64xf32>
    %382 = arith.addf %354, %381 : vector<32x64xf32>
    %c1_161 = arith.constant 1 : index
    %c0_162 = arith.constant 0 : index
    %c0_163 = arith.constant 0 : index
    %383 = vector.load %arg16[%c1_161, %c0_162, %c0_163] : memref<2x1x64xf32, #tpu.memory_space<vmem>>, vector<1x1x64xf32>
    %384 = vector.shape_cast %383 : vector<1x1x64xf32> to vector<1x64xf32>
    %c1_164 = arith.constant 1 : index
    %c0_165 = arith.constant 0 : index
    %c0_166 = arith.constant 0 : index
    %385 = vector.load %arg17[%c1_164, %c0_165, %c0_166] : memref<2x1x64xf32, #tpu.memory_space<vmem>>, vector<1x1x64xf32>
    %386 = vector.shape_cast %385 : vector<1x1x64xf32> to vector<1x64xf32>
    %cst_167 = arith.constant dense<0.000000e+00> : vector<32xf32>
    %387 = vector.multi_reduction <add>, %382, %cst_167 [1] : vector<32x64xf32> to vector<32xf32>
    %388 = vector.shape_cast %387 : vector<32xf32> to vector<32x1xf32>
    %cst_168 = arith.constant 6.400000e+01 : f32
    %389 = vector.broadcast %cst_168 : f32 to vector<32x1xf32>
    %390 = arith.divf %388, %389 : vector<32x1xf32>
    %391 = vector.broadcast %390 : vector<32x1xf32> to vector<32x64xf32>
    %392 = arith.subf %382, %391 : vector<32x64xf32>
    %393 = arith.mulf %392, %392 : vector<32x64xf32>
    %cst_169 = arith.constant dense<0.000000e+00> : vector<32xf32>
    %394 = vector.multi_reduction <add>, %393, %cst_169 [1] : vector<32x64xf32> to vector<32xf32>
    %395 = vector.shape_cast %394 : vector<32xf32> to vector<32x1xf32>
    %cst_170 = arith.constant 6.400000e+01 : f32
    %396 = vector.broadcast %cst_170 : f32 to vector<32x1xf32>
    %397 = arith.divf %395, %396 : vector<32x1xf32>
    %398 = vector.broadcast %390 : vector<32x1xf32> to vector<32x64xf32>
    %399 = arith.subf %382, %398 : vector<32x64xf32>
    %cst_171 = arith.constant 9.99999996E-13 : f32
    %400 = vector.broadcast %cst_171 : f32 to vector<32x1xf32>
    %401 = arith.addf %397, %400 : vector<32x1xf32>
    %402 = math.rsqrt %401 : vector<32x1xf32>
    %403 = vector.broadcast %402 : vector<32x1xf32> to vector<32x64xf32>
    %404 = arith.mulf %399, %403 : vector<32x64xf32>
    %405 = vector.broadcast %384 : vector<1x64xf32> to vector<32x64xf32>
    %406 = arith.mulf %404, %405 : vector<32x64xf32>
    %407 = vector.broadcast %386 : vector<1x64xf32> to vector<32x64xf32>
    %408 = arith.addf %406, %407 : vector<32x64xf32>
    %409 = vector.shape_cast %408 : vector<32x64xf32> to vector<2x16x64xf32>
    %cst_172 = arith.constant dense<0.000000e+00> : vector<2x64xf32>
    %410 = vector.multi_reduction <add>, %409, %cst_172 [1] : vector<2x16x64xf32> to vector<2x64xf32>
    %cst_173 = arith.constant 1.600000e+01 : f32
    %411 = vector.broadcast %cst_173 : f32 to vector<2x64xf32>
    %412 = arith.divf %410, %411 : vector<2x64xf32>
    %c0_174 = arith.constant 0 : index
    %c0_175 = arith.constant 0 : index
    %413 = vector.load %arg18[%c0_174, %c0_175] : memref<64x64xf32, #tpu.memory_space<vmem>>, vector<64x64xf32>
    %cst_176 = arith.constant dense<0.000000e+00> : vector<2x64xf32>
    %414 = tpu.matmul %412, %413, %cst_176 {dimension_numbers = #tpu.dot_dimension_numbers<[1], [0], [0], [1], [0, 0, 1, 1], [], []>} : vector<2x64xf32>, vector<64x64xf32>, vector<2x64xf32> -> vector<2x64xf32>
    %c0_177 = arith.constant 0 : index
    %c0_178 = arith.constant 0 : index
    %415 = vector.load %arg19[%c0_177, %c0_178] : memref<1x64xf32, #tpu.memory_space<vmem>>, vector<1x64xf32>
    %416 = vector.broadcast %415 : vector<1x64xf32> to vector<2x64xf32>
    %417 = arith.addf %414, %416 : vector<2x64xf32>
    %418 = tpu.concatenate %412, %417 in 1 : vector<2x64xf32>, vector<2x64xf32> -> vector<2x128xf32>
    %c0_179 = arith.constant 0 : index
    %c0_180 = arith.constant 0 : index
    %419 = vector.load %arg20[%c0_179, %c0_180] : memref<2x128xf32, #tpu.memory_space<vmem>>, vector<2x128xf32>
    tpu.vector_store %arg20[%c0_179, %c0_180], %418 {strides = array<i32>} : memref<2x128xf32, #tpu.memory_space<vmem>>, vector<2x128xf32>,
    return
  }
}

</mosaic_0001>

<bundles_post_ra>
// kernel: tpu_custom_call.1
= control target key start
LH: loop header
LB: loop body
LE: loop exit
PB: predicated region body
PF: predicated region fallthrough
CT: control target
= control target key end

     0   :  { %s8039_s0 = inlined_call_operand.vmem [shape: s32[32,1], index: 0, kind: input, shape index: {}]   ;;  %s8040_s1 = inlined_call_operand.vmem [shape: f32[2,1,16], index: 1, kind: input, shape index: {}]   ;;  %s8041_s2 = inlined_call_operand.vmem [shape: f32[100,64], index: 2, kind: input, shape index: {}]   ;;  %s8042_s3 = inlined_call_operand.vmem [shape: f32[32,64], index: 3, kind: input, shape index: {}]   ;;  %s8043_s4 = inlined_call_operand.vmem [shape: f32[1,64], index: 4, kind: input, shape index: {}]   ;;  %s8044_s5 = inlined_call_operand.vmem [shape: f32[1,64], index: 5, kind: input, shape index: {}]   ;;  %s8045_s6 = inlined_call_operand.vmem [shape: f32[2,64,192], index: 6, kind: input, shape index: {}]   ;;  %s8046_s7 = inlined_call_operand.vmem [shape: f32[2,1,192], index: 7, kind: input, shape index: {}]   ;;  %s8047_s8 = inlined_call_operand.vmem [shape: f32[2,64,64], index: 8, kind: input, shape index: {}]   ;;  %s8048_s9 = inlined_call_operand.vmem [shape: f32[2,1,64], index: 9, kind: input, shape index: {}]   ;;  %s8049_s10 = inlined_call_operand.vmem [shape: f32[2,1,64], index: 10, kind: input, shape index: {}]   ;;  %s8050_s11 = inlined_call_operand.vmem [shape: f32[2,1,64], index: 11, kind: input, shape index: {}]   ;;  %s8051_s12 = inlined_call_operand.hbm [shape: f32[2,64,128], index: 12, kind: input, shape index: {}]   ;;  %s8052_s13 = inlined_call_operand.vmem [shape: f32[2,1,128], index: 13, kind: input, shape index: {}]   ;;  %s8053_s14 = inlined_call_operand.vmem [shape: f32[2,128,64], index: 14, kind: input, shape index: {}]   ;;  %s8054_s15 = inlined_call_operand.vmem [shape: f32[2,1,64], index: 15, kind: input, shape index: {}]   ;;  %s8055_s16 = inlined_call_operand.vmem [shape: f32[2,1,64], index: 16, kind: input, shape index: {}]   ;;  %s8056_s17 = inlined_call_operand.vmem [shape: f32[2,1,64], index: 17, kind: input, shape index: {}]   ;;  %s8057_s18 = inlined_call_operand.vmem [shape: f32[64,64], index: 18, kind: input, shape index: {}]   ;;  %s8058_s19 = inlined_call_operand.vmem [shape: f32[1,64], index: 19, kind: input, shape index: {}]   ;;  %s8059_s20 = inlined_call_operand.hbm [shape: f32[2,128], index: 20, kind: output, shape index: {}]  }
   0x1   :  { %8064 = sst [smem:[#allocation8_spill]] %s8039_s0 }
   0x2   :  { %8065 = sst [smem:[#allocation9_spill]] %s8040_s1 }
   0x3   :  { %8066 = sst [smem:[#allocation10_spill]] %s8041_s2 }
   0x4   :  { %8067 = sst [smem:[#allocation11_spill]] %s8042_s3 }
   0x5   :  { %8068 = sst [smem:[#allocation12_spill]] %s8043_s4 }
   0x6   :  { %25 = vsyncpa [#allocation3], 0 }
   0x7   :  { %26 = vsyncpa [#allocation4], 0  ;;  %s6725_s1 = smov [#allocation2]   ;;  %s6677_s2 = scalar_lea.hbm %s8051_s12, 2048 }
   0x8   :  { %s56_s22 = sshll.u32 %s6725_s1, 4  ;;  %p6678_p0 = scmp.ne.s32.totalorder %s8051_s12, %s6677_s2  ;;  %s57_s22 = int_to_ptr.vmem [resolvable:$true] %s56_s22 }
   0x9   :  { %p6681_p1 = scmp.lt.u32.totalorder %s6677_s2, %s8051_s12 }
   0xb   :  { %p6683_p2 = pnand %p6681_p1, %p6678_p0 }
   0xd   :  { %6686 = shalt.err (!%p6683_p2)
}
   0xe   :  { %s6687_s28 = scalar_lea.vmem %s57_s22, 2048  ;;  %p6692_p4 = scmp.lt.s32.totalorder %s57_s22, %s57_s22 }
   0xf   :  { %p6688_p3 = scmp.ne.s32.totalorder %s57_s22, %s6687_s28  ;;  %p6693_p5 = scmp.lt.s32.totalorder %s6687_s28, %s6687_s28 }
  0x11   :  { %p6694_p6 = por %p6693_p5, %p6692_p4 }
  0x13   :  { %p6695_p7 = pnand %p6694_p6, %p6688_p3 }
  0x15   :  { %6698 = shalt.err (!%p6695_p7)
}
  0x16   :  { %s6726_s4 = smov 128   ;;  %s6727_s29 = smov 8  }
  0x17   :  { %62 = dma.hbm_to_vmem [thread:$0]  %s8051_s12, 2048, %s57_s22, [#allocation3], %s6726_s4, %s6726_s4, %s6727_s29  }
  0x18   :  { %6721 = dma.done.wait [#allocation3], 2048  }
  0x19   :  { %6722 = vsyncadd [#allocation3], 4294965248  ;;  %v6728_v0 = vmov 0   ;;  %s8069_s23 = sld [smem:[#allocation8_spill]]  ;;  %s8070_s26 = sld [smem:[#allocation10_spill]]  ;;  %v6729_v7 = vmov 0.0   ;;  %v84_v25 = vlaneseq }
  0x1a   :  { %6351 = vset.pattern.permute.xlu0 %v6728_v0  ;;  %6352 = vset.pattern.permute.xlu1 %v6728_v0  ;;  %vm140_vm0 = vcmask 1043456   ;;  %vm127_vm1 = vcmask 818176   ;;  %vm231_vm6 = vcmask 523264   ;;  %s8072_s21 = sld [smem:[#allocation12_spill]]  ;;  %vm442_vm7 = vcmask 130048   ;;  %s6730_s25 = smov 64  }
  0x1b   :  { %411 = vmatprep.mubr.f32.mxu1 %v6729_v7  ;;  %v85_v26 = vand.u32 127, %v84_v25  ;;  %s6732_s3 = smov 48   ;;  %vm7082_vm8 = vmpackc.low %vm442_vm7, %vm442_vm7  ;;  %s8075_s22 = sld [smem:[#allocation9_spill]]  ;;  %vm2107_vm13 = vcmask 261120   ;;  %vm2112_vm14 = vcmask 392192   ;;  %vm6738_vm15 = vmmov 0  }
  0x1c   :  { %s6733_s4 = smov 32   ;;  %s6734_s29 = smov 96  }
  0x1d   :  { %s6735_s30 = smov 16   ;;  %s6736_s0 = smov 80  }
  0x1e   :  { %s6739_s28 = smov [#allocation5]  }
  0x1f   :  { %v80_v1 = vld [vmem:[%s8069_s23] sm:$0xff]  ;;  %v82_v2 = vld [vmem:[%s8069_s23 + $0x10] sm:$0xff]  ;;  %v81_v3 = vld [vmem:[%s8069_s23 + $0x8] sm:$0xff] }
  0x20   :  { %87 = vperm.xlu0 %6351, %v80_v1   ;;  %93 = vperm.xlu1 %6352, %v82_v2   ;;  %v110_v4 = vld [vmem:[%s8070_s26] sm:$0xff]  ;;  %v111_v5 = vld [vmem:[%s8070_s26 + $0x8] sm:$0xff]  ;;  %v112_v6 = vld [vmem:[%s8070_s26 + $0x10] sm:$0xff] }
  0x21   :  { %v83_v8 = vld [vmem:[%s8069_s23 + $0x18] sm:$0xff]  ;;  %v5980_v9 = vpack.c.bf16 %v111_v5, %v110_v4  ;;  %v114_v12 = vld [vmem:[%s8070_s26 + $0x20] sm:$0xff]  ;;  %v115_v13 = vld [vmem:[%s8070_s26 + $0x28] sm:$0xff]  ;;  %s8071_s23 = sld [smem:[#allocation11_spill]] }
  0x22   :  { %v113_v10 = vld [vmem:[%s8070_s26 + $0x18] sm:$0xff]  ;;  %v5988_v14 = vpack.c.bf16 %v115_v13, %v114_v12  ;;  %v116_v15 = vld [vmem:[%s8070_s26 + $0x30] sm:$0xff]  ;;  %v118_v18 = vld [vmem:[%s8070_s26 + $0x40] sm:$0xff] }
  0x23   :  { %v5984_v11 = vpack.c.bf16 %v113_v10, %v112_v6  ;;  %5981 = vmatprep.subr.bf16.mxu0 %v5980_v9  ;;  %v117_v16 = vld [vmem:[%s8070_s26 + $0x38] sm:$0xff]  ;;  %v119_v19 = vld [vmem:[%s8070_s26 + $0x48] sm:$0xff]  ;;  %v120_v21 = vld [vmem:[%s8070_s26 + $0x50] sm:$0xff] }
  0x24   :  { %90 = vperm.xlu0 %6351, %v81_v3   ;;  %96 = vperm.xlu1 %6352, %v83_v8   ;;  %v5992_v17 = vpack.c.bf16 %v117_v16, %v116_v15  ;;  %v5996_v20 = vpack.c.bf16 %v119_v19, %v118_v18  ;;  %v121_v22 = vld [vmem:[%s8070_s26 + $0x58] sm:$0xff]  ;;  %v122_v24 = vld [vmem:[%s8070_s26 + $0x60] sm:$0xf]  ;;  %v309_v13 = vld [vmem:[%s8045_s6 + $0x10] sm:$0xff]  ;;  %s6731_s26 = smov 112  }
  0x25   :  { %5983 = vmatpush3.bf16.msra.mxu0 %v5980_v9  ;;  %v6000_v23 = vpack.c.bf16 %v121_v22, %v120_v21  ;;  %v308_v9 = vld [vmem:[%s8045_s6 + $0x8] sm:$0xff]  ;;  %v310_v10 = vld [vmem:[%s8045_s6 + $0x18] sm:$0xff]  ;;  %v307_v12 = vld [vmem:[%s8045_s6] sm:$0xff] }
  0x26   :  { %5985 = vmatprep.subr.bf16.mxu0 %v5984_v11  ;;  %v312_v15 = vld [vmem:[%s8045_s6 + $0x28] sm:$0xff]  ;;  %v314_v16 = vld [vmem:[%s8045_s6 + $0x38] sm:$0xff]  ;;  %v311_v18 = vld [vmem:[%s8045_s6 + $0x20] sm:$0xff] }
  0x27   :  { %v124_v35 = vld [vmem:[%s8071_s23 + $0x8] sm:$0xff]  ;;  %v123_v36 = vld [vmem:[%s8071_s23] sm:$0xff]  ;;  %v125_v42 = vld [vmem:[%s8071_s23 + $0x10] sm:$0xff] }
  0x28   :  { %v126_v45 = vld [vmem:[%s8071_s23 + $0x18] sm:$0xff]  ;;  %v313_v19 = vld [vmem:[%s8045_s6 + $0x30] sm:$0xff]  ;;  %v316_v21 = vld [vmem:[%s8045_s6 + $0x48] sm:$0xff] }
  0x29   :  { %5987 = vmatpush3.bf16.msra.mxu0 %v5984_v11  ;;  %v6004_v11 = vpack.c.bf16 %v310_v10, %v308_v9  ;;  %v318_v22 = vld [vmem:[%s8045_s6 + $0x58] sm:$0xff] }
  0x2a   :  { %5989 = vmatprep.subr.bf16.mxu0 %v5988_v14 }
  0x2b   :  { %6005 = vmatprep.subr.bf16.mxu1 %v6004_v11 }
  0x2d   :  { %5991 = vmatpush3.bf16.msra.mxu0 %v5988_v14  ;;  %v6006_v14 = vpack.c.bf16 %v309_v13, %v307_v12 }
  0x2e   :  { %5993 = vmatprep.subr.bf16.mxu0 %v5992_v17 }
  0x2f   :  { %6007 = vmatpush1.bf16.msra.mxu1 %v6006_v14 }
  0x31   :  { %5995 = vmatpush3.bf16.msra.mxu0 %v5992_v17  ;;  %v6008_v17 = vpack.c.bf16 %v314_v16, %v312_v15 }
  0x32   :  { %5997 = vmatprep.subr.bf16.mxu0 %v5996_v20 }
  0x33   :  { %6009 = vmatprep.subr.bf16.mxu1 %v6008_v17 }
  0x35   :  { %5999 = vmatpush3.bf16.msra.mxu0 %v5996_v20  ;;  %v6010_v20 = vpack.c.bf16 %v313_v19, %v311_v18 }
  0x36   :  { %6001 = vmatprep.subr.bf16.mxu0 %v6000_v23 }
  0x37   :  { %6011 = vmatpush1.bf16.msra.mxu1 %v6010_v20 }
  0x39   :  { %6003 = vmatpush3.bf16.msra.mxu0 %v6000_v23  ;;  %v6012_v23 = vpack.c.bf16 %v318_v22, %v316_v21 }
  0x3a   :  { %5565 = vmatprep.subr.msk.mxu0 %vm140_vm0, %v122_v24 }
  0x3b   :  { %6013 = vmatprep.subr.bf16.mxu1 %v6012_v23 }
  0x3d   :  { %5566 = vmatpush3.msk.msra.mxu0 %vm140_vm0, %v122_v24  ;;  %v315_v24 = vld [vmem:[%s8045_s6 + $0x40] sm:$0xff]  ;;  %vm5008_vm0 = vcmask 1041409  }
  0x9f   :  { %v88_v27 = vpop.permute.xlu0 %87  ;;  %v94_v28 = vpop.permute.xlu1 %93 }
  0xa0   :  { %vm98_vm2 = vcmp.eq.s32.totalorder %v88_v27, %v85_v26  ;;  %vm100_vm3 = vcmp.eq.s32.totalorder %v94_v28, %v85_v26  ;;  %v320_v28 = vld [vmem:[%s8045_s6 + $0x68] sm:$0xff] }
  0xa1   :  { %v5104_v29 = vsel %vm98_vm2, 1.0, %v6729_v7  ;;  %v5106_v31 = vsel %vm100_vm3, 1.0, %v6729_v7 }
  0xa2   :  { %5567 = vmatprep.mubr.msk.f32.mxu0 %vm127_vm1, %v5104_v29  ;;  %v322_v29 = vld [vmem:[%s8045_s6 + $0x78] sm:$0xff] }
  0xa3   :  { %v91_v30 = vpop.permute.xlu0 %90  ;;  %v97_v32 = vpop.permute.xlu1 %96 }
  0xa4   :  { %vm99_vm4 = vcmp.eq.s32.totalorder %v91_v30, %v85_v26  ;;  %vm101_vm5 = vcmp.eq.s32.totalorder %v97_v32, %v85_v26  ;;  %v317_v26 = vld [vmem:[%s8045_s6 + $0x50] sm:$0xff]  ;;  %v319_v30 = vld [vmem:[%s8045_s6 + $0x60] sm:$0xff] }
  0xa5   :  { %v5105_v33 = vsel %vm99_vm4, 1.0, %v6729_v7  ;;  %v5107_v34 = vsel %vm101_vm5, 1.0, %v6729_v7  ;;  %v6014_v27 = vpack.c.bf16 %v317_v26, %v315_v24  ;;  %v321_v32 = vld [vmem:[%s8045_s6 + $0x70] sm:$0xff] }
  0xa6   :  { %5568 = vmatmul.mubr.msk.f32.vlgmr.msra.gmra.mrb[0].mxu0 %vm127_vm1, %v5105_v33  ;;  %v6018_v33 = vpack.c.bf16 %v321_v32, %v319_v30 }
  0xa7   :  { %5570 = vmatprep.mubr.msk.f32.mxu0 %vm127_vm1, %v5106_v31  ;;  %v6016_v31 = vpack.c.bf16 %v322_v29, %v320_v28  ;;  %6015 = vmatpush1.bf16.msra.mxu1 %v6014_v27 }
  0xa9   :  { %6017 = vmatprep.subr.bf16.mxu1 %v6016_v31 }
  0xaa   :  { %5571 = vmatmul.mubr.msk.f32.gmra.mrb[2].mxu0 %vm127_vm1, %v5107_v34 }
  0xab   :  { %6019 = vmatpush1.bf16.msra.mxu1 %v6018_v33 }
 0x179   :  { %v5569_v37 = vpop.f32.mrb[0].mxu0 }
 0x17a   :  { %v216_v38 = vadd.f32 %v5569_v37, %v124_v35  ;;  %v210_v39 = vpop.f32.mrb[1].mxu0 }
 0x17b   :  { %v211_v40 = vadd.f32 %v210_v39, %v123_v36 }
 0x17c   :  { %v235_v41 = vsel %vm231_vm6, %v216_v38, 0.0 }
 0x17d   :  { %236 = vadd.xlane.f32.xlu1 %v235_v41  ;;  %v5572_v43 = vpop.f32.mrb[2].mxu0  ;;  %v232_v44 = vsel %vm231_vm6, %v211_v40, 0.0 }
 0x17e   :  { %v220_v46 = vpop.f32.mrb[3].mxu0  ;;  %233 = vadd.xlane.f32.xlu0 %v232_v44  ;;  %v226_v48 = vadd.f32 %v5572_v43, %v126_v45 }
 0x17f   :  { %v221_v47 = vadd.f32 %v220_v46, %v125_v42 }
 0x180   :  { %v241_v50 = vsel %vm231_vm6, %v226_v48, 0.0 }
 0x181   :  { %v238_v49 = vsel %vm231_vm6, %v221_v47, 0.0 }
 0x182   :  { %239 = vadd.xlane.f32.xlu0 %v238_v49 }
 0x186   :  { %242 = vadd.xlane.f32.xlu0 %v241_v50 }
 0x20a   :  { %v237_v51 = vpop.xlane.xlu1 %236 }
 0x20b   :  { %v246_v52 = vmul.f32 0.015625, %v237_v51  ;;  %v234_v53 = vpop.xlane.xlu0 %233  ;;  %v5114_v51 = vld [vmem:[%s8044_s5] ss:$0 sm:$0xff] }
 0x20c   :  { %v245_v54 = vmul.f32 0.015625, %v234_v53 }
 0x20d   :  { %v6932_v55 = vsub.f32 %v216_v38, %v246_v52 }
 0x20e   :  { %v6934_v56 = vsub.f32 %v211_v40, %v245_v54 }
 0x20f   :  { %v240_v57 = vpop.xlane.xlu0 %239  ;;  %v254_v58 = vmul.f32 %v6932_v55, %v6932_v55 }
 0x210   :  { %v247_v59 = vmul.f32 0.015625, %v240_v57  ;;  %v253_v60 = vmul.f32 %v6934_v56, %v6934_v56 }
 0x211   :  { %v260_v61 = vsel %vm231_vm6, %v254_v58, 0.0 }
 0x212   :  { %v6941_v62 = vsub.f32 %v221_v47, %v247_v59  ;;  %261 = vadd.xlane.f32.xlu0 %v260_v61  ;;  %v257_v63 = vsel %vm231_vm6, %v253_v60, 0.0 }
 0x213   :  { %258 = vadd.xlane.f32.xlu1 %v257_v63  ;;  %v243_v1 = vpop.xlane.xlu0 %242 }
 0x214   :  { %v248_v2 = vmul.f32 0.015625, %v243_v1  ;;  %v255_v3 = vmul.f32 %v6941_v62, %v6941_v62  ;;  %v7030_v1 = vshrl.u32 %v84_v25, 7 }
 0x216   :  { %v6946_v4 = vsub.f32 %v226_v48, %v248_v2  ;;  %v263_v5 = vsel %vm231_vm6, %v255_v3, 0.0  ;;  %v5113_v48 = vld [vmem:[%s8072_s21] ss:$0 sm:$0xff]  ;;  %v7033_v2 = vsub.s32 0, %v7030_v1  ;;  %s5095_s21 = sshll.u32 %s6739_s28, 4  ;;  %s5096_s21 = int_to_ptr.vmem [resolvable:$true] %s5095_s21 }
 0x217   :  { %264 = vadd.xlane.f32.xlu1 %v263_v5  ;;  %v323_v3 = vld [vmem:[%s8046_s7] sm:$0x3]  ;;  %v331_v5 = vsub.s32 1, %v7030_v1  ;;  %s6699_s1 = scalar_lea.vmem %s5096_s21, 32  ;;  %p6704_p9 = scmp.lt.s32.totalorder %s5096_s21, %s5096_s21 }
 0x218   :  { %v256_v6 = vmul.f32 %v6946_v4, %v6946_v4  ;;  %p6700_p8 = scmp.ne.s32.totalorder %s5096_s21, %s6699_s1  ;;  %p6705_p10 = scmp.lt.s32.totalorder %s6699_s1, %s6699_s1 }
 0x219   :  { %v332_v25 = vrot.slane %v323_v3, %v331_v5 }
 0x21a   :  { %v266_v8 = vsel %vm231_vm6, %v256_v6, 0.0  ;;  %p6706_p11 = por %p6705_p10, %p6704_p9 }
 0x21b   :  { %267 = vadd.xlane.f32.xlu0 %v266_v8 }
 0x21c   :  { %p6707_p12 = pnand %p6706_p11, %p6700_p8 }
 0x29f   :  { %v262_v34 = vpop.xlane.xlu0 %261 }
 0x2a0   :  { %v270_v35 = vmul.f32 0.015625, %v262_v34  ;;  %v259_v36 = vpop.xlane.xlu1 %258 }
 0x2a1   :  { %v269_v37 = vmul.f32 0.015625, %v259_v36 }
 0x2a2   :  { %v274_v38 = vadd.f32 1e-12, %v270_v35 }
 0x2a3   :  { %v273_v39 = vadd.f32 1e-12, %v269_v37 }
 0x2a4   :  { %6493 = vrsqrt.f32 %v274_v38  ;;  %v265_v40 = vpop.xlane.xlu1 %264 }
 0x2a5   :  { %6495 = vrsqrt.f32 %v273_v39  ;;  %v271_v41 = vmul.f32 0.015625, %v265_v40  ;;  %v306_v39 = vld [vmem:[%s8075_s22 + $0x1] sm:$0x1]  ;;  %v305_v40 = vld [vmem:[%s8075_s22] sm:$0x1] }
 0x2a6   :  { %vm616_vm9 = vcmp.gt.f32.partialorder %v306_v39, 0.0  ;;  %vm615_vm10 = vcmp.gt.f32.partialorder %v305_v40, 0.0 }
 0x2a7   :  { %v275_v42 = vadd.f32 1e-12, %v271_v41  ;;  %v618_v41 = vsel %vm616_vm9, 1, %v6728_v0 }
 0x2a8   :  { %v268_v43 = vpop.xlane.xlu0 %267 }
 0x2a9   :  { %6497 = vrsqrt.f32 %v275_v42  ;;  %v272_v44 = vmul.f32 0.015625, %v268_v43  ;;  %v617_v42 = vsel %vm615_vm10, 1, %v6728_v0  ;;  %v626_v43 = vrot.slane %v618_v41, %v7033_v2 }
 0x2ab   :  { %v276_v45 = vadd.f32 1e-12, %v272_v44  ;;  %v622_v44 = vrot.slane %v617_v42, %v7033_v2  ;;  %vm7108_vm11 = vcmp.eq.s32.totalorder %v626_v43, 1 }
 0x2ad   :  { %6499 = vrsqrt.f32 %v276_v45  ;;  %vm7112_vm12 = vcmp.eq.s32.totalorder %v622_v44, 1 }
 0x2ae   :  { %v6494_v46 = vpop.eup %6493 }
 0x2af   :  { %v6496_v47 = vpop.eup %6495  ;;  %v282_v50 = vmul.f32 %v6494_v46, %v6932_v55 }
 0x2b0   :  { %v281_v49 = vmul.f32 %v6496_v47, %v6934_v56 }
 0x2b1   :  { %v292_v57 = vmul.f32 %v5113_v48, %v282_v50 }
 0x2b2   :  { %v291_v52 = vmul.f32 %v5113_v48, %v281_v49 }
 0x2b3   :  { %v6498_v53 = vpop.eup %6497  ;;  %v7014_v56 = vadd.f32 %v5114_v51, %v292_v57 }
 0x2b4   :  { %v7008_v54 = vadd.f32 %v5114_v51, %v291_v52  ;;  %v283_v58 = vmul.f32 %v6498_v53, %v6941_v62 }
 0x2b6   :  { %5115 = vmatmul.mubr.msk.f32.vlgmr.msra.gmra.mrb[0].mxu1 %vm231_vm6, %v7008_v54  ;;  %v293_v55 = vmul.f32 %v5113_v48, %v283_v58 }
 0x2b7   :  { %v6500_v59 = vpop.eup %6499  ;;  %417 = vmatprep.mubr.f32.mxu1 %v6729_v7 }
 0x2b8   :  { %v284_v60 = vmul.f32 %v6500_v59, %v6946_v4  ;;  %v7020_v61 = vadd.f32 %v5114_v51, %v293_v55  ;;  %v328_v4 = vrot.slane %v323_v3, %v7033_v2 }
 0x2ba   :  { %5116 = vmatmul.mubr.msk.f32.gmra.mrb[2].mxu1 %vm231_vm6, %v7014_v56  ;;  %v294_v63 = vmul.f32 %v5113_v48, %v284_v60 }
 0x2bb   :  { %423 = vmatprep.mubr.f32.mxu1 %v6729_v7 }
 0x2bc   :  { %v7025_v62 = vadd.f32 %v5114_v51, %v294_v63 }
 0x2be   :  { %5117 = vmatmul.mubr.msk.f32.gmra.mrb[4].mxu1 %vm231_vm6, %v7020_v61 }
 0x2bf   :  { %429 = vmatprep.mubr.f32.mxu1 %v6729_v7 }
 0x2c2   :  { %5118 = vmatmul.mubr.msk.f32.gmra.mrb[6].mxu1 %vm231_vm6, %v7025_v62 }
 0x389   :  { %v413_v6 = vpop.f32.mrb[0].mxu1 }
 0x38a   :  { %v7040_v8 = vadd.f32 %v413_v6, %v328_v4  ;;  %v415_v9 = vpop.f32.mrb[1].mxu1 }
 0x38b   :  { %v416_v12 = vadd.f32 %v415_v9, %v332_v25 }
 0x38c   :  { %5577 = vmatprep.mubr.msk.f32.mxu1 %vm442_vm7, %v7040_v8 }
 0x38d   :  { %v419_v10 = vpop.f32.mrb[2].mxu1 }
 0x38e   :  { %v421_v11 = vpop.f32.mrb[3].mxu1  ;;  %v7054_v24 = vadd.f32 %v419_v10, %v328_v4 }
 0x38f   :  { %v422_v13 = vadd.f32 %v421_v11, %v332_v25 }
 0x390   :  { %v7066_v29 = vpack.i.bf16 %v7054_v24, %v7040_v8 }
 0x391   :  { %v425_v14 = vpop.f32.mrb[4].mxu1  ;;  %v6032_v15 = vpack.c.bf16 %v422_v13, %v416_v12  ;;  %v7046_v16 = vpack.i.bf16 %v422_v13, %v416_v12 }
 0x392   :  { %v7048_v17 = vadd.f32 %v425_v14, %v328_v4  ;;  %v427_v18 = vpop.f32.mrb[5].mxu1 }
 0x393   :  { %v428_v22 = vadd.f32 %v427_v18, %v332_v25 }
 0x394   :  { %5584 = vmatprep.mubr.msk.f32.mxu0 %vm442_vm7, %v7048_v17 }
 0x395   :  { %v431_v19 = vpop.f32.mrb[6].mxu1 }
 0x396   :  { %v7052_v20 = vadd.f32 %v431_v19, %v328_v4  ;;  %v433_v21 = vpop.f32.mrb[7].mxu1 }
 0x397   :  { %v434_v23 = vadd.f32 %v433_v21, %v332_v25 }
 0x398   :  { %v7058_v26 = vpack.i.bf16 %v7052_v20, %v7048_v17 }
 0x399   :  { %v6036_v27 = vpack.c.bf16 %v434_v23, %v428_v22  ;;  %v7060_v28 = vpack.i.bf16 %v434_v23, %v428_v22 }
 0x39a   :  { %6354 = vrot.lane.b32.xlu1 %v7058_v26, %s6730_s25 }
 0x39e   :  { %6359 = vrot.lane.b32.xlu1 %v7066_v29, %s6730_s25 }
 0x3a2   :  { %839 = vrot.lane.b32.xlu1 %v7040_v8, %s6731_s26 }
 0x3a6   :  { %6369 = vrot.lane.b32.xlu1 %v7058_v26, %s6732_s3 }
 0x3aa   :  { %841 = vrot.lane.b32.xlu1 %v7054_v24, %s6731_s26 }
 0x3ae   :  { %930 = vrot.lane.b32.xlu1 %v7048_v17, %s6731_s26 }
 0x3b2   :  { %932 = vrot.lane.b32.xlu1 %v7052_v20, %s6731_s26 }
 0x40c   :  { %v6355_v30 = vpop.permute.xlu1 %6354 }
 0x40d   :  { %v6357_v31 = vunpack.i.h.bf16 %v6355_v30  ;;  %v6356_v32 = vunpack.i.l.bf16 %v6355_v30 }
 0x40f   :  { %v6026_v34 = vpack.c.bf16 %v6357_v31, %v6356_v32 }
 0x410   :  { %v6360_v35 = vpop.permute.xlu1 %6359 }
 0x411   :  { %v6362_v36 = vunpack.i.h.bf16 %v6360_v35  ;;  %v6361_v37 = vunpack.i.l.bf16 %v6360_v35  ;;  %6028 = vmatprep.subr.msk.bf16.mxu0 %vm7082_vm8, %v6026_v34 }
 0x412   :  { %6031 = vmatpush3.bf16.xpose.msk.msra.mxu0 %vm7082_vm8, %v6026_v34 }
 0x413   :  { %v6020_v38 = vpack.c.bf16 %v6362_v36, %v6361_v37  ;;  %6037 = vmatprep.subr.bf16.mxu0 %v6036_v27 }
 0x415   :  { %6022 = vmatprep.subr.msk.bf16.mxu1 %vm7082_vm8, %v6020_v38 }
 0x416   :  { %6025 = vmatpush3.bf16.xpose.msk.msra.mxu1 %vm7082_vm8, %v6020_v38 }
 0x417   :  { %6033 = vmatprep.subr.bf16.mxu1 %v6032_v15 }
 0x419   :  { %5585 = vmatmul.mubr.msk.f32.vlgmr.msra.gmra.mrb[4].mxu0 %vm442_vm7, %v7052_v20 }
 0x41a   :  { %6039 = vmatpush3.bf16.msra.mxu0 %v6036_v27 }
 0x41d   :  { %5578 = vmatmul.mubr.msk.f32.vlgmr.msra.gmra.mrb[8].mxu1 %vm442_vm7, %v7054_v24 }
 0x41e   :  { %6035 = vmatpush3.bf16.msra.mxu1 %v6032_v15  ;;  %v840_v15 = vpop.permute.xlu1 %839 }
 0x422   :  { %v6370_v23 = vpop.permute.xlu1 %6369 }
 0x423   :  { %v6372_v31 = vunpack.i.h.bf16 %v6370_v23  ;;  %v6371_v32 = vunpack.i.l.bf16 %v6370_v23 }
 0x425   :  { %v6046_v36 = vpack.c.bf16 %v6372_v31, %v6371_v32 }
 0x426   :  { %v842_v37 = vpop.permute.xlu1 %841 }
 0x42a   :  { %v931_v38 = vpop.permute.xlu1 %930 }
 0x42e   :  { %v933_v39 = vpop.permute.xlu1 %932 }
 0x4ec   :  { %v5586_v46 = vpop.f32.mrb[4].mxu0 }
 0x4ed   :  { %v606_v47 = vpop.f32.mrb[5].mxu0  ;;  %v632_v0 = vsel %vm7108_vm11, %v5586_v46, -3.4028235e+38 }
 0x4ee   :  { %v631_v49 = vsel %vm7108_vm11, %v606_v47, -3.4028235e+38  ;;  %v642_v58 = vsel %vm442_vm7, %v632_v0, -inf }
 0x4ef   :  { %v639_v50 = vsel %vm442_vm7, %v631_v49, -inf }
 0x4f0   :  { %v5579_v51 = vpop.f32.mrb[8].mxu1  ;;  %640 = vmax.xlane.f32.xlu0 %v639_v50 }
 0x4f1   :  { %v7123_v52 = vsel %vm7112_vm12, %v5579_v51, -3.4028235e+38  ;;  %v517_v53 = vpop.f32.mrb[9].mxu1 }
 0x4f2   :  { %v636_v57 = vsel %vm442_vm7, %v7123_v52, -inf  ;;  %v629_v11 = vsel %vm7112_vm12, %v517_v53, -3.4028235e+38 }
 0x4f3   :  { %637 = vmax.xlane.f32.xlu1 %v636_v57  ;;  %v633_v12 = vsel %vm442_vm7, %v629_v11, -inf }
 0x4f4   :  { %643 = vmax.xlane.f32.xlu0 %v642_v58 }
 0x57d   :  { %v641_v59 = vpop.xlane.xlu0 %640 }
 0x57e   :  { %v647_v55 = vsub.f32 %v631_v49, %v641_v59 }
 0x580   :  { %v653_v3 = vmul.f32 1.442695, %v647_v55  ;;  %v638_v46 = vpop.xlane.xlu1 %637 }
 0x581   :  { %v644_v60 = vpop.xlane.xlu0 %643  ;;  %v646_v55 = vsub.f32 %v7123_v52, %v638_v46 }
 0x582   :  { %v648_v63 = vsub.f32 %v632_v0, %v644_v60 }
 0x583   :  { %v651_v60 = vmul.f32 1.442695, %v646_v55 }
 0x584   :  { %v655_v4 = vmul.f32 1.442695, %v648_v63 }
 0x586   :  { %6501 = vpow2.f32 %v655_v4 }
 0x587   :  { %6503 = vpow2.f32 %v653_v3 }
 0x590   :  { %v6502_v6 = vpop.eup %6501 }
 0x591   :  { %v666_v9 = vsel %vm442_vm7, %v6502_v6, 0.0  ;;  %v6504_v25 = vpop.eup %6503 }
 0x592   :  { %667 = vadd.xlane.f32.xlu0 %v666_v9  ;;  %v663_v10 = vsel %vm442_vm7, %v6504_v25, 0.0 }
 0x596   :  { %664 = vadd.xlane.f32.xlu0 %v663_v10 }
 0x5ac   :  { %6364 = vrot.lane.b32.xlu0 %v7066_v29, %s6732_s3 }
 0x5cb   :  { %634 = vmax.xlane.f32.xlu0 %v633_v12 }
 0x61f   :  { %v668_v13 = vpop.xlane.xlu0 %667 }
 0x620   :  { %6505 = vrcp.f32 %v668_v13 }
 0x623   :  { %v665_v14 = vpop.xlane.xlu0 %664 }
 0x624   :  { %6507 = vrcp.f32 %v665_v14 }
 0x627   :  { %v6365_v18 = vpop.permute.xlu0 %6364 }
 0x628   :  { %v6367_v19 = vunpack.i.h.bf16 %v6365_v18  ;;  %v6366_v21 = vunpack.i.l.bf16 %v6365_v18 }
 0x62a   :  { %v6040_v22 = vpack.c.bf16 %v6367_v19, %v6366_v21  ;;  %v6506_v27 = vpop.eup %6505 }
 0x62b   :  { %v676_v35 = vmul.f32 %v6506_v27, %v6502_v6 }
 0x62c   :  { %6042 = vmatprep.subr.msk.bf16.mxu0 %vm7082_vm8, %v6040_v22 }
 0x62e   :  { %v6508_v30 = vpop.eup %6507 }
 0x62f   :  { %v675_v34 = vmul.f32 %v6508_v30, %v6504_v25 }
 0x631   :  { %5598 = vmatprep.mubr.msk.f32.mxu0 %vm442_vm7, %v675_v34 }
 0x632   :  { %5599 = vmatmul.mubr.msk.f32.vlgmr.msra.gmra.mrb[6].mxu0 %vm442_vm7, %v676_v35 }
 0x633   :  { %6045 = vmatpush3.bf16.xpose.msk.msra.mxu0 %vm7082_vm8, %v6040_v22  ;;  %5605 = vmatprep.mubr.msk.f32.mxu0 %vm442_vm7, %v840_v15 }
 0x634   :  { %6048 = vmatprep.subr.msk.bf16.mxu0 %vm7082_vm8, %v6046_v36 }
 0x63a   :  { %5606 = vmatmul.mubr.msk.f32.vlgmr.msra.gmra.mrb[8].mxu0 %vm442_vm7, %v842_v37 }
 0x63b   :  { %6051 = vmatpush3.bf16.xpose.msk.msra.mxu0 %vm7082_vm8, %v6046_v36  ;;  %5612 = vmatprep.mubr.msk.f32.mxu0 %vm442_vm7, %v931_v38 }
 0x642   :  { %5613 = vmatmul.mubr.msk.f32.vlgmr.msra.gmra.mrb[10].mxu0 %vm442_vm7, %v933_v39 }
 0x658   :  { %v635_v40 = vpop.xlane.xlu0 %634 }
 0x659   :  { %v645_v41 = vsub.f32 %v629_v11, %v635_v40 }
 0x65b   :  { %v649_v42 = vmul.f32 1.442695, %v645_v41 }
 0x65d   :  { %6509 = vpow2.f32 %v649_v42 }
 0x667   :  { %v6510_v43 = vpop.eup %6509 }
 0x668   :  { %v657_v44 = vsel %vm442_vm7, %v6510_v43, 0.0 }
 0x669   :  { %658 = vadd.xlane.f32.xlu1 %v657_v44 }
 0x67a   :  { %6374 = vrot.lane.b32.xlu1 %v7046_v16, %s6731_s26 }
 0x67e   :  { %6384 = vrot.lane.b32.xlu1 %v7066_v29, %s6733_s4 }
 0x6f6   :  { %v659_v47 = vpop.xlane.xlu1 %658 }
 0x6f7   :  { %6511 = vrcp.f32 %v659_v47 }
 0x6f8   :  { %6513 = vpow2.f32 %v651_v60 }
 0x6fa   :  { %v6375_v49 = vpop.permute.xlu1 %6374 }
 0x6fb   :  { %v6377_v50 = vunpack.i.h.bf16 %v6375_v49  ;;  %v6376_v0 = vunpack.i.l.bf16 %v6375_v49 }
 0x6fd   :  { %v7154_v51 = vpack.c.bf16 %v6377_v50, %v6376_v0 }
 0x6fe   :  { %v6385_v44 = vpop.permute.xlu1 %6384 }
 0x6ff   :  { %6053 = vmatprep.subr.bf16.mxu1 %v7154_v51  ;;  %v6387_v47 = vunpack.i.h.bf16 %v6385_v44  ;;  %v6386_v49 = vunpack.i.l.bf16 %v6385_v44 }
 0x701   :  { %v6512_v53 = vpop.eup %6511 }
 0x702   :  { %v673_v57 = vmul.f32 %v6512_v53, %v6510_v43  ;;  %v6514_v15 = vpop.eup %6513 }
 0x703   :  { %v660_v18 = vsel %vm442_vm7, %v6514_v15, 0.0 }
 0x704   :  { %5591 = vmatprep.mubr.msk.f32.mxu1 %vm442_vm7, %v673_v57  ;;  %v6060_v57 = vpack.c.bf16 %v6387_v47, %v6386_v49 }
 0x705   :  { %v7158_v58 = vpop.f32.mrb[6].mxu0 }
 0x706   :  { %v7160_v59 = vpop.f32.mrb[7].mxu0 }
 0x70d   :  { %v5607_v63 = vpop.f32.mrb[8].mxu0 }
 0x70e   :  { %v921_v3 = vpop.f32.mrb[9].mxu0  ;;  %v1022_v9 = vsel %vm7112_vm12, %v5607_v63, -3.4028235e+38 }
 0x70f   :  { %v1021_v4 = vsel %vm7112_vm12, %v921_v3, -3.4028235e+38  ;;  %v1028_v25 = vsel %vm442_vm7, %v1022_v9, -inf }
 0x710   :  { %v1025_v6 = vsel %vm442_vm7, %v1021_v4, -inf }
 0x711   :  { %1026 = vmax.xlane.f32.xlu0 %v1025_v6 }
 0x715   :  { %1029 = vmax.xlane.f32.xlu0 %v1028_v25  ;;  %v5614_v10 = vpop.f32.mrb[10].mxu0 }
 0x716   :  { %v1024_v52 = vsel %vm7108_vm11, %v5614_v10, -3.4028235e+38  ;;  %v1012_v11 = vpop.f32.mrb[11].mxu0 }
 0x717   :  { %v1023_v12 = vsel %vm7108_vm11, %v1012_v11, -3.4028235e+38  ;;  %v1034_v13 = vsel %vm442_vm7, %v1024_v52, -inf }
 0x718   :  { %v1031_v14 = vsel %vm442_vm7, %v1023_v12, -inf }
 0x719   :  { %1035 = vmax.xlane.f32.xlu0 %v1034_v13  ;;  %1032 = vmax.xlane.f32.xlu1 %v1031_v14 }
 0x71d   :  { %661 = vadd.xlane.f32.xlu0 %v660_v18 }
 0x72a   :  { %1247 = vrot.lane.b32.xlu1 %v7040_v8, %s6734_s29 }
 0x733   :  { %6379 = vrot.lane.b32.xlu0 %v7060_v28, %s6731_s26 }
 0x79e   :  { %v1027_v19 = vpop.xlane.xlu0 %1026 }
 0x79f   :  { %v1037_v21 = vsub.f32 %v1021_v4, %v1027_v19 }
 0x7a1   :  { %v1041_v22 = vmul.f32 1.442695, %v1037_v21 }
 0x7a2   :  { %v1030_v23 = vpop.xlane.xlu0 %1029 }
 0x7a3   :  { %6515 = vpow2.f32 %v1041_v22  ;;  %v1038_v27 = vsub.f32 %v1022_v9, %v1030_v23 }
 0x7a5   :  { %v1043_v30 = vmul.f32 1.442695, %v1038_v27 }
 0x7a6   :  { %v1036_v31 = vpop.xlane.xlu0 %1035  ;;  %v1033_v55 = vpop.xlane.xlu1 %1032 }
 0x7a7   :  { %6517 = vpow2.f32 %v1043_v30  ;;  %v1040_v32 = vsub.f32 %v1024_v52, %v1036_v31  ;;  %v1039_v60 = vsub.f32 %v1023_v12, %v1033_v55 }
 0x7a9   :  { %v1047_v34 = vmul.f32 1.442695, %v1040_v32  ;;  %v1045_v63 = vmul.f32 1.442695, %v1039_v60 }
 0x7aa   :  { %v662_v35 = vpop.xlane.xlu0 %661 }
 0x7ab   :  { %6519 = vpow2.f32 %v1047_v34 }
 0x7ac   :  { %6521 = vrcp.f32 %v662_v35 }
 0x7ad   :  { %v6516_v36 = vpop.eup %6515  ;;  %6523 = vpow2.f32 %v1045_v63 }
 0x7ae   :  { %v6380_v37 = vpop.permute.xlu0 %6379  ;;  %v1049_v38 = vsel %vm442_vm7, %v6516_v36, 0.0 }
 0x7af   :  { %v6382_v39 = vunpack.i.h.bf16 %v6380_v37  ;;  %v6381_v40 = vunpack.i.l.bf16 %v6380_v37  ;;  %1050 = vadd.xlane.f32.xlu1 %v1049_v38 }
 0x7b1   :  { %v6518_v41 = vpop.eup %6517  ;;  %v6056_v42 = vpack.c.bf16 %v6382_v39, %v6381_v40 }
 0x7b2   :  { %v1052_v43 = vsel %vm442_vm7, %v6518_v41, 0.0 }
 0x7b3   :  { %1053 = vadd.xlane.f32.xlu0 %v1052_v43  ;;  %6057 = vmatprep.subr.bf16.mxu0 %v6056_v42 }
 0x7b4   :  { %6059 = vmatpush3.bf16.msra.mxu0 %v6056_v42 }
 0x7b5   :  { %v6520_v46 = vpop.eup %6519 }
 0x7b6   :  { %v1058_v50 = vsel %vm442_vm7, %v6520_v46, 0.0  ;;  %v6522_v0 = vpop.eup %6521 }
 0x7b7   :  { %1059 = vadd.xlane.f32.xlu0 %v1058_v50  ;;  %v674_v53 = vmul.f32 %v6522_v0, %v6514_v15  ;;  %v6524_v3 = vpop.eup %6523 }
 0x7b8   :  { %v1055_v4 = vsel %vm442_vm7, %v6524_v3, 0.0 }
 0x7b9   :  { %5592 = vmatmul.mubr.msk.f32.vlgmr.msra.gmra.mrb[10].mxu1 %vm442_vm7, %v674_v53 }
 0x7ba   :  { %6055 = vmatpush3.bf16.msra.mxu1 %v7154_v51  ;;  %v1248_v51 = vpop.permute.xlu1 %1247 }
 0x7bb   :  { %6062 = vmatprep.subr.msk.bf16.mxu1 %vm7082_vm8, %v6060_v57 }
 0x7c0   :  { %1249 = vrot.lane.b32.xlu1 %v7054_v24, %s6734_s29 }
 0x7cd   :  { %6389 = vrot.lane.b32.xlu0 %v7058_v26, %s6733_s4 }
 0x7d1   :  { %1338 = vrot.lane.b32.xlu0 %v7048_v17, %s6734_s29 }
 0x7e4   :  { %1056 = vadd.xlane.f32.xlu1 %v1055_v4 }
 0x7f5   :  { %1340 = vrot.lane.b32.xlu1 %v7052_v20, %s6734_s29 }
 0x83c   :  { %v1051_v6 = vpop.xlane.xlu1 %1050 }
 0x83d   :  { %6525 = vrcp.f32 %v1051_v6 }
 0x840   :  { %v1054_v9 = vpop.xlane.xlu0 %1053  ;;  %v1250_v19 = vpop.permute.xlu1 %1249 }
 0x841   :  { %6527 = vrcp.f32 %v1054_v9 }
 0x844   :  { %v1060_v25 = vpop.xlane.xlu0 %1059 }
 0x845   :  { %6529 = vrcp.f32 %v1060_v25 }
 0x847   :  { %v6526_v10 = vpop.eup %6525 }
 0x848   :  { %v6390_v52 = vpop.permute.xlu0 %6389  ;;  %v1065_v11 = vmul.f32 %v6526_v10, %v6516_v36 }
 0x849   :  { %v6392_v12 = vunpack.i.h.bf16 %v6390_v52  ;;  %v6391_v13 = vunpack.i.l.bf16 %v6390_v52 }
 0x84a   :  { %5619 = vmatprep.mubr.msk.f32.mxu1 %vm442_vm7, %v1065_v11 }
 0x84b   :  { %v6528_v14 = vpop.eup %6527  ;;  %v6066_v15 = vpack.c.bf16 %v6392_v12, %v6391_v13 }
 0x84c   :  { %v1066_v18 = vmul.f32 %v6528_v14, %v6518_v41  ;;  %v1339_v31 = vpop.permute.xlu0 %1338 }
 0x84d   :  { %6068 = vmatprep.subr.msk.bf16.mxu0 %vm7082_vm8, %v6066_v15 }
 0x84e   :  { %5620 = vmatmul.mubr.msk.f32.vlgmr.msra.gmra.mrb[12].mxu1 %vm442_vm7, %v1066_v18 }
 0x84f   :  { %6065 = vmatpush3.bf16.xpose.msk.msra.mxu1 %vm7082_vm8, %v6060_v57  ;;  %5633 = vmatprep.mubr.msk.f32.mxu1 %vm442_vm7, %v1248_v51  ;;  %v6530_v22 = vpop.eup %6529 }
 0x850   :  { %v1068_v30 = vmul.f32 %v6530_v22, %v6520_v46 }
 0x856   :  { %5634 = vmatmul.mubr.msk.f32.vlgmr.msra.gmra.mrb[14].mxu1 %vm442_vm7, %v1250_v19 }
 0x871   :  { %v1057_v21 = vpop.xlane.xlu1 %1056 }
 0x872   :  { %6531 = vrcp.f32 %v1057_v21 }
 0x875   :  { %v1341_v32 = vpop.permute.xlu1 %1340 }
 0x87c   :  { %v6532_v23 = vpop.eup %6531 }
 0x87d   :  { %v1067_v27 = vmul.f32 %v6532_v23, %v6524_v3 }
 0x87f   :  { %5626 = vmatprep.mubr.msk.f32.mxu0 %vm442_vm7, %v1067_v27 }
 0x880   :  { %5627 = vmatmul.mubr.msk.f32.vlgmr.msra.gmra.mrb[12].mxu0 %vm442_vm7, %v1068_v30 }
 0x881   :  { %6071 = vmatpush3.bf16.xpose.msk.msra.mxu0 %vm7082_vm8, %v6066_v15  ;;  %5640 = vmatprep.mubr.msk.f32.mxu0 %vm442_vm7, %v1339_v31 }
 0x888   :  { %5641 = vmatmul.mubr.msk.f32.vlgmr.msra.gmra.mrb[14].mxu0 %vm442_vm7, %v1341_v32 }
 0x88c   :  { %v7210_v34 = vpop.f32.mrb[10].mxu1 }
 0x88d   :  { %v7212_v35 = vpop.f32.mrb[11].mxu1 }
 0x921   :  { %v7214_v36 = vpop.f32.mrb[12].mxu1 }
 0x922   :  { %v7216_v37 = vpop.f32.mrb[13].mxu1 }
 0x929   :  { %v5635_v38 = vpop.f32.mrb[14].mxu1 }
 0x92a   :  { %v1430_v39 = vsel %vm7112_vm12, %v5635_v38, -3.4028235e+38  ;;  %v1329_v40 = vpop.f32.mrb[15].mxu1 }
 0x92b   :  { %v1429_v41 = vsel %vm7112_vm12, %v1329_v40, -3.4028235e+38  ;;  %v1436_v42 = vsel %vm442_vm7, %v1430_v39, -inf }
 0x92c   :  { %1437 = vmax.xlane.f32.xlu1 %v1436_v42  ;;  %v1433_v43 = vsel %vm442_vm7, %v1429_v41, -inf }
 0x92d   :  { %1434 = vmax.xlane.f32.xlu0 %v1433_v43 }
 0x93d   :  { %6394 = vrot.lane.b32.xlu1 %v7046_v16, %s6734_s29 }
 0x941   :  { %6404 = vrot.lane.b32.xlu1 %v7066_v29, %s6735_s30 }
 0x945   :  { %1651 = vrot.lane.b32.xlu1 %v7040_v8, %s6736_s0 }
 0x953   :  { %v7230_v44 = vpop.f32.mrb[12].mxu0 }
 0x954   :  { %v7232_v46 = vpop.f32.mrb[13].mxu0 }
 0x95b   :  { %v5642_v47 = vpop.f32.mrb[14].mxu0 }
 0x95c   :  { %v1420_v49 = vpop.f32.mrb[15].mxu0  ;;  %v1432_v53 = vsel %vm7108_vm11, %v5642_v47, -3.4028235e+38 }
 0x95d   :  { %v1431_v50 = vsel %vm7108_vm11, %v1420_v49, -3.4028235e+38  ;;  %v1442_v29 = vsel %vm442_vm7, %v1432_v53, -inf }
 0x95e   :  { %v1439_v0 = vsel %vm442_vm7, %v1431_v50, -inf }
 0x95f   :  { %1440 = vmax.xlane.f32.xlu0 %v1439_v0 }
 0x963   :  { %1443 = vmax.xlane.f32.xlu0 %v1442_v29 }
 0x979   :  { %6399 = vrot.lane.b32.xlu0 %v7060_v28, %s6734_s29 }
 0x9b9   :  { %v1438_v8 = vpop.xlane.xlu1 %1437 }
 0x9ba   :  { %v1446_v57 = vsub.f32 %v1430_v39, %v1438_v8  ;;  %v1435_v55 = vpop.xlane.xlu0 %1434 }
 0x9bb   :  { %v1445_v60 = vsub.f32 %v1429_v41, %v1435_v55 }
 0x9bc   :  { %v1451_v63 = vmul.f32 1.442695, %v1446_v57 }
 0x9bd   :  { %v1449_v3 = vmul.f32 1.442695, %v1445_v60  ;;  %v6395_v4 = vpop.permute.xlu1 %6394 }
 0x9be   :  { %6533 = vpow2.f32 %v1451_v63  ;;  %v6397_v51 = vunpack.i.h.bf16 %v6395_v4  ;;  %v6396_v6 = vunpack.i.l.bf16 %v6395_v4 }
 0x9bf   :  { %6535 = vpow2.f32 %v1449_v3 }
 0x9c0   :  { %v6072_v9 = vpack.c.bf16 %v6397_v51, %v6396_v6 }
 0x9c1   :  { %v6405_v25 = vpop.permute.xlu1 %6404 }
 0x9c2   :  { %v6407_v10 = vunpack.i.h.bf16 %v6405_v25  ;;  %v6406_v52 = vunpack.i.l.bf16 %v6405_v25  ;;  %6073 = vmatprep.subr.bf16.mxu1 %v6072_v9 }
 0x9c3   :  { %6075 = vmatpush3.bf16.msra.mxu1 %v6072_v9 }
 0x9c4   :  { %v6080_v11 = vpack.c.bf16 %v6407_v10, %v6406_v52 }
 0x9c5   :  { %v1652_v42 = vpop.permute.xlu1 %1651 }
 0x9c6   :  { %6082 = vmatprep.subr.msk.bf16.mxu1 %vm7082_vm8, %v6080_v11 }
 0x9c8   :  { %v6534_v12 = vpop.eup %6533 }
 0x9c9   :  { %v6536_v13 = vpop.eup %6535  ;;  %v1460_v14 = vsel %vm442_vm7, %v6534_v12, 0.0 }
 0x9ca   :  { %1461 = vadd.xlane.f32.xlu0 %v1460_v14  ;;  %v1457_v15 = vsel %vm442_vm7, %v6536_v13, 0.0 }
 0x9cb   :  { %1458 = vadd.xlane.f32.xlu1 %v1457_v15 }
 0x9dc   :  { %1653 = vrot.lane.b32.xlu1 %v7054_v24, %s6736_s0 }
 0x9ec   :  { %v1441_v18 = vpop.xlane.xlu0 %1440 }
 0x9ed   :  { %v1447_v19 = vsub.f32 %v1431_v50, %v1441_v18 }
 0x9ef   :  { %v1453_v21 = vmul.f32 1.442695, %v1447_v19 }
 0x9f0   :  { %v1444_v22 = vpop.xlane.xlu0 %1443 }
 0x9f1   :  { %v1448_v23 = vsub.f32 %v1432_v53, %v1444_v22  ;;  %6537 = vpow2.f32 %v1453_v21 }
 0x9f3   :  { %v1455_v27 = vmul.f32 1.442695, %v1448_v23 }
 0x9f4   :  { %v6400_v30 = vpop.permute.xlu0 %6399 }
 0x9f5   :  { %6539 = vpow2.f32 %v1455_v27  ;;  %v6402_v31 = vunpack.i.h.bf16 %v6400_v30  ;;  %v6401_v32 = vunpack.i.l.bf16 %v6400_v30 }
 0x9f7   :  { %v6076_v38 = vpack.c.bf16 %v6402_v31, %v6401_v32 }
 0x9f9   :  { %6077 = vmatprep.subr.bf16.mxu0 %v6076_v38 }
 0x9fa   :  { %6079 = vmatpush3.bf16.msra.mxu0 %v6076_v38 }
 0x9fb   :  { %v6538_v39 = vpop.eup %6537 }
 0x9fc   :  { %v1463_v41 = vsel %vm442_vm7, %v6538_v39, 0.0 }
 0x9ff   :  { %v6540_v40 = vpop.eup %6539 }
 0xa00   :  { %1464 = vadd.xlane.f32.xlu1 %v1463_v41  ;;  %v1466_v24 = vsel %vm442_vm7, %v6540_v40, 0.0 }
 0xa01   :  { %1467 = vadd.xlane.f32.xlu0 %v1466_v24 }
 0xa11   :  { %1744 = vrot.lane.b32.xlu1 %v7052_v20, %s6736_s0 }
 0xa17   :  { %6409 = vrot.lane.b32.xlu0 %v7058_v26, %s6735_s30 }
 0xa1b   :  { %1742 = vrot.lane.b32.xlu0 %v7048_v17, %s6736_s0 }
 0xa57   :  { %v1462_v43 = vpop.xlane.xlu0 %1461 }
 0xa58   :  { %6541 = vrcp.f32 %v1462_v43  ;;  %v1459_v47 = vpop.xlane.xlu1 %1458 }
 0xa59   :  { %6543 = vrcp.f32 %v1459_v47 }
 0xa5c   :  { %v1654_v20 = vpop.permute.xlu1 %1653 }
 0xa62   :  { %v6542_v49 = vpop.eup %6541 }
 0xa63   :  { %v6544_v50 = vpop.eup %6543  ;;  %v1474_v53 = vmul.f32 %v6542_v49, %v6534_v12 }
 0xa64   :  { %v1473_v0 = vmul.f32 %v6544_v50, %v6536_v13 }
 0xa66   :  { %5647 = vmatprep.mubr.msk.f32.mxu1 %vm442_vm7, %v1473_v0 }
 0xa67   :  { %5648 = vmatmul.mubr.msk.f32.vlgmr.msra.gmra.mrb[16].mxu1 %vm442_vm7, %v1474_v53 }
 0xa68   :  { %6085 = vmatpush3.bf16.xpose.msk.msra.mxu1 %vm7082_vm8, %v6080_v11  ;;  %5661 = vmatprep.mubr.msk.f32.mxu1 %vm442_vm7, %v1652_v42 }
 0xa6f   :  { %5662 = vmatmul.mubr.msk.f32.vlgmr.msra.gmra.mrb[18].mxu1 %vm442_vm7, %v1654_v20 }
 0xa8d   :  { %v1465_v17 = vpop.xlane.xlu1 %1464 }
 0xa8e   :  { %6545 = vrcp.f32 %v1465_v17  ;;  %v1468_v26 = vpop.xlane.xlu0 %1467 }
 0xa8f   :  { %6547 = vrcp.f32 %v1468_v26 }
 0xa91   :  { %v1745_v6 = vpop.permute.xlu1 %1744 }
 0xa92   :  { %v6410_v29 = vpop.permute.xlu0 %6409 }
 0xa93   :  { %v6412_v8 = vunpack.i.h.bf16 %v6410_v29  ;;  %v6411_v57 = vunpack.i.l.bf16 %v6410_v29 }
 0xa95   :  { %v6086_v55 = vpack.c.bf16 %v6412_v8, %v6411_v57 }
 0xa96   :  { %v1743_v51 = vpop.permute.xlu0 %1742 }
 0xa97   :  { %6088 = vmatprep.subr.msk.bf16.mxu0 %vm7082_vm8, %v6086_v55 }
 0xa98   :  { %v6546_v60 = vpop.eup %6545 }
 0xa99   :  { %v6548_v63 = vpop.eup %6547  ;;  %v1475_v3 = vmul.f32 %v6546_v60, %v6538_v39 }
 0xa9a   :  { %v1476_v4 = vmul.f32 %v6548_v63, %v6540_v40 }
 0xa9b   :  { %5654 = vmatprep.mubr.msk.f32.mxu0 %vm442_vm7, %v1475_v3 }
 0xa9c   :  { %5655 = vmatmul.mubr.msk.f32.vlgmr.msra.gmra.mrb[16].mxu0 %vm442_vm7, %v1476_v4 }
 0xa9d   :  { %6091 = vmatpush3.bf16.xpose.msk.msra.mxu0 %vm7082_vm8, %v6086_v55  ;;  %5668 = vmatprep.mubr.msk.f32.mxu0 %vm442_vm7, %v1743_v51 }
 0xaa4   :  { %5669 = vmatmul.mubr.msk.f32.vlgmr.msra.gmra.mrb[18].mxu0 %vm442_vm7, %v1745_v6 }
 0xb3a   :  { %v5649_v9 = vpop.f32.mrb[16].mxu1 }
 0xb3b   :  { %v1555_v25 = vpop.f32.mrb[17].mxu1 }
 0xb42   :  { %v5663_v10 = vpop.f32.mrb[18].mxu1 }
 0xb43   :  { %v1834_v52 = vsel %vm7112_vm12, %v5663_v10, -3.4028235e+38  ;;  %v1733_v11 = vpop.f32.mrb[19].mxu1 }
 0xb44   :  { %v1833_v12 = vsel %vm7112_vm12, %v1733_v11, -3.4028235e+38  ;;  %v1840_v13 = vsel %vm442_vm7, %v1834_v52, -inf }
 0xb45   :  { %1841 = vmax.xlane.f32.xlu1 %v1840_v13  ;;  %v1837_v14 = vsel %vm442_vm7, %v1833_v12, -inf }
 0xb46   :  { %1838 = vmax.xlane.f32.xlu0 %v1837_v14 }
 0xb6f   :  { %v7276_v15 = vpop.f32.mrb[16].mxu0 }
 0xb70   :  { %v7278_v18 = vpop.f32.mrb[17].mxu0 }
 0xb77   :  { %v5670_v19 = vpop.f32.mrb[18].mxu0 }
 0xb78   :  { %v1824_v21 = vpop.f32.mrb[19].mxu0  ;;  %v1836_v27 = vsel %vm7108_vm11, %v5670_v19, -3.4028235e+38 }
 0xb79   :  { %v1835_v22 = vsel %vm7108_vm11, %v1824_v21, -3.4028235e+38  ;;  %v1846_v30 = vsel %vm442_vm7, %v1836_v27, -inf  ;;  %v2117_v21 = vld [vmem:[%s8047_s8] sm:$0xff] }
 0xb7a   :  { %v1843_v23 = vsel %vm442_vm7, %v1835_v22, -inf }
 0xb7b   :  { %1844 = vmax.xlane.f32.xlu0 %v1843_v23  ;;  %v2119_v23 = vld [vmem:[%s8047_s8 + $0x10] sm:$0xff] }
 0xb7f   :  { %1847 = vmax.xlane.f32.xlu0 %v1846_v30  ;;  %v2120_v30 = vld [vmem:[%s8047_s8 + $0x18] sm:$0xff] }
 0xbd2   :  { %v1842_v31 = vpop.xlane.xlu1 %1841 }
 0xbd3   :  { %v1850_v32 = vsub.f32 %v1834_v52, %v1842_v31  ;;  %v1839_v38 = vpop.xlane.xlu0 %1838  ;;  %v6104_v31 = vpack.c.bf16 %v2120_v30, %v2119_v23 }
 0xbd4   :  { %v1849_v39 = vsub.f32 %v1833_v12, %v1839_v38  ;;  %v2122_v38 = vld [vmem:[%s8047_s8 + $0x28] sm:$0xff] }
 0xbd5   :  { %v1855_v40 = vmul.f32 1.442695, %v1850_v32  ;;  %v2121_v32 = vld [vmem:[%s8047_s8 + $0x20] sm:$0xff] }
 0xbd6   :  { %v1853_v41 = vmul.f32 1.442695, %v1849_v39  ;;  %v6108_v39 = vpack.c.bf16 %v2122_v38, %v2121_v32 }
 0xbd7   :  { %6549 = vpow2.f32 %v1855_v40  ;;  %v2123_v40 = vld [vmem:[%s8047_s8 + $0x30] sm:$0xff] }
 0xbd8   :  { %6551 = vpow2.f32 %v1853_v41  ;;  %v2124_v41 = vld [vmem:[%s8047_s8 + $0x38] sm:$0xff] }
 0xbe1   :  { %v6550_v24 = vpop.eup %6549 }
 0xbe2   :  { %v6552_v42 = vpop.eup %6551  ;;  %v1864_v43 = vsel %vm442_vm7, %v6550_v24, 0.0 }
 0xbe3   :  { %1865 = vadd.xlane.f32.xlu0 %v1864_v43  ;;  %v1861_v47 = vsel %vm442_vm7, %v6552_v42, 0.0 }
 0xbe4   :  { %1862 = vadd.xlane.f32.xlu1 %v1861_v47 }
 0xc08   :  { %v1845_v49 = vpop.xlane.xlu0 %1844 }
 0xc09   :  { %v1851_v50 = vsub.f32 %v1835_v22, %v1845_v49  ;;  %v2118_v22 = vld [vmem:[%s8047_s8 + $0x8] sm:$0xff] }
 0xc0b   :  { %v1857_v0 = vmul.f32 1.442695, %v1851_v50 }
 0xc0c   :  { %v1848_v53 = vpop.xlane.xlu0 %1847 }
 0xc0d   :  { %6553 = vpow2.f32 %v1857_v0  ;;  %v1852_v20 = vsub.f32 %v1836_v27, %v1848_v53  ;;  %v6100_v27 = vpack.c.bf16 %v2118_v22, %v2117_v21 }
 0xc0f   :  { %v1859_v17 = vmul.f32 1.442695, %v1852_v20 }
 0xc11   :  { %6555 = vpow2.f32 %v1859_v17 }
 0xc17   :  { %v6554_v26 = vpop.eup %6553 }
 0xc18   :  { %v1867_v29 = vsel %vm442_vm7, %v6554_v26, 0.0 }
 0xc19   :  { %1868 = vadd.xlane.f32.xlu1 %v1867_v29 }
 0xc1b   :  { %v6556_v8 = vpop.eup %6555 }
 0xc1c   :  { %v1870_v57 = vsel %vm442_vm7, %v6556_v8, 0.0 }
 0xc1d   :  { %1871 = vadd.xlane.f32.xlu0 %v1870_v57 }
 0xc2a   :  { %6414 = vrot.lane.b32.xlu1 %v7046_v16, %s6736_s0 }
 0xc2e   :  { %2059 = vrot.lane.b32.xlu1 %v7216_v37, %s6735_s30 }
 0xc32   :  { %2061 = vrot.lane.b32.xlu1 %v7214_v36, %s6735_s30 }
 0xc33   :  { %6419 = vrot.lane.b32.xlu0 %v7060_v28, %s6736_s0 }
 0xc36   :  { %2077 = vrot.lane.b32.xlu1 %v5649_v9, %s6733_s4 }
 0xc37   :  { %2075 = vrot.lane.b32.xlu0 %v1555_v25, %s6733_s4 }
 0xc70   :  { %v1866_v16 = vpop.xlane.xlu0 %1865 }
 0xc71   :  { %v1863_v55 = vpop.xlane.xlu1 %1862 }
 0xc72   :  { %6557 = vrcp.f32 %v1863_v55 }
 0xc73   :  { %6559 = vrcp.f32 %v1866_v16 }
 0xc7c   :  { %v6558_v60 = vpop.eup %6557 }
 0xc7d   :  { %v1877_v63 = vmul.f32 %v6558_v60, %v6552_v42  ;;  %v6560_v6 = vpop.eup %6559 }
 0xc7e   :  { %v1878_v11 = vmul.f32 %v6560_v6, %v6550_v24  ;;  %v6112_v24 = vpack.c.bf16 %v2124_v41, %v2123_v40 }
 0xc7f   :  { %5675 = vmatprep.mubr.msk.f32.mxu1 %vm442_vm7, %v1877_v63 }
 0xca6   :  { %v1869_v3 = vpop.xlane.xlu1 %1868 }
 0xca7   :  { %6561 = vrcp.f32 %v1869_v3 }
 0xcaa   :  { %v6415_v37 = vpop.permute.xlu1 %6414  ;;  %v1872_v4 = vpop.xlane.xlu0 %1871 }
 0xcab   :  { %v6417_v36 = vunpack.i.h.bf16 %v6415_v37  ;;  %v6416_v51 = vunpack.i.l.bf16 %v6415_v37  ;;  %6563 = vrcp.f32 %v1872_v4 }
 0xcad   :  { %v6092_v28 = vpack.c.bf16 %v6417_v36, %v6416_v51 }
 0xcae   :  { %v6420_v9 = vpop.permute.xlu0 %6419  ;;  %v2060_v50 = vpop.permute.xlu1 %2059 }
 0xcaf   :  { %v6422_v10 = vunpack.i.h.bf16 %v6420_v9  ;;  %v6421_v25 = vunpack.i.l.bf16 %v6420_v9  ;;  %6093 = vmatprep.subr.bf16.mxu1 %v6092_v28 }
 0xcb0   :  { %6095 = vmatpush3.bf16.msra.mxu1 %v6092_v28 }
 0xcb1   :  { %v6562_v52 = vpop.eup %6561  ;;  %v6096_v12 = vpack.c.bf16 %v6422_v10, %v6421_v25  ;;  %6101 = vmatprep.subr.bf16.mxu1 %v6100_v27 }
 0xcb2   :  { %v1879_v13 = vmul.f32 %v6562_v52, %v6554_v26  ;;  %v2062_v0 = vpop.permute.xlu1 %2061  ;;  %v2076_v20 = vpop.permute.xlu0 %2075 }
 0xcb3   :  { %5676 = vmatmul.mubr.msk.f32.vlgmr.msra.gmra.mrb[20].mxu1 %vm442_vm7, %v1878_v11  ;;  %6097 = vmatprep.subr.bf16.mxu0 %v6096_v12 }
 0xcb4   :  { %6099 = vmatpush3.bf16.msra.mxu0 %v6096_v12  ;;  %5682 = vmatprep.mubr.msk.f32.mxu0 %vm442_vm7, %v1879_v13 }
 0xcb5   :  { %v6564_v14 = vpop.eup %6563  ;;  %6103 = vmatpush3.bf16.msra.mxu1 %v6100_v27 }
 0xcb6   :  { %v1880_v19 = vmul.f32 %v6564_v14, %v6556_v8  ;;  %6105 = vmatprep.subr.bf16.mxu1 %v6104_v31  ;;  %v2078_v53 = vpop.permute.xlu1 %2077 }
 0xcb8   :  { %5683 = vmatmul.mubr.msk.f32.vlgmr.msra.gmra.mrb[20].mxu0 %vm442_vm7, %v1880_v19 }
 0xcb9   :  { %6107 = vmatpush3.bf16.msra.mxu1 %v6104_v31 }
 0xcba   :  { %6109 = vmatprep.subr.bf16.mxu1 %v6108_v39 }
 0xcbd   :  { %6111 = vmatpush3.bf16.msra.mxu1 %v6108_v39 }
 0xcbe   :  { %6113 = vmatprep.subr.bf16.mxu1 %v6112_v24 }
 0xcc1   :  { %6115 = vmatpush3.bf16.msra.mxu1 %v6112_v24 }
 0xd86   :  { %v5677_v42 = vpop.f32.mrb[20].mxu1 }
 0xd87   :  { %2093 = vrot.lane.b32.xlu1 %v5677_v42, %s6732_s3  ;;  %v1959_v43 = vpop.f32.mrb[21].mxu1 }
 0xd88   :  { %2091 = vrot.lane.b32.xlu0 %v1959_v43, %s6732_s3 }
 0xd8b   :  { %2065 = vrot.lane.b32.xlu1 %v7230_v44, %s6735_s30  ;;  %v5684_v47 = vpop.f32.mrb[20].mxu0  ;;  %v2103_v44 = vsel %vm442_vm7, %v7212_v35, %v2060_v50 }
 0xd8c   :  { %2063 = vrot.lane.b32.xlu0 %v7232_v46, %s6735_s30  ;;  %v2046_v49 = vpop.f32.mrb[21].mxu0  ;;  %v2108_v17 = vsel %vm2107_vm13, %v2103_v44, %v2076_v20  ;;  %v2307_v44 = vld [vmem:[#allocation2] sm:$0xff] }
 0xd8f   :  { %2081 = vrot.lane.b32.xlu1 %v7276_v15, %s6733_s4  ;;  %v2104_v15 = vsel %vm442_vm7, %v7210_v34, %v2062_v0 }
 0xd90   :  { %2079 = vrot.lane.b32.xlu0 %v7278_v18, %s6733_s4  ;;  %v2109_v26 = vsel %vm2107_vm13, %v2104_v15, %v2078_v53 }
 0xd93   :  { %2097 = vrot.lane.b32.xlu1 %v5684_v47, %s6732_s3 }
 0xd94   :  { %2095 = vrot.lane.b32.xlu0 %v2046_v49, %s6732_s3 }
 0xdf9   :  { %v2094_v46 = vpop.permute.xlu1 %2093 }
 0xdfa   :  { %v2092_v18 = vpop.permute.xlu0 %2091  ;;  %v2114_v8 = vsel %vm2112_vm14, %v2109_v26, %v2094_v46  ;;  %v2308_v46 = vld [vmem:[#allocation2 + $0x8] sm:$0xff] }
 0xdfb   :  { %v2113_v29 = vsel %vm2112_vm14, %v2108_v17, %v2092_v18  ;;  %v6116_v15 = vpack.c.bf16 %v2308_v46, %v2307_v44  ;;  %v2309_v17 = vld [vmem:[#allocation2 + $0x10] sm:$0xff]  ;;  %v2310_v18 = vld [vmem:[#allocation2 + $0x18] sm:$0xff] }
 0xdfc   :  { %5701 = vmatprep.mubr.msk.f32.mxu1 %vm231_vm6, %v2113_v29  ;;  %v6120_v26 = vpack.c.bf16 %v2310_v18, %v2309_v17  ;;  %v2311_v29 = vld [vmem:[#allocation2 + $0x20] sm:$0xff]  ;;  %v2465_v44 = vld [vmem:[%s8053_s14 + $0x50] sm:$0xff]  ;;  %v2466_v46 = vld [vmem:[%s8053_s14 + $0x58] sm:$0xff] }
 0xdfd   :  { %v2066_v57 = vpop.permute.xlu1 %2065  ;;  %5702 = vmatmul.mubr.msk.f32.vlgmr.msra.gmra.mrb[22].mxu1 %vm231_vm6, %v2114_v8  ;;  %6117 = vmatprep.subr.bf16.mxu0 %v6116_v15  ;;  %v2312_v8 = vld [vmem:[#allocation2 + $0x28] sm:$0xff]  ;;  %v2467_v17 = vld [vmem:[%s8053_s14 + $0x60] sm:$0xff] }
 0xdfe   :  { %v2064_v55 = vpop.permute.xlu0 %2063  ;;  %v2106_v16 = vsel %vm442_vm7, %v7158_v58, %v2066_v57  ;;  %6119 = vmatpush3.bf16.msra.mxu0 %v6116_v15  ;;  %v6124_v57 = vpack.c.bf16 %v2312_v8, %v2311_v29  ;;  %v6152_v15 = vpack.c.bf16 %v2466_v46, %v2465_v44  ;;  %v2468_v18 = vld [vmem:[%s8053_s14 + $0x68] sm:$0xff]  ;;  %v2469_v29 = vld [vmem:[%s8053_s14 + $0x70] sm:$0xff]  ;;  %v2470_v8 = vld [vmem:[%s8053_s14 + $0x78] sm:$0xff] }
 0xdff   :  { %v2105_v34 = vsel %vm442_vm7, %v7160_v59, %v2064_v55  ;;  %v5167_v59 = vld [vmem:[%s8048_s9] ss:$0 sm:$0xff]  ;;  %6121 = vmatprep.subr.bf16.mxu0 %v6120_v26  ;;  %v2313_v55 = vld [vmem:[#allocation2 + $0x30] sm:$0xff] }
 0xe00   :  { %v5179_v46 = vld [vmem:[%s8054_s15] ss:$0 sm:$0xff] }
 0xe01   :  { %v2082_v35 = vpop.permute.xlu1 %2081 }
 0xe02   :  { %v2080_v60 = vpop.permute.xlu0 %2079  ;;  %v2111_v4 = vsel %vm2107_vm13, %v2106_v16, %v2082_v35  ;;  %6123 = vmatpush3.bf16.msra.mxu0 %v6120_v26  ;;  %v2314_v35 = vld [vmem:[#allocation2 + $0x38] sm:$0xff]  ;;  %v6156_v26 = vpack.c.bf16 %v2468_v18, %v2467_v17 }
 0xe03   :  { %v2110_v3 = vsel %vm2107_vm13, %v2105_v34, %v2080_v60  ;;  %6125 = vmatprep.subr.bf16.mxu0 %v6124_v57  ;;  %v6128_v60 = vpack.c.bf16 %v2314_v35, %v2313_v55  ;;  %v2455_v34 = vld [vmem:[%s8053_s14] sm:$0xff] }
 0xe04   :  { %v5174_v55 = vld [vmem:[%s8052_s13] ss:$0 sm:$0xff] }
 0xe05   :  { %v2098_v63 = vpop.permute.xlu1 %2097 }
 0xe06   :  { %v2096_v37 = vpop.permute.xlu0 %2095  ;;  %v2116_v51 = vsel %vm2112_vm14, %v2111_v4, %v2098_v63  ;;  %6127 = vmatpush3.bf16.msra.mxu0 %v6124_v57  ;;  %v2456_v63 = vld [vmem:[%s8053_s14 + $0x8] sm:$0xff]  ;;  %v6160_v57 = vpack.c.bf16 %v2470_v8, %v2469_v29 }
 0xe07   :  { %v2115_v36 = vsel %vm2112_vm14, %v2110_v3, %v2096_v37  ;;  %6129 = vmatprep.subr.bf16.mxu0 %v6128_v60  ;;  %v6132_v16 = vpack.c.bf16 %v2456_v63, %v2455_v34 }
 0xe08   :  { %5704 = vmatprep.mubr.msk.f32.mxu1 %vm231_vm6, %v2115_v36 }
 0xe09   :  { %5705 = vmatmul.mubr.msk.f32.gmra.mrb[24].mxu1 %vm231_vm6, %v2116_v51  ;;  %6133 = vmatprep.subr.bf16.mxu1 %v6132_v16 }
 0xe0a   :  { %6131 = vmatpush3.bf16.msra.mxu0 %v6128_v60  ;;  %6135 = vmatpush3.bf16.msra.mxu1 %v6132_v16 }
 0xed0   :  { %v5703_v28 = vpop.f32.mrb[22].mxu1 }
 0xed1   :  { %v2216_v6 = vadd.f32 %v5703_v28, %v5167_v59  ;;  %v2210_v58 = vpop.f32.mrb[23].mxu1 }
 0xed2   :  { %v2211_v9 = vadd.f32 %v5167_v59, %v2210_v58 }
 0xed3   :  { %v2230_v10 = vadd.f32 %v2216_v6, %v7014_v56 }
 0xed4   :  { %v2229_v25 = vadd.f32 %v2211_v9, %v7008_v54  ;;  %v5172_v9 = vld [vmem:[%s8049_s10] ss:$0 sm:$0xff] }
 0xed5   :  { %v2238_v52 = vsel %vm231_vm6, %v2230_v10, 0.0 }
 0xed6   :  { %2239 = vadd.xlane.f32.xlu1 %v2238_v52  ;;  %v2235_v11 = vsel %vm231_vm6, %v2229_v25, 0.0 }
 0xed7   :  { %2236 = vadd.xlane.f32.xlu0 %v2235_v11 }
 0xedc   :  { %v5706_v12 = vpop.f32.mrb[24].mxu1 }
 0xedd   :  { %v2220_v13 = vpop.f32.mrb[25].mxu1  ;;  %v2226_v14 = vadd.f32 %v5706_v12, %v5167_v59 }
 0xede   :  { %v2221_v19 = vadd.f32 %v5167_v59, %v2220_v13 }
 0xedf   :  { %v2232_v23 = vadd.f32 %v2226_v14, %v7025_v62  ;;  %v5173_v14 = vld [vmem:[%s8050_s11] ss:$0 sm:$0xff] }
 0xee0   :  { %v2231_v21 = vadd.f32 %v2221_v19, %v7020_v61 }
 0xee1   :  { %v2244_v56 = vsel %vm231_vm6, %v2232_v23, 0.0 }
 0xee2   :  { %v2241_v22 = vsel %vm231_vm6, %v2231_v21, 0.0 }
 0xee3   :  { %2242 = vadd.xlane.f32.xlu0 %v2241_v22 }
 0xee7   :  { %2245 = vadd.xlane.f32.xlu0 %v2244_v56 }
 0xf63   :  { %v2240_v54 = vpop.xlane.xlu1 %2239 }
 0xf64   :  { %v2248_v27 = vmul.f32 0.015625, %v2240_v54  ;;  %v2237_v30 = vpop.xlane.xlu0 %2236 }
 0xf65   :  { %v2247_v31 = vmul.f32 0.015625, %v2237_v30 }
 0xf66   :  { %v2252_v32 = vsub.f32 %v2230_v10, %v2248_v27 }
 0xf67   :  { %v2251_v38 = vsub.f32 %v2229_v25, %v2247_v31 }
 0xf68   :  { %v2256_v39 = vmul.f32 %v2252_v32, %v2252_v32 }
 0xf69   :  { %v2255_v40 = vmul.f32 %v2251_v38, %v2251_v38 }
 0xf6a   :  { %v2262_v41 = vsel %vm231_vm6, %v2256_v39, 0.0 }
 0xf6b   :  { %2263 = vadd.xlane.f32.xlu0 %v2262_v41  ;;  %v2259_v61 = vsel %vm231_vm6, %v2255_v40, 0.0  ;;  %v2457_v41 = vld [vmem:[%s8053_s14 + $0x10] sm:$0xff] }
 0xf6c   :  { %2260 = vadd.xlane.f32.xlu1 %v2259_v61  ;;  %v2458_v61 = vld [vmem:[%s8053_s14 + $0x18] sm:$0xff] }
 0xf70   :  { %v2243_v24 = vpop.xlane.xlu0 %2242 }
 0xf71   :  { %v2249_v62 = vmul.f32 0.015625, %v2243_v24  ;;  %v6136_v24 = vpack.c.bf16 %v2458_v61, %v2457_v41 }
 0xf73   :  { %v7373_v42 = vsub.f32 %v2231_v21, %v2249_v62  ;;  %6137 = vmatprep.subr.bf16.mxu1 %v6136_v24  ;;  %v2459_v62 = vld [vmem:[%s8053_s14 + $0x20] sm:$0xff] }
 0xf74   :  { %v2246_v43 = vpop.xlane.xlu0 %2245  ;;  %6139 = vmatpush3.bf16.msra.mxu1 %v6136_v24 }
 0xf75   :  { %v2250_v47 = vmul.f32 0.015625, %v2246_v43  ;;  %v2257_v49 = vmul.f32 %v7373_v42, %v7373_v42 }
 0xf77   :  { %v7377_v50 = vsub.f32 %v2232_v23, %v2250_v47  ;;  %v2265_v0 = vsel %vm231_vm6, %v2257_v49, 0.0  ;;  %v2461_v47 = vld [vmem:[%s8053_s14 + $0x30] sm:$0xff]  ;;  %v2462_v49 = vld [vmem:[%s8053_s14 + $0x38] sm:$0xff] }
 0xf78   :  { %2266 = vadd.xlane.f32.xlu1 %v2265_v0  ;;  %v2463_v0 = vld [vmem:[%s8053_s14 + $0x40] sm:$0xff] }
 0xf79   :  { %v2258_v53 = vmul.f32 %v7377_v50, %v7377_v50 }
 0xf7b   :  { %v2268_v20 = vsel %vm231_vm6, %v2258_v53, 0.0  ;;  %v2464_v53 = vld [vmem:[%s8053_s14 + $0x48] sm:$0xff] }
 0xf7c   :  { %2269 = vadd.xlane.f32.xlu0 %v2268_v20  ;;  %v6148_v20 = vpack.c.bf16 %v2464_v53, %v2463_v0 }
 0xff8   :  { %v2264_v3 = vpop.xlane.xlu0 %2263 }
 0xff9   :  { %v2272_v37 = vmul.f32 0.015625, %v2264_v3  ;;  %v2261_v4 = vpop.xlane.xlu1 %2260 }
 0xffa   :  { %v2271_v36 = vmul.f32 0.015625, %v2261_v4 }
 0xffb   :  { %v2276_v51 = vadd.f32 1e-12, %v2272_v37 }
 0xffc   :  { %v2275_v59 = vadd.f32 1e-12, %v2271_v36 }
 0xffd   :  { %6565 = vrsqrt.f32 %v2276_v51 }
 0xffe   :  { %6567 = vrsqrt.f32 %v2275_v59 }
0x1005   :  { %v2267_v28 = vpop.xlane.xlu1 %2266 }
0x1006   :  { %v2273_v6 = vmul.f32 0.015625, %v2267_v28 }
0x1007   :  { %v6566_v58 = vpop.eup %6565 }
0x1008   :  { %v6568_v10 = vpop.eup %6567  ;;  %v2284_v25 = vmul.f32 %v6566_v58, %v2252_v32  ;;  %v2277_v52 = vadd.f32 1e-12, %v2273_v6 }
0x1009   :  { %v2270_v11 = vpop.xlane.xlu0 %2269  ;;  %v2283_v12 = vmul.f32 %v6568_v10, %v2251_v38 }
0x100a   :  { %6569 = vrsqrt.f32 %v2277_v52  ;;  %v2274_v13 = vmul.f32 0.015625, %v2270_v11  ;;  %v2294_v19 = vmul.f32 %v5172_v9, %v2284_v25 }
0x100b   :  { %v2293_v21 = vmul.f32 %v5172_v9, %v2283_v12 }
0x100c   :  { %v2278_v22 = vadd.f32 1e-12, %v2274_v13  ;;  %v7397_v56 = vadd.f32 %v5173_v14, %v2294_v19 }
0x100d   :  { %v7395_v23 = vadd.f32 %v5173_v14, %v2293_v21 }
0x100e   :  { %6571 = vrsqrt.f32 %v2278_v22 }
0x100f   :  { %5723 = vmatprep.mubr.msk.f32.mxu0 %vm231_vm6, %v7395_v23 }
0x1010   :  { %5724 = vmatmul.mubr.msk.f32.vlgmr.msra.gmra.mrb[22].mxu0 %vm231_vm6, %v7397_v56 }
0x1014   :  { %v6570_v54 = vpop.eup %6569 }
0x1015   :  { %v2285_v27 = vmul.f32 %v6570_v54, %v7373_v42  ;;  %v2460_v42 = vld [vmem:[%s8053_s14 + $0x28] sm:$0xff] }
0x1016   :  { %v6140_v43 = vpack.c.bf16 %v2460_v42, %v2459_v62 }
0x1017   :  { %v2295_v30 = vmul.f32 %v5172_v9, %v2285_v27 }
0x1018   :  { %v6572_v31 = vpop.eup %6571  ;;  %6141 = vmatprep.subr.bf16.mxu1 %v6140_v43 }
0x1019   :  { %v7404_v32 = vadd.f32 %v5173_v14, %v2295_v30  ;;  %v2286_v38 = vmul.f32 %v6572_v31, %v7377_v50  ;;  %6143 = vmatpush3.bf16.msra.mxu1 %v6140_v43  ;;  %v6144_v50 = vpack.c.bf16 %v2462_v49, %v2461_v47 }
0x101b   :  { %5726 = vmatprep.mubr.msk.f32.mxu0 %vm231_vm6, %v7404_v32  ;;  %v2296_v39 = vmul.f32 %v5172_v9, %v2286_v38  ;;  %6145 = vmatprep.subr.bf16.mxu1 %v6144_v50 }
0x101d   :  { %v7409_v40 = vadd.f32 %v5173_v14, %v2296_v39  ;;  %6147 = vmatpush3.bf16.msra.mxu1 %v6144_v50 }
0x101e   :  { %6149 = vmatprep.subr.bf16.mxu1 %v6148_v20 }
0x101f   :  { %5727 = vmatmul.mubr.msk.f32.gmra.mrb[24].mxu0 %vm231_vm6, %v7409_v40 }
0x1020   :  { %2747 = vmatprep.mubr.f32.mxu0 %v6729_v7 }
0x1021   :  { %6151 = vmatpush3.bf16.msra.mxu1 %v6148_v20 }
0x1022   :  { %6153 = vmatprep.subr.bf16.mxu1 %v6152_v15 }
0x1025   :  { %6155 = vmatpush3.bf16.msra.mxu1 %v6152_v15 }
0x1026   :  { %6157 = vmatprep.subr.bf16.mxu1 %v6156_v26 }
0x1029   :  { %6159 = vmatpush3.bf16.msra.mxu1 %v6156_v26 }
0x102a   :  { %6161 = vmatprep.subr.bf16.mxu1 %v6160_v57 }
0x102d   :  { %6163 = vmatpush3.bf16.msra.mxu1 %v6160_v57 }
0x10e3   :  { %v5725_v35 = vpop.f32.mrb[22].mxu0 }
0x10e4   :  { %v2406_v60 = vadd.f32 %v5725_v35, %v5174_v55  ;;  %v2400_v34 = vpop.f32.mrb[23].mxu0 }
0x10e5   :  { %v2401_v63 = vadd.f32 %v5174_v55, %v2400_v34 }
0x10e6   :  { %v2424_v16 = vmul.f32 0.044715, %v2406_v60  ;;  %v2420_v41 = vmul.f32 0.5, %v2406_v60 }
0x10e7   :  { %v2423_v3 = vmul.f32 0.044715, %v2401_v63  ;;  %v2419_v31 = vmul.f32 0.5, %v2401_v63 }
0x10e8   :  { %v2428_v37 = vmul.f32 %v2424_v16, %v2406_v60 }
0x10e9   :  { %v2427_v4 = vmul.f32 %v2423_v3, %v2401_v63 }
0x10ea   :  { %v2432_v36 = vmul.f32 %v2428_v37, %v2406_v60 }
0x10eb   :  { %v2431_v51 = vmul.f32 %v2427_v4, %v2401_v63 }
0x10ec   :  { %v2436_v59 = vadd.f32 %v2432_v36, %v2406_v60 }
0x10ed   :  { %v2435_v28 = vadd.f32 %v2431_v51, %v2401_v63 }
0x10ee   :  { %v2440_v6 = vmul.f32 0.7978846, %v2436_v59 }
0x10ef   :  { %v2439_v58 = vmul.f32 0.7978846, %v2435_v28 }
0x10f0   :  { %6573 = vtanh.f32 %v2440_v6 }
0x10f1   :  { %6575 = vtanh.f32 %v2439_v58 }
0x10f2   :  { %v5728_v9 = vpop.f32.mrb[24].mxu0 }
0x10f3   :  { %v2416_v10 = vadd.f32 %v5728_v9, %v5174_v55  ;;  %v2410_v25 = vpop.f32.mrb[25].mxu0 }
0x10f4   :  { %v2411_v52 = vadd.f32 %v5174_v55, %v2410_v25 }
0x10f5   :  { %v2426_v11 = vmul.f32 0.044715, %v2416_v10  ;;  %v2422_v53 = vmul.f32 0.5, %v2416_v10 }
0x10f6   :  { %v2425_v12 = vmul.f32 0.044715, %v2411_v52  ;;  %v2421_v50 = vmul.f32 0.5, %v2411_v52 }
0x10f7   :  { %v2430_v13 = vmul.f32 %v2426_v11, %v2416_v10 }
0x10f8   :  { %v2429_v14 = vmul.f32 %v2425_v12, %v2411_v52 }
0x10f9   :  { %v2434_v19 = vmul.f32 %v2430_v13, %v2416_v10 }
0x10fa   :  { %v6574_v21 = vpop.eup %6573  ;;  %v2433_v22 = vmul.f32 %v2429_v14, %v2411_v52 }
0x10fb   :  { %v6576_v54 = vpop.eup %6575  ;;  %v2448_v27 = vadd.f32 1.0, %v6574_v21  ;;  %v2438_v30 = vadd.f32 %v2434_v19, %v2416_v10 }
0x10fc   :  { %v2447_v38 = vadd.f32 1.0, %v6576_v54  ;;  %v2437_v39 = vadd.f32 %v2433_v22, %v2411_v52  ;;  %v5183_v22 = vld [vmem:[%s8045_s6 + $0x88] sm:$0xff]  ;;  %v5185_v54 = vld [vmem:[%s8045_s6 + $0x98] sm:$0xff] }
0x10fd   :  { %v2442_v61 = vmul.f32 0.7978846, %v2438_v30  ;;  %v2452_v42 = vmul.f32 %v2448_v27, %v2420_v41  ;;  %v5182_v27 = vld [vmem:[%s8045_s6 + $0x80] sm:$0xff]  ;;  %v5184_v30 = vld [vmem:[%s8045_s6 + $0x90] sm:$0xff]  ;;  %v5189_v41 = vld [vmem:[%s8045_s6 + $0xb8] sm:$0xff] }
0x10fe   :  { %v2451_v24 = vmul.f32 %v2447_v38, %v2419_v31  ;;  %v2441_v62 = vmul.f32 0.7978846, %v2437_v39  ;;  %v6164_v31 = vpack.c.bf16 %v5185_v54, %v5183_v22  ;;  %v6166_v38 = vpack.c.bf16 %v5184_v30, %v5182_v27  ;;  %v5187_v39 = vld [vmem:[%s8045_s6 + $0xa8] sm:$0xff] }
0x10ff   :  { %6577 = vtanh.f32 %v2442_v61  ;;  %v6168_v61 = vpack.c.bf16 %v5189_v41, %v5187_v39 }
0x1100   :  { %5761 = vmatprep.mubr.f32.mxu1 %v2451_v24  ;;  %6579 = vtanh.f32 %v2441_v62  ;;  %6165 = vmatprep.subr.bf16.mxu0 %v6164_v31  ;;  %v5186_v24 = vld [vmem:[%s8045_s6 + $0xa0] sm:$0xff]  ;;  %v5188_v62 = vld [vmem:[%s8045_s6 + $0xb0] sm:$0xff] }
0x1101   :  { %5762 = vmatmul.mubr.f32.vlgmr.msra.gmra.mrb[26].mxu1 %v2452_v42  ;;  %6167 = vmatpush1.bf16.msra.mxu0 %v6166_v38  ;;  %v6170_v42 = vpack.c.bf16 %v5188_v62, %v5186_v24 }
0x1102   :  { %6169 = vmatprep.subr.bf16.mxu0 %v6168_v61 }
0x1105   :  { %6171 = vmatpush1.bf16.msra.mxu0 %v6170_v42 }
0x1109   :  { %v6578_v43 = vpop.eup %6577 }
0x110a   :  { %v6580_v47 = vpop.eup %6579  ;;  %v2450_v49 = vadd.f32 1.0, %v6578_v43  ;;  %v5191_v43 = vld [vmem:[%s8045_s6 + $0xc8] sm:$0xff] }
0x110b   :  { %v2449_v0 = vadd.f32 1.0, %v6580_v47  ;;  %v5193_v47 = vld [vmem:[%s8045_s6 + $0xd8] sm:$0xff] }
0x110c   :  { %v2454_v44 = vmul.f32 %v2450_v49, %v2422_v53  ;;  %v6172_v49 = vpack.c.bf16 %v5193_v47, %v5191_v43 }
0x110d   :  { %v2453_v20 = vmul.f32 %v2449_v0, %v2421_v50  ;;  %v5190_v50 = vld [vmem:[%s8045_s6 + $0xc0] sm:$0xff]  ;;  %v5192_v0 = vld [vmem:[%s8045_s6 + $0xd0] sm:$0xff] }
0x110e   :  { %v6174_v53 = vpack.c.bf16 %v5192_v0, %v5190_v50  ;;  %6173 = vmatprep.subr.bf16.mxu0 %v6172_v49 }
0x110f   :  { %5764 = vmatprep.mubr.f32.mxu1 %v2453_v20  ;;  %v5195_v20 = vld [vmem:[%s8045_s6 + $0xe8] sm:$0xff] }
0x1110   :  { %5765 = vmatmul.mubr.f32.gmra.mrb[28].mxu1 %v2454_v44  ;;  %v5197_v44 = vld [vmem:[%s8045_s6 + $0xf8] sm:$0xff]  ;;  %6175 = vmatpush1.bf16.msra.mxu0 %v6174_v53 }
0x11d4   :  { %v5763_v15 = vpop.f32.mrb[26].mxu1 }
0x11d5   :  { %v2550_v17 = vadd.f32 %v5763_v15, %v5179_v46  ;;  %v2544_v18 = vpop.f32.mrb[27].mxu1  ;;  %v5194_v15 = vld [vmem:[%s8045_s6 + $0xe0] sm:$0xff] }
0x11d6   :  { %v2545_v26 = vadd.f32 %v5179_v46, %v2544_v18 }
0x11d7   :  { %v2564_v29 = vadd.f32 %v2550_v17, %v7397_v56  ;;  %v5196_v17 = vld [vmem:[%s8045_s6 + $0xf0] sm:$0xff] }
0x11d8   :  { %v2563_v8 = vadd.f32 %v2545_v26, %v7395_v23  ;;  %v6178_v18 = vpack.c.bf16 %v5196_v17, %v5194_v15 }
0x11d9   :  { %v2572_v57 = vsel %vm231_vm6, %v2564_v29, 0.0 }
0x11da   :  { %2573 = vadd.xlane.f32.xlu0 %v2572_v57  ;;  %v2569_v55 = vsel %vm231_vm6, %v2563_v8, 0.0 }
0x11db   :  { %2570 = vadd.xlane.f32.xlu1 %v2569_v55 }
0x11e3   :  { %v5766_v35 = vpop.f32.mrb[28].mxu1 }
0x11e4   :  { %v2560_v60 = vadd.f32 %v5766_v35, %v5179_v46  ;;  %v2554_v34 = vpop.f32.mrb[29].mxu1 }
0x11e5   :  { %v2555_v63 = vadd.f32 %v5179_v46, %v2554_v34  ;;  %v6176_v46 = vpack.c.bf16 %v5197_v44, %v5195_v20 }
0x11e6   :  { %v2566_v16 = vadd.f32 %v2560_v60, %v7409_v40 }
0x11e7   :  { %v2565_v3 = vadd.f32 %v2555_v63, %v7404_v32  ;;  %6177 = vmatprep.subr.bf16.mxu0 %v6176_v46 }
0x11e8   :  { %v2578_v37 = vsel %vm231_vm6, %v2566_v16, 0.0  ;;  %6179 = vmatpush1.bf16.msra.mxu0 %v6178_v18 }
0x11e9   :  { %2579 = vadd.xlane.f32.xlu0 %v2578_v37  ;;  %v2575_v56 = vsel %vm231_vm6, %v2565_v3, 0.0 }
0x11ea   :  { %2576 = vadd.xlane.f32.xlu1 %v2575_v56 }
0x1267   :  { %v2574_v23 = vpop.xlane.xlu0 %2573 }
0x1268   :  { %v2582_v4 = vmul.f32 0.015625, %v2574_v23  ;;  %v2571_v36 = vpop.xlane.xlu1 %2570 }
0x1269   :  { %v2581_v51 = vmul.f32 0.015625, %v2571_v36  ;;  %v5181_v36 = vld [vmem:[%s8056_s17] ss:$0 sm:$0xff] }
0x126a   :  { %v7470_v59 = vsub.f32 %v2564_v29, %v2582_v4 }
0x126b   :  { %v7472_v28 = vsub.f32 %v2563_v8, %v2581_v51 }
0x126c   :  { %v2590_v6 = vmul.f32 %v7470_v59, %v7470_v59 }
0x126d   :  { %v2589_v32 = vmul.f32 %v7472_v28, %v7472_v28 }
0x126e   :  { %v2596_v40 = vsel %vm231_vm6, %v2590_v6, 0.0 }
0x126f   :  { %2597 = vadd.xlane.f32.xlu0 %v2596_v40  ;;  %v2593_v58 = vsel %vm231_vm6, %v2589_v32, 0.0 }
0x1270   :  { %2594 = vadd.xlane.f32.xlu1 %v2593_v58 }
0x1276   :  { %v2580_v9 = vpop.xlane.xlu0 %2579 }
0x1277   :  { %v2584_v10 = vmul.f32 0.015625, %v2580_v9  ;;  %v2577_v25 = vpop.xlane.xlu1 %2576 }
0x1278   :  { %v2583_v52 = vmul.f32 0.015625, %v2577_v25 }
0x1279   :  { %v7480_v11 = vsub.f32 %v2566_v16, %v2584_v10  ;;  %v5180_v16 = vld [vmem:[%s8055_s16] ss:$0 sm:$0xff] }
0x127a   :  { %v7482_v12 = vsub.f32 %v2565_v3, %v2583_v52 }
0x127b   :  { %v2592_v13 = vmul.f32 %v7480_v11, %v7480_v11 }
0x127c   :  { %v2591_v14 = vmul.f32 %v7482_v12, %v7482_v12 }
0x127d   :  { %v2602_v19 = vsel %vm231_vm6, %v2592_v13, 0.0 }
0x127e   :  { %2603 = vadd.xlane.f32.xlu0 %v2602_v19  ;;  %v2599_v21 = vsel %vm231_vm6, %v2591_v14, 0.0 }
0x127f   :  { %2600 = vadd.xlane.f32.xlu1 %v2599_v21 }
0x12fc   :  { %v2598_v26 = vpop.xlane.xlu0 %2597 }
0x12fd   :  { %v2606_v29 = vmul.f32 0.015625, %v2598_v26  ;;  %v2595_v8 = vpop.xlane.xlu1 %2594 }
0x12fe   :  { %v2605_v57 = vmul.f32 0.015625, %v2595_v8 }
0x12ff   :  { %v2610_v55 = vadd.f32 1e-12, %v2606_v29 }
0x1300   :  { %v2609_v35 = vadd.f32 1e-12, %v2605_v57 }
0x1301   :  { %6581 = vrsqrt.f32 %v2610_v55 }
0x1302   :  { %6583 = vrsqrt.f32 %v2609_v35 }
0x130b   :  { %v6582_v60 = vpop.eup %6581  ;;  %v2604_v34 = vpop.xlane.xlu0 %2603 }
0x130c   :  { %v6584_v63 = vpop.eup %6583  ;;  %v2608_v3 = vmul.f32 0.015625, %v2604_v34  ;;  %v2601_v37 = vpop.xlane.xlu1 %2600  ;;  %v2618_v4 = vmul.f32 %v6582_v60, %v7470_v59 }
0x130d   :  { %v2617_v56 = vmul.f32 %v6584_v63, %v7472_v28  ;;  %v2607_v23 = vmul.f32 0.015625, %v2601_v37 }
0x130e   :  { %v2612_v51 = vadd.f32 1e-12, %v2608_v3  ;;  %v2628_v58 = vmul.f32 %v5180_v16, %v2618_v4 }
0x130f   :  { %v2627_v6 = vmul.f32 %v5180_v16, %v2617_v56  ;;  %v2611_v32 = vadd.f32 1e-12, %v2607_v23 }
0x1310   :  { %6585 = vrsqrt.f32 %v2612_v51  ;;  %v7551_v28 = vadd.f32 %v5181_v36, %v2628_v58 }
0x1311   :  { %v7546_v40 = vadd.f32 %v5181_v36, %v2627_v6  ;;  %6587 = vrsqrt.f32 %v2611_v32 }
0x1313   :  { %5199 = vmatmul.mubr.msk.f32.vlgmr.msra.gmra.mrb[26].mxu0 %vm231_vm6, %v7546_v40 }
0x1314   :  { %2753 = vmatprep.mubr.f32.mxu0 %v6729_v7 }
0x1317   :  { %5200 = vmatmul.mubr.msk.f32.gmra.mrb[28].mxu0 %vm231_vm6, %v7551_v28 }
0x1318   :  { %2759 = vmatprep.mubr.f32.mxu0 %v6729_v7 }
0x131a   :  { %v6586_v59 = vpop.eup %6585 }
0x131b   :  { %v6588_v9 = vpop.eup %6587  ;;  %v2620_v25 = vmul.f32 %v6586_v59, %v7480_v11 }
0x131c   :  { %v2619_v10 = vmul.f32 %v6588_v9, %v7482_v12  ;;  %v5198_v12 = vld [vmem:[%s8046_s7 + $0x2] sm:$0x3] }
0x131d   :  { %v2630_v14 = vmul.f32 %v5180_v16, %v2620_v25  ;;  %v2664_v11 = vrot.slane %v5198_v12, %v7033_v2  ;;  %v2668_v27 = vrot.slane %v5198_v12, %v331_v5 }
0x131e   :  { %v2629_v52 = vmul.f32 %v5180_v16, %v2619_v10 }
0x131f   :  { %v7563_v19 = vadd.f32 %v5181_v36, %v2630_v14 }
0x1320   :  { %v7558_v13 = vadd.f32 %v5181_v36, %v2629_v52 }
0x1322   :  { %5201 = vmatmul.mubr.msk.f32.gmra.mrb[30].mxu0 %vm231_vm6, %v7558_v13 }
0x1323   :  { %2765 = vmatprep.mubr.f32.mxu0 %v6729_v7 }
0x1326   :  { %5202 = vmatmul.mubr.msk.f32.gmra.mrb[32].mxu0 %vm231_vm6, %v7563_v19 }
0x13e6   :  { %v2749_v21 = vpop.f32.mrb[26].mxu0 }
0x13e7   :  { %v7571_v22 = vadd.f32 %v2749_v21, %v2664_v11  ;;  %v2751_v54 = vpop.f32.mrb[27].mxu0 }
0x13e8   :  { %v2752_v39 = vadd.f32 %v2751_v54, %v2668_v27 }
0x13e9   :  { %5771 = vmatprep.mubr.msk.f32.mxu0 %vm442_vm7, %v7571_v22 }
0x13ea   :  { %v2755_v30 = vpop.f32.mrb[28].mxu0 }
0x13eb   :  { %v7577_v31 = vadd.f32 %v2755_v30, %v2664_v11  ;;  %v2757_v38 = vpop.f32.mrb[29].mxu0 }
0x13ec   :  { %v2758_v41 = vadd.f32 %v2757_v38, %v2668_v27 }
0x13ed   :  { %v7581_v61 = vpack.i.bf16 %v7577_v31, %v7571_v22 }
0x13ee   :  { %v6192_v2 = vpack.c.bf16 %v2758_v41, %v2752_v39  ;;  %v7583_v24 = vpack.i.bf16 %v2758_v41, %v2752_v39 }
0x13ef   :  { %6424 = vrot.lane.b32.xlu1 %v7581_v61, %s6730_s25 }
0x13f5   :  { %v2761_v1 = vpop.f32.mrb[30].mxu0 }
0x13f6   :  { %v7587_v5 = vadd.f32 %v2761_v1, %v2664_v11  ;;  %v2763_v62 = vpop.f32.mrb[31].mxu0 }
0x13f7   :  { %v2764_v49 = vadd.f32 %v2763_v62, %v2668_v27 }
0x13f8   :  { %5778 = vmatprep.mubr.msk.f32.mxu1 %vm442_vm7, %v7587_v5 }
0x13f9   :  { %v2767_v42 = vpop.f32.mrb[32].mxu0 }
0x13fa   :  { %v7591_v43 = vadd.f32 %v2767_v42, %v2664_v11  ;;  %v2769_v47 = vpop.f32.mrb[33].mxu0 }
0x13fb   :  { %v2770_v50 = vadd.f32 %v2769_v47, %v2668_v27 }
0x13fc   :  { %v7595_v0 = vpack.i.bf16 %v7591_v43, %v7587_v5 }
0x13fd   :  { %v7597_v53 = vpack.c.bf16 %v2770_v50, %v2764_v49  ;;  %v7599_v20 = vpack.i.bf16 %v2770_v50, %v2764_v49 }
0x13fe   :  { %6429 = vrot.lane.b32.xlu0 %v7595_v0, %s6730_s25 }
0x1461   :  { %v6425_v44 = vpop.permute.xlu1 %6424 }
0x1462   :  { %v6427_v46 = vunpack.i.h.bf16 %v6425_v44  ;;  %v6426_v15 = vunpack.i.l.bf16 %v6425_v44 }
0x1464   :  { %v6180_v17 = vpack.c.bf16 %v6427_v46, %v6426_v15 }
0x1466   :  { %6182 = vmatprep.subr.msk.bf16.mxu0 %vm7082_vm8, %v6180_v17 }
0x1467   :  { %6185 = vmatpush3.bf16.xpose.msk.msra.mxu0 %vm7082_vm8, %v6180_v17 }
0x1468   :  { %6193 = vmatprep.subr.bf16.mxu0 %v6192_v2 }
0x146e   :  { %5772 = vmatmul.mubr.msk.f32.vlgmr.msra.gmra.mrb[34].mxu0 %vm442_vm7, %v7577_v31 }
0x146f   :  { %6195 = vmatpush3.bf16.msra.mxu0 %v6192_v2 }
0x1470   :  { %6197 = vmatprep.subr.bf16.mxu0 %v7597_v53  ;;  %v6430_v18 = vpop.permute.xlu0 %6429 }
0x1471   :  { %v6432_v26 = vunpack.i.h.bf16 %v6430_v18  ;;  %v6431_v29 = vunpack.i.l.bf16 %v6430_v18 }
0x1473   :  { %v6186_v8 = vpack.c.bf16 %v6432_v26, %v6431_v29 }
0x1475   :  { %6188 = vmatprep.subr.msk.bf16.mxu1 %vm7082_vm8, %v6186_v8 }
0x1476   :  { %6191 = vmatpush3.bf16.xpose.msk.msra.mxu1 %vm7082_vm8, %v6186_v8 }
0x147d   :  { %5779 = vmatmul.mubr.msk.f32.vlgmr.msra.gmra.mrb[30].mxu1 %vm442_vm7, %v7591_v43 }
0x1541   :  { %v5773_v57 = vpop.f32.mrb[34].mxu0 }
0x1542   :  { %v2951_v55 = vsel %vm7112_vm12, %v5773_v57, -3.4028235e+38  ;;  %v2852_v35 = vpop.f32.mrb[35].mxu0 }
0x1543   :  { %v2957_v60 = vsel %vm442_vm7, %v2951_v55, -inf  ;;  %v2950_v34 = vsel %vm7112_vm12, %v2852_v35, -3.4028235e+38 }
0x1544   :  { %v2954_v63 = vsel %vm442_vm7, %v2950_v34, -inf  ;;  %2958 = vmax.xlane.f32.xlu0 %v2957_v60 }
0x1545   :  { %2955 = vmax.xlane.f32.xlu1 %v2954_v63 }
0x1550   :  { %v5780_v16 = vpop.f32.mrb[30].mxu1 }
0x1551   :  { %v2953_v3 = vsel %vm7108_vm11, %v5780_v16, -3.4028235e+38  ;;  %v2941_v37 = vpop.f32.mrb[31].mxu1 }
0x1552   :  { %v2963_v56 = vsel %vm442_vm7, %v2953_v3, -inf  ;;  %v2952_v23 = vsel %vm7108_vm11, %v2941_v37, -3.4028235e+38 }
0x1553   :  { %v2960_v4 = vsel %vm442_vm7, %v2952_v23, -inf  ;;  %2964 = vmax.xlane.f32.xlu0 %v2963_v56 }
0x1554   :  { %2961 = vmax.xlane.f32.xlu1 %v2960_v4 }
0x1565   :  { %6434 = vrot.lane.b32.xlu1 %v7581_v61, %s6732_s3 }
0x15d1   :  { %v2959_v36 = vpop.xlane.xlu0 %2958 }
0x15d2   :  { %v2967_v51 = vsub.f32 %v2951_v55, %v2959_v36  ;;  %v2956_v6 = vpop.xlane.xlu1 %2955 }
0x15d3   :  { %v2966_v32 = vsub.f32 %v2950_v34, %v2956_v6 }
0x15d4   :  { %v2972_v58 = vmul.f32 1.442695, %v2967_v51 }
0x15d5   :  { %v2970_v59 = vmul.f32 1.442695, %v2966_v32 }
0x15d6   :  { %6589 = vpow2.f32 %v2972_v58 }
0x15d7   :  { %6591 = vpow2.f32 %v2970_v59 }
0x15e0   :  { %v6590_v9 = vpop.eup %6589  ;;  %v2965_v10 = vpop.xlane.xlu0 %2964 }
0x15e1   :  { %v6592_v25 = vpop.eup %6591  ;;  %v2969_v52 = vsub.f32 %v2953_v3, %v2965_v10  ;;  %v2962_v14 = vpop.xlane.xlu1 %2961  ;;  %v2981_v12 = vsel %vm442_vm7, %v6590_v9, 0.0 }
0x15e2   :  { %2982 = vadd.xlane.f32.xlu0 %v2981_v12  ;;  %v2978_v11 = vsel %vm442_vm7, %v6592_v25, 0.0  ;;  %v2968_v2 = vsub.f32 %v2952_v23, %v2962_v14 }
0x15e3   :  { %v2976_v21 = vmul.f32 1.442695, %v2969_v52  ;;  %2979 = vadd.xlane.f32.xlu1 %v2978_v11 }
0x15e4   :  { %v2974_v1 = vmul.f32 1.442695, %v2968_v2 }
0x15e5   :  { %6593 = vpow2.f32 %v2976_v21  ;;  %v6435_v54 = vpop.permute.xlu1 %6434 }
0x15e6   :  { %v6437_v27 = vunpack.i.h.bf16 %v6435_v54  ;;  %v6436_v30 = vunpack.i.l.bf16 %v6435_v54  ;;  %6595 = vpow2.f32 %v2974_v1 }
0x15e8   :  { %v6200_v38 = vpack.c.bf16 %v6437_v27, %v6436_v30 }
0x15ea   :  { %6202 = vmatprep.subr.msk.bf16.mxu1 %vm7082_vm8, %v6200_v38 }
0x15eb   :  { %6205 = vmatpush3.bf16.xpose.msk.msra.mxu1 %vm7082_vm8, %v6200_v38 }
0x15ef   :  { %v6594_v39 = vpop.eup %6593 }
0x15f0   :  { %v2987_v41 = vsel %vm442_vm7, %v6594_v39, 0.0  ;;  %v6596_v62 = vpop.eup %6595 }
0x15f1   :  { %2988 = vadd.xlane.f32.xlu0 %v2987_v41  ;;  %v2984_v42 = vsel %vm442_vm7, %v6596_v62, 0.0 }
0x15f4   :  { %3160 = vrot.lane.b32.xlu1 %v7571_v22, %s6731_s26 }
0x15f8   :  { %3162 = vrot.lane.b32.xlu1 %v7577_v31, %s6731_s26 }
0x1607   :  { %6439 = vrot.lane.b32.xlu0 %v7595_v0, %s6732_s3 }
0x160b   :  { %3251 = vrot.lane.b32.xlu0 %v7587_v5, %s6731_s26 }
0x161c   :  { %2985 = vadd.xlane.f32.xlu1 %v2984_v42 }
0x162d   :  { %3253 = vrot.lane.b32.xlu1 %v7591_v43, %s6731_s26 }
0x166f   :  { %v2983_v47 = vpop.xlane.xlu0 %2982 }
0x1670   :  { %6597 = vrcp.f32 %v2983_v47  ;;  %v2980_v49 = vpop.xlane.xlu1 %2979 }
0x1671   :  { %6599 = vrcp.f32 %v2980_v49 }
0x1674   :  { %v3161_v50 = vpop.permute.xlu1 %3160 }
0x1675   :  { %5799 = vmatprep.mubr.msk.f32.mxu1 %vm442_vm7, %v3161_v50 }
0x1678   :  { %v3163_v44 = vpop.permute.xlu1 %3162 }
0x1679   :  { %5800 = vmatmul.mubr.msk.f32.vlgmr.msra.gmra.mrb[32].mxu1 %vm442_vm7, %v3163_v44 }
0x167a   :  { %v6598_v46 = vpop.eup %6597 }
0x167b   :  { %v6600_v15 = vpop.eup %6599  ;;  %v2995_v18 = vmul.f32 %v6598_v46, %v6590_v9 }
0x167c   :  { %v2994_v17 = vmul.f32 %v6600_v15, %v6592_v25 }
0x167e   :  { %v2989_v26 = vpop.xlane.xlu0 %2988  ;;  %5785 = vmatprep.mubr.msk.f32.mxu0 %vm442_vm7, %v2994_v17 }
0x167f   :  { %5786 = vmatmul.mubr.msk.f32.vlgmr.msra.gmra.mrb[36].mxu0 %vm442_vm7, %v2995_v18  ;;  %6601 = vrcp.f32 %v2989_v26 }
0x1680   :  { %6199 = vmatpush3.bf16.msra.mxu0 %v7597_v53 }
0x1682   :  { %v6440_v29 = vpop.permute.xlu0 %6439 }
0x1683   :  { %v6442_v8 = vunpack.i.h.bf16 %v6440_v29  ;;  %v6441_v57 = vunpack.i.l.bf16 %v6440_v29 }
0x1685   :  { %v6206_v55 = vpack.c.bf16 %v6442_v8, %v6441_v57 }
0x1686   :  { %v3252_v3 = vpop.permute.xlu0 %3251 }
0x1687   :  { %6208 = vmatprep.subr.msk.bf16.mxu0 %vm7082_vm8, %v6206_v55 }
0x1689   :  { %v6602_v60 = vpop.eup %6601 }
0x168a   :  { %v2997_v16 = vmul.f32 %v6602_v60, %v6594_v39 }
0x16a9   :  { %v2986_v35 = vpop.xlane.xlu1 %2985 }
0x16aa   :  { %6603 = vrcp.f32 %v2986_v35 }
0x16ad   :  { %v3254_v53 = vpop.permute.xlu1 %3253 }
0x16b4   :  { %v6604_v34 = vpop.eup %6603 }
0x16b5   :  { %v2996_v63 = vmul.f32 %v6604_v34, %v6596_v62 }
0x16b7   :  { %5792 = vmatprep.mubr.msk.f32.mxu0 %vm442_vm7, %v2996_v63 }
0x16b8   :  { %5793 = vmatmul.mubr.msk.f32.vlgmr.msra.gmra.mrb[38].mxu0 %vm442_vm7, %v2997_v16 }
0x16b9   :  { %6211 = vmatpush3.bf16.xpose.msk.msra.mxu0 %vm7082_vm8, %v6206_v55  ;;  %5806 = vmatprep.mubr.msk.f32.mxu0 %vm442_vm7, %v3252_v3 }
0x16c0   :  { %5807 = vmatmul.mubr.msk.f32.vlgmr.msra.gmra.mrb[40].mxu0 %vm442_vm7, %v3254_v53 }
0x174c   :  { %v5801_v37 = vpop.f32.mrb[32].mxu1 }
0x174d   :  { %v3343_v56 = vsel %vm7112_vm12, %v5801_v37, -3.4028235e+38  ;;  %v3242_v23 = vpop.f32.mrb[33].mxu1 }
0x174e   :  { %v3349_v4 = vsel %vm442_vm7, %v3343_v56, -inf  ;;  %v3342_v36 = vsel %vm7112_vm12, %v3242_v23, -3.4028235e+38 }
0x174f   :  { %v3346_v51 = vsel %vm442_vm7, %v3342_v36, -inf  ;;  %3350 = vmax.xlane.f32.xlu1 %v3349_v4 }
0x1750   :  { %3347 = vmax.xlane.f32.xlu0 %v3346_v51 }
0x1752   :  { %v7667_v6 = vpop.f32.mrb[36].mxu0 }
0x1753   :  { %v7669_v32 = vpop.f32.mrb[37].mxu0 }
0x178b   :  { %v7671_v58 = vpop.f32.mrb[38].mxu0 }
0x178c   :  { %v7673_v59 = vpop.f32.mrb[39].mxu0 }
0x1793   :  { %v5808_v9 = vpop.f32.mrb[40].mxu0 }
0x1794   :  { %v3333_v10 = vpop.f32.mrb[41].mxu0  ;;  %v3345_v14 = vsel %vm7108_vm11, %v5808_v9, -3.4028235e+38 }
0x1795   :  { %v3344_v25 = vsel %vm7108_vm11, %v3333_v10, -3.4028235e+38  ;;  %v3355_v12 = vsel %vm442_vm7, %v3345_v14, -inf }
0x1796   :  { %v3352_v52 = vsel %vm442_vm7, %v3344_v25, -inf }
0x1797   :  { %3353 = vmax.xlane.f32.xlu0 %v3352_v52 }
0x179b   :  { %3356 = vmax.xlane.f32.xlu0 %v3355_v12 }
0x17dc   :  { %v3351_v11 = vpop.xlane.xlu1 %3350 }
0x17dd   :  { %v3359_v21 = vsub.f32 %v3343_v56, %v3351_v11  ;;  %v3348_v54 = vpop.xlane.xlu0 %3347 }
0x17de   :  { %v3358_v27 = vsub.f32 %v3342_v36, %v3348_v54 }
0x17df   :  { %v3364_v30 = vmul.f32 1.442695, %v3359_v21 }
0x17e0   :  { %v3362_v38 = vmul.f32 1.442695, %v3358_v27 }
0x17e1   :  { %6605 = vpow2.f32 %v3364_v30 }
0x17e2   :  { %6607 = vpow2.f32 %v3362_v38 }
0x17eb   :  { %v6606_v39 = vpop.eup %6605 }
0x17ec   :  { %v6608_v41 = vpop.eup %6607  ;;  %v3373_v2 = vsel %vm442_vm7, %v6606_v39, 0.0 }
0x17ed   :  { %3374 = vadd.xlane.f32.xlu0 %v3373_v2  ;;  %v3370_v1 = vsel %vm442_vm7, %v6608_v41, 0.0 }
0x17ee   :  { %3371 = vadd.xlane.f32.xlu1 %v3370_v1 }
0x17ff   :  { %6444 = vrot.lane.b32.xlu1 %v7583_v24, %s6731_s26 }
0x1803   :  { %6449 = vrot.lane.b32.xlu0 %v7599_v20, %s6731_s26  ;;  %6454 = vrot.lane.b32.xlu1 %v7581_v61, %s6733_s4 }
0x1807   :  { %6459 = vrot.lane.b32.xlu1 %v7595_v0, %s6733_s4 }
0x180b   :  { %3570 = vrot.lane.b32.xlu1 %v7577_v31, %s6734_s29 }
0x1824   :  { %v3354_v62 = vpop.xlane.xlu0 %3353 }
0x1825   :  { %v3360_v42 = vsub.f32 %v3344_v25, %v3354_v62 }
0x1827   :  { %v3366_v47 = vmul.f32 1.442695, %v3360_v42 }
0x1828   :  { %v3357_v49 = vpop.xlane.xlu0 %3356 }
0x1829   :  { %6609 = vpow2.f32 %v3366_v47  ;;  %v3361_v50 = vsub.f32 %v3345_v14, %v3357_v49 }
0x182b   :  { %v3368_v44 = vmul.f32 1.442695, %v3361_v50 }
0x182d   :  { %6611 = vpow2.f32 %v3368_v44 }
0x1833   :  { %v6610_v46 = vpop.eup %6609 }
0x1834   :  { %v3376_v15 = vsel %vm442_vm7, %v6610_v46, 0.0 }
0x1835   :  { %3377 = vadd.xlane.f32.xlu1 %v3376_v15 }
0x1837   :  { %v6612_v17 = vpop.eup %6611 }
0x1838   :  { %v3379_v18 = vsel %vm442_vm7, %v6612_v17, 0.0 }
0x1839   :  { %3380 = vadd.xlane.f32.xlu0 %v3379_v18 }
0x1846   :  { %3661 = vrot.lane.b32.xlu1 %v7591_v43, %s6734_s29 }
0x184f   :  { %3568 = vrot.lane.b32.xlu0 %v7571_v22, %s6734_s29 }
0x1853   :  { %3659 = vrot.lane.b32.xlu0 %v7587_v5, %s6734_s29 }
0x187a   :  { %v3375_v26 = vpop.xlane.xlu0 %3374 }
0x187b   :  { %6613 = vrcp.f32 %v3375_v26  ;;  %v3372_v29 = vpop.xlane.xlu1 %3371 }
0x187c   :  { %6615 = vrcp.f32 %v3372_v29 }
0x187e   :  { %v6450_v8 = vpop.permute.xlu0 %6449 }
0x187f   :  { %v6452_v57 = vunpack.i.h.bf16 %v6450_v8  ;;  %v6451_v55 = vunpack.i.l.bf16 %v6450_v8  ;;  %v6445_v35 = vpop.permute.xlu1 %6444 }
0x1880   :  { %v6447_v60 = vunpack.i.h.bf16 %v6445_v35  ;;  %v6446_v34 = vunpack.i.l.bf16 %v6445_v35 }
0x1881   :  { %v6216_v63 = vpack.c.bf16 %v6452_v57, %v6451_v55 }
0x1882   :  { %v6212_v16 = vpack.c.bf16 %v6447_v60, %v6446_v34 }
0x1883   :  { %v6455_v3 = vpop.permute.xlu1 %6454  ;;  %6217 = vmatprep.subr.bf16.mxu0 %v6216_v63 }
0x1884   :  { %v6457_v53 = vunpack.i.h.bf16 %v6455_v3  ;;  %v6456_v37 = vunpack.i.l.bf16 %v6455_v3  ;;  %6213 = vmatprep.subr.bf16.mxu1 %v6212_v16  ;;  %6219 = vmatpush3.bf16.msra.mxu0 %v6216_v63 }
0x1885   :  { %v6614_v56 = vpop.eup %6613  ;;  %6215 = vmatpush3.bf16.msra.mxu1 %v6212_v16 }
0x1886   :  { %v6616_v23 = vpop.eup %6615  ;;  %v6220_v4 = vpack.c.bf16 %v6457_v53, %v6456_v37  ;;  %v3387_v9 = vmul.f32 %v6614_v56, %v6606_v39 }
0x1887   :  { %v6460_v36 = vpop.permute.xlu1 %6459  ;;  %v3386_v51 = vmul.f32 %v6616_v23, %v6608_v41 }
0x1888   :  { %v6462_v10 = vunpack.i.h.bf16 %v6460_v36  ;;  %v6461_v25 = vunpack.i.l.bf16 %v6460_v36  ;;  %6222 = vmatprep.subr.msk.bf16.mxu1 %vm7082_vm8, %v6220_v4 }
0x1889   :  { %5813 = vmatprep.mubr.msk.f32.mxu1 %vm442_vm7, %v3386_v51 }
0x188a   :  { %v6226_v52 = vpack.c.bf16 %v6462_v10, %v6461_v25  ;;  %5814 = vmatmul.mubr.msk.f32.vlgmr.msra.gmra.mrb[34].mxu1 %vm442_vm7, %v3387_v9 }
0x188b   :  { %v3571_v14 = vpop.permute.xlu1 %3570 }
0x188c   :  { %6228 = vmatprep.subr.msk.bf16.mxu0 %vm7082_vm8, %v6226_v52 }
0x188e   :  { %6225 = vmatpush3.bf16.xpose.msk.msra.mxu1 %vm7082_vm8, %v6220_v4 }
0x18c2   :  { %v3378_v12 = vpop.xlane.xlu1 %3377 }
0x18c3   :  { %6617 = vrcp.f32 %v3378_v12 }
0x18c6   :  { %v3381_v11 = vpop.xlane.xlu0 %3380  ;;  %v3662_v41 = vpop.permute.xlu1 %3661 }
0x18c7   :  { %6619 = vrcp.f32 %v3381_v11 }
0x18ca   :  { %v3569_v21 = vpop.permute.xlu0 %3568 }
0x18cb   :  { %5827 = vmatprep.mubr.msk.f32.mxu1 %vm442_vm7, %v3569_v21 }
0x18cc   :  { %5828 = vmatmul.mubr.msk.f32.vlgmr.msra.gmra.mrb[36].mxu1 %vm442_vm7, %v3571_v14 }
0x18cd   :  { %v6618_v54 = vpop.eup %6617 }
0x18ce   :  { %v3388_v27 = vmul.f32 %v6618_v54, %v6610_v46  ;;  %v3660_v39 = vpop.permute.xlu0 %3659 }
0x18d0   :  { %5820 = vmatprep.mubr.msk.f32.mxu0 %vm442_vm7, %v3388_v27 }
0x18d1   :  { %v6620_v30 = vpop.eup %6619 }
0x18d2   :  { %v3389_v38 = vmul.f32 %v6620_v30, %v6612_v17 }
0x18d4   :  { %5821 = vmatmul.mubr.msk.f32.vlgmr.msra.gmra.mrb[42].mxu0 %vm442_vm7, %v3389_v38 }
0x18d5   :  { %6231 = vmatpush3.bf16.xpose.msk.msra.mxu0 %vm7082_vm8, %v6226_v52  ;;  %5834 = vmatprep.mubr.msk.f32.mxu0 %vm442_vm7, %v3660_v39 }
0x18dc   :  { %5835 = vmatmul.mubr.msk.f32.vlgmr.msra.gmra.mrb[44].mxu0 %vm442_vm7, %v3662_v41 }
0x195d   :  { %v7717_v2 = vpop.f32.mrb[34].mxu1 }
0x195e   :  { %v7719_v1 = vpop.f32.mrb[35].mxu1 }
0x199f   :  { %v5829_v62 = vpop.f32.mrb[36].mxu1 }
0x19a0   :  { %v3751_v42 = vsel %vm7112_vm12, %v5829_v62, -3.4028235e+38  ;;  %v3650_v47 = vpop.f32.mrb[37].mxu1 }
0x19a1   :  { %v3757_v49 = vsel %vm442_vm7, %v3751_v42, -inf  ;;  %v3750_v50 = vsel %vm7112_vm12, %v3650_v47, -3.4028235e+38 }
0x19a2   :  { %v3754_v44 = vsel %vm442_vm7, %v3750_v50, -inf  ;;  %3758 = vmax.xlane.f32.xlu1 %v3757_v49 }
0x19a3   :  { %3755 = vmax.xlane.f32.xlu0 %v3754_v44 }
0x19a7   :  { %v7727_v46 = vpop.f32.mrb[42].mxu0 }
0x19a8   :  { %v7729_v15 = vpop.f32.mrb[43].mxu0 }
0x19af   :  { %v5836_v17 = vpop.f32.mrb[44].mxu0 }
0x19b0   :  { %v3741_v18 = vpop.f32.mrb[45].mxu0  ;;  %v3753_v8 = vsel %vm7108_vm11, %v5836_v17, -3.4028235e+38 }
0x19b1   :  { %v3752_v26 = vsel %vm7108_vm11, %v3741_v18, -3.4028235e+38  ;;  %v3763_v57 = vsel %vm442_vm7, %v3753_v8, -inf }
0x19b2   :  { %v3760_v29 = vsel %vm442_vm7, %v3752_v26, -inf }
0x19b3   :  { %3761 = vmax.xlane.f32.xlu0 %v3760_v29 }
0x19b7   :  { %3764 = vmax.xlane.f32.xlu0 %v3763_v57 }
0x1a2f   :  { %v3759_v55 = vpop.xlane.xlu1 %3758 }
0x1a30   :  { %v3767_v35 = vsub.f32 %v3751_v42, %v3759_v55  ;;  %v3756_v60 = vpop.xlane.xlu0 %3755 }
0x1a31   :  { %v3766_v34 = vsub.f32 %v3750_v50, %v3756_v60 }
0x1a32   :  { %v3772_v63 = vmul.f32 1.442695, %v3767_v35 }
0x1a33   :  { %v3770_v16 = vmul.f32 1.442695, %v3766_v34 }
0x1a34   :  { %6621 = vpow2.f32 %v3772_v63 }
0x1a35   :  { %6623 = vpow2.f32 %v3770_v16 }
0x1a3e   :  { %v6622_v3 = vpop.eup %6621 }
0x1a3f   :  { %v6624_v53 = vpop.eup %6623  ;;  %v3781_v37 = vsel %vm442_vm7, %v6622_v3, 0.0 }
0x1a40   :  { %3782 = vadd.xlane.f32.xlu0 %v3781_v37  ;;  %v3778_v56 = vsel %vm442_vm7, %v6624_v53, 0.0  ;;  %v3762_v23 = vpop.xlane.xlu0 %3761 }
0x1a41   :  { %3779 = vadd.xlane.f32.xlu1 %v3778_v56  ;;  %v3768_v9 = vsub.f32 %v3752_v26, %v3762_v23 }
0x1a43   :  { %v3774_v10 = vmul.f32 1.442695, %v3768_v9 }
0x1a44   :  { %v3765_v4 = vpop.xlane.xlu0 %3764 }
0x1a45   :  { %v3769_v36 = vsub.f32 %v3753_v8, %v3765_v4 }
0x1a47   :  { %v3776_v51 = vmul.f32 1.442695, %v3769_v36 }
0x1a49   :  { %6625 = vpow2.f32 %v3776_v51 }
0x1a4a   :  { %6627 = vpow2.f32 %v3774_v10 }
0x1a52   :  { %6464 = vrot.lane.b32.xlu1 %v7583_v24, %s6734_s29 }
0x1a53   :  { %v6626_v25 = vpop.eup %6625 }
0x1a54   :  { %v3787_v52 = vsel %vm442_vm7, %v6626_v25, 0.0 }
0x1a56   :  { %6474 = vrot.lane.b32.xlu1 %v7581_v61, %s6735_s30  ;;  %6469 = vrot.lane.b32.xlu0 %v7599_v20, %s6734_s29  ;;  %v6628_v61 = vpop.eup %6627 }
0x1a57   :  { %v3784_v14 = vsel %vm442_vm7, %v6628_v61, 0.0 }
0x1a5a   :  { %6479 = vrot.lane.b32.xlu1 %v7595_v0, %s6735_s30 }
0x1a5e   :  { %3974 = vrot.lane.b32.xlu1 %v7577_v31, %s6736_s0 }
0x1a75   :  { %3788 = vadd.xlane.f32.xlu0 %v3787_v52 }
0x1a82   :  { %3785 = vadd.xlane.f32.xlu1 %v3784_v14 }
0x1a8b   :  { %3972 = vrot.lane.b32.xlu0 %v7571_v22, %s6736_s0 }
0x1a8f   :  { %4063 = vrot.lane.b32.xlu0 %v7587_v5, %s6736_s0 }
0x1a93   :  { %4065 = vrot.lane.b32.xlu1 %v7591_v43, %s6736_s0 }
0x1acd   :  { %v3783_v31 = vpop.xlane.xlu0 %3782 }
0x1ace   :  { %6629 = vrcp.f32 %v3783_v31  ;;  %v3780_v0 = vpop.xlane.xlu1 %3779 }
0x1acf   :  { %6631 = vrcp.f32 %v3780_v0 }
0x1ad1   :  { %v6470_v12 = vpop.permute.xlu0 %6469 }
0x1ad2   :  { %v6472_v11 = vunpack.i.h.bf16 %v6470_v12  ;;  %v6471_v21 = vunpack.i.l.bf16 %v6470_v12  ;;  %v6465_v54 = vpop.permute.xlu1 %6464 }
0x1ad3   :  { %v6467_v27 = vunpack.i.h.bf16 %v6465_v54  ;;  %v6466_v30 = vunpack.i.l.bf16 %v6465_v54 }
0x1ad4   :  { %v6236_v38 = vpack.c.bf16 %v6472_v11, %v6471_v21 }
0x1ad5   :  { %v6232_v39 = vpack.c.bf16 %v6467_v27, %v6466_v30 }
0x1ad6   :  { %v6475_v41 = vpop.permute.xlu1 %6474  ;;  %6237 = vmatprep.subr.bf16.mxu0 %v6236_v38 }
0x1ad7   :  { %v6477_v22 = vunpack.i.h.bf16 %v6475_v41  ;;  %v6476_v62 = vunpack.i.l.bf16 %v6475_v41  ;;  %6233 = vmatprep.subr.bf16.mxu1 %v6232_v39  ;;  %6239 = vmatpush3.bf16.msra.mxu0 %v6236_v38 }
0x1ad8   :  { %v6630_v5 = vpop.eup %6629  ;;  %6235 = vmatpush3.bf16.msra.mxu1 %v6232_v39 }
0x1ad9   :  { %v6632_v43 = vpop.eup %6631  ;;  %v6240_v42 = vpack.c.bf16 %v6477_v22, %v6476_v62  ;;  %v3795_v50 = vmul.f32 %v6630_v5, %v6622_v3 }
0x1ada   :  { %v6480_v47 = vpop.permute.xlu1 %6479  ;;  %v3794_v49 = vmul.f32 %v6632_v43, %v6624_v53 }
0x1adb   :  { %v6482_v44 = vunpack.i.h.bf16 %v6480_v47  ;;  %v6481_v17 = vunpack.i.l.bf16 %v6480_v47  ;;  %6242 = vmatprep.subr.msk.bf16.mxu1 %vm7082_vm8, %v6240_v42 }
0x1adc   :  { %5841 = vmatprep.mubr.msk.f32.mxu1 %vm442_vm7, %v3794_v49 }
0x1add   :  { %v6246_v18 = vpack.c.bf16 %v6482_v44, %v6481_v17  ;;  %5842 = vmatmul.mubr.msk.f32.vlgmr.msra.gmra.mrb[38].mxu1 %vm442_vm7, %v3795_v50 }
0x1ade   :  { %v3975_v8 = vpop.permute.xlu1 %3974 }
0x1adf   :  { %6248 = vmatprep.subr.msk.bf16.mxu0 %vm7082_vm8, %v6246_v18 }
0x1ae1   :  { %6245 = vmatpush3.bf16.xpose.msk.msra.mxu1 %vm7082_vm8, %v6240_v42 }
0x1b02   :  { %v3789_v26 = vpop.xlane.xlu0 %3788 }
0x1b03   :  { %6633 = vrcp.f32 %v3789_v26 }
0x1b06   :  { %v3973_v29 = vpop.permute.xlu0 %3972 }
0x1b07   :  { %5855 = vmatprep.mubr.msk.f32.mxu1 %vm442_vm7, %v3973_v29 }
0x1b08   :  { %5856 = vmatmul.mubr.msk.f32.vlgmr.msra.gmra.mrb[40].mxu1 %vm442_vm7, %v3975_v8 }
0x1b0a   :  { %v4064_v63 = vpop.permute.xlu0 %4063 }
0x1b0d   :  { %v6634_v55 = vpop.eup %6633 }
0x1b0e   :  { %v3797_v34 = vmul.f32 %v6634_v55, %v6626_v25 }
0x1b0f   :  { %v3786_v57 = vpop.xlane.xlu1 %3785 }
0x1b10   :  { %6635 = vrcp.f32 %v3786_v57 }
0x1b13   :  { %v4066_v16 = vpop.permute.xlu1 %4065 }
0x1b1a   :  { %v6636_v35 = vpop.eup %6635 }
0x1b1b   :  { %v3796_v60 = vmul.f32 %v6636_v35, %v6628_v61 }
0x1b1d   :  { %5848 = vmatprep.mubr.msk.f32.mxu0 %vm442_vm7, %v3796_v60 }
0x1b1e   :  { %5849 = vmatmul.mubr.msk.f32.vlgmr.msra.gmra.mrb[46].mxu0 %vm442_vm7, %v3797_v34 }
0x1b1f   :  { %6251 = vmatpush3.bf16.xpose.msk.msra.mxu0 %vm7082_vm8, %v6246_v18  ;;  %5862 = vmatprep.mubr.msk.f32.mxu0 %vm442_vm7, %v4064_v63 }
0x1b26   :  { %5863 = vmatmul.mubr.msk.f32.vlgmr.msra.gmra.mrb[48].mxu0 %vm442_vm7, %v4066_v16 }
0x1bb0   :  { %v5843_v3 = vpop.f32.mrb[38].mxu1 }
0x1bb1   :  { %v3876_v53 = vpop.f32.mrb[39].mxu1 }
0x1bdb   :  { %v5857_v37 = vpop.f32.mrb[40].mxu1 }
0x1bdc   :  { %v4155_v56 = vsel %vm7112_vm12, %v5857_v37, -3.4028235e+38  ;;  %v4054_v23 = vpop.f32.mrb[41].mxu1 }
0x1bdd   :  { %v4161_v4 = vsel %vm442_vm7, %v4155_v56, -inf  ;;  %v4154_v36 = vsel %vm7112_vm12, %v4054_v23, -3.4028235e+38  ;;  %v5252_v23 = vld [vmem:[%s8047_s8 + $0x48] sm:$0xff] }
0x1bde   :  { %v4158_v33 = vsel %vm442_vm7, %v4154_v36, -inf  ;;  %4162 = vmax.xlane.f32.xlu1 %v4161_v4  ;;  %v5253_v4 = vld [vmem:[%s8047_s8 + $0x50] sm:$0xff] }
0x1bdf   :  { %4159 = vmax.xlane.f32.xlu0 %v4158_v33  ;;  %v5254_v33 = vld [vmem:[%s8047_s8 + $0x58] sm:$0xff] }
0x1bf1   :  { %v7779_v51 = vpop.f32.mrb[46].mxu0 }
0x1bf2   :  { %v7781_v9 = vpop.f32.mrb[47].mxu0 }
0x1bf9   :  { %v5864_v10 = vpop.f32.mrb[48].mxu0 }
0x1bfa   :  { %v4145_v25 = vpop.f32.mrb[49].mxu0  ;;  %v4157_v14 = vsel %vm7108_vm11, %v5864_v10, -3.4028235e+38  ;;  %v6264_v10 = vpack.c.bf16 %v5254_v33, %v5253_v4 }
0x1bfb   :  { %v4156_v52 = vsel %vm7108_vm11, %v4145_v25, -3.4028235e+38  ;;  %v4167_v48 = vsel %vm442_vm7, %v4157_v14, -inf  ;;  %v5255_v25 = vld [vmem:[%s8047_s8 + $0x60] sm:$0xff] }
0x1bfc   :  { %v4164_v61 = vsel %vm442_vm7, %v4156_v52, -inf }
0x1bfd   :  { %4165 = vmax.xlane.f32.xlu0 %v4164_v61 }
0x1c01   :  { %4168 = vmax.xlane.f32.xlu0 %v4167_v48  ;;  %v5258_v48 = vld [vmem:[%s8047_s8 + $0x78] sm:$0xff] }
0x1c6b   :  { %v4163_v31 = vpop.xlane.xlu1 %4162 }
0x1c6c   :  { %v4171_v0 = vsub.f32 %v4155_v56, %v4163_v31  ;;  %v4160_v12 = vpop.xlane.xlu0 %4159  ;;  %v5251_v56 = vld [vmem:[%s8047_s8 + $0x40] sm:$0xff] }
0x1c6d   :  { %v4170_v11 = vsub.f32 %v4154_v36, %v4160_v12  ;;  %v6260_v36 = vpack.c.bf16 %v5252_v23, %v5251_v56 }
0x1c6e   :  { %v4176_v21 = vmul.f32 1.442695, %v4171_v0 }
0x1c6f   :  { %v4174_v54 = vmul.f32 1.442695, %v4170_v11 }
0x1c70   :  { %6637 = vpow2.f32 %v4176_v21 }
0x1c71   :  { %6639 = vpow2.f32 %v4174_v54 }
0x1c7a   :  { %v6638_v27 = vpop.eup %6637 }
0x1c7b   :  { %v6640_v30 = vpop.eup %6639  ;;  %v4185_v38 = vsel %vm442_vm7, %v6638_v27, 0.0 }
0x1c7c   :  { %4186 = vadd.xlane.f32.xlu0 %v4185_v38  ;;  %v4182_v45 = vsel %vm442_vm7, %v6640_v30, 0.0 }
0x1c7d   :  { %4183 = vadd.xlane.f32.xlu1 %v4182_v45 }
0x1c8a   :  { %v4166_v39 = vpop.xlane.xlu0 %4165 }
0x1c8b   :  { %v4172_v41 = vsub.f32 %v4156_v52, %v4166_v39  ;;  %v5256_v52 = vld [vmem:[%s8047_s8 + $0x68] sm:$0xff] }
0x1c8c   :  { %v6268_v61 = vpack.c.bf16 %v5256_v52, %v5255_v25 }
0x1c8d   :  { %v4178_v22 = vmul.f32 1.442695, %v4172_v41 }
0x1c8e   :  { %v4169_v62 = vpop.xlane.xlu0 %4168 }
0x1c8f   :  { %6641 = vpow2.f32 %v4178_v22  ;;  %v4173_v5 = vsub.f32 %v4157_v14, %v4169_v62  ;;  %v5257_v14 = vld [vmem:[%s8047_s8 + $0x70] sm:$0xff] }
0x1c90   :  { %v6272_v31 = vpack.c.bf16 %v5258_v48, %v5257_v14 }
0x1c91   :  { %v4180_v43 = vmul.f32 1.442695, %v4173_v5 }
0x1c93   :  { %6643 = vpow2.f32 %v4180_v43 }
0x1c99   :  { %v6642_v42 = vpop.eup %6641 }
0x1c9a   :  { %v4188_v47 = vsel %vm442_vm7, %v6642_v42, 0.0 }
0x1c9b   :  { %4189 = vadd.xlane.f32.xlu1 %v4188_v47 }
0x1c9d   :  { %v6644_v49 = vpop.eup %6643 }
0x1c9e   :  { %v4191_v50 = vsel %vm442_vm7, %v6644_v49, 0.0 }
0x1c9f   :  { %4192 = vadd.xlane.f32.xlu0 %v4191_v50 }
0x1cac   :  { %6484 = vrot.lane.b32.xlu1 %v7583_v24, %s6736_s0 }
0x1cb0   :  { %4380 = vrot.lane.b32.xlu1 %v7719_v1, %s6735_s30 }
0x1cb4   :  { %4382 = vrot.lane.b32.xlu1 %v7717_v2, %s6735_s30 }
0x1cb5   :  { %6489 = vrot.lane.b32.xlu0 %v7599_v20, %s6736_s0 }
0x1cb8   :  { %4398 = vrot.lane.b32.xlu1 %v5843_v3, %s6733_s4 }
0x1cb9   :  { %4396 = vrot.lane.b32.xlu0 %v3876_v53, %s6733_s4 }
0x1d09   :  { %v4187_v24 = vpop.xlane.xlu0 %4186 }
0x1d0a   :  { %v4184_v44 = vpop.xlane.xlu1 %4183 }
0x1d0b   :  { %6645 = vrcp.f32 %v4184_v44 }
0x1d0c   :  { %6647 = vrcp.f32 %v4187_v24 }
0x1d15   :  { %v6646_v17 = vpop.eup %6645 }
0x1d16   :  { %v4198_v18 = vmul.f32 %v6646_v17, %v6640_v30  ;;  %v6648_v57 = vpop.eup %6647 }
0x1d17   :  { %v4199_v63 = vmul.f32 %v6648_v57, %v6638_v27 }
0x1d18   :  { %5869 = vmatprep.mubr.msk.f32.mxu1 %vm442_vm7, %v4198_v18 }
0x1d28   :  { %v4190_v26 = vpop.xlane.xlu1 %4189 }
0x1d29   :  { %6649 = vrcp.f32 %v4190_v26 }
0x1d2c   :  { %v6485_v1 = vpop.permute.xlu1 %6484  ;;  %v4193_v29 = vpop.xlane.xlu0 %4192 }
0x1d2d   :  { %v6487_v2 = vunpack.i.h.bf16 %v6485_v1  ;;  %v6486_v8 = vunpack.i.l.bf16 %v6485_v1  ;;  %6651 = vrcp.f32 %v4193_v29 }
0x1d2f   :  { %v6252_v20 = vpack.c.bf16 %v6487_v2, %v6486_v8 }
0x1d30   :  { %v6490_v55 = vpop.permute.xlu0 %6489  ;;  %v4381_v54 = vpop.permute.xlu1 %4380 }
0x1d31   :  { %v6492_v35 = vunpack.i.h.bf16 %v6490_v55  ;;  %v6491_v60 = vunpack.i.l.bf16 %v6490_v55  ;;  %6253 = vmatprep.subr.bf16.mxu1 %v6252_v20 }
0x1d32   :  { %6255 = vmatpush3.bf16.msra.mxu1 %v6252_v20 }
0x1d33   :  { %v6650_v34 = vpop.eup %6649  ;;  %v6256_v16 = vpack.c.bf16 %v6492_v35, %v6491_v60  ;;  %6261 = vmatprep.subr.bf16.mxu1 %v6260_v36 }
0x1d34   :  { %v4200_v3 = vmul.f32 %v6650_v34, %v6642_v42  ;;  %v4383_v27 = vpop.permute.xlu1 %4382  ;;  %v4397_v38 = vpop.permute.xlu0 %4396 }
0x1d35   :  { %5870 = vmatmul.mubr.msk.f32.vlgmr.msra.gmra.mrb[42].mxu1 %vm442_vm7, %v4199_v63  ;;  %6257 = vmatprep.subr.bf16.mxu0 %v6256_v16 }
0x1d36   :  { %6259 = vmatpush3.bf16.msra.mxu0 %v6256_v16  ;;  %5876 = vmatprep.mubr.msk.f32.mxu0 %vm442_vm7, %v4200_v3 }
0x1d37   :  { %v6652_v53 = vpop.eup %6651  ;;  %6263 = vmatpush3.bf16.msra.mxu1 %v6260_v36 }
0x1d38   :  { %v4201_v37 = vmul.f32 %v6652_v53, %v6644_v49  ;;  %6265 = vmatprep.subr.bf16.mxu1 %v6264_v10  ;;  %v4399_v30 = vpop.permute.xlu1 %4398 }
0x1d3a   :  { %5877 = vmatmul.mubr.msk.f32.vlgmr.msra.gmra.mrb[50].mxu0 %vm442_vm7, %v4201_v37 }
0x1d3b   :  { %6267 = vmatpush3.bf16.msra.mxu1 %v6264_v10 }
0x1d3c   :  { %6269 = vmatprep.subr.bf16.mxu1 %v6268_v61 }
0x1d3f   :  { %6271 = vmatpush3.bf16.msra.mxu1 %v6268_v61 }
0x1d40   :  { %6273 = vmatprep.subr.bf16.mxu1 %v6272_v31 }
0x1d43   :  { %6275 = vmatpush3.bf16.msra.mxu1 %v6272_v31 }
0x1e08   :  { %v5871_v0 = vpop.f32.mrb[42].mxu1 }
0x1e09   :  { %4414 = vrot.lane.b32.xlu1 %v5871_v0, %s6732_s3  ;;  %v4280_v12 = vpop.f32.mrb[43].mxu1 }
0x1e0a   :  { %4412 = vrot.lane.b32.xlu0 %v4280_v12, %s6732_s3 }
0x1e0d   :  { %4386 = vrot.lane.b32.xlu1 %v7727_v46, %s6735_s30  ;;  %v5878_v11 = vpop.f32.mrb[50].mxu0  ;;  %v4424_v46 = vsel %vm442_vm7, %v7669_v32, %v4381_v54 }
0x1e0e   :  { %4384 = vrot.lane.b32.xlu0 %v7729_v15, %s6735_s30  ;;  %v4367_v21 = vpop.f32.mrb[51].mxu0  ;;  %v4425_v15 = vsel %vm442_vm7, %v7667_v6, %v4383_v27  ;;  %v4633_v27 = vld [vmem:[#allocation2 + $0x50] sm:$0xff] }
0x1e11   :  { %4402 = vrot.lane.b32.xlu1 %v7779_v51, %s6733_s4  ;;  %v4428_v51 = vsel %vm2107_vm13, %v4424_v46, %v4397_v38  ;;  %v4635_v46 = vld [vmem:[#allocation2 + $0x60] sm:$0xff] }
0x1e12   :  { %4400 = vrot.lane.b32.xlu0 %v7781_v9, %s6733_s4  ;;  %v4429_v9 = vsel %vm2107_vm13, %v4425_v15, %v4399_v30  ;;  %v4634_v30 = vld [vmem:[#allocation2 + $0x58] sm:$0xff] }
0x1e13   :  { %v6280_v38 = vpack.c.bf16 %v4634_v30, %v4633_v27  ;;  %v5270_v27 = vld [vmem:[%s8052_s13 + $0x1] ss:$0 sm:$0xff] }
0x1e15   :  { %4418 = vrot.lane.b32.xlu1 %v5878_v11, %s6732_s3  ;;  %v4631_v11 = vld [vmem:[#allocation2 + $0x40] sm:$0xff] }
0x1e16   :  { %4416 = vrot.lane.b32.xlu0 %v4367_v21, %s6732_s3  ;;  %v4632_v21 = vld [vmem:[#allocation2 + $0x48] sm:$0xff] }
0x1e17   :  { %v6276_v54 = vpack.c.bf16 %v4632_v21, %v4631_v11  ;;  %v5289_v11 = vld [vmem:[%s8053_s14 + $0xf0] sm:$0xff]  ;;  %v5290_v21 = vld [vmem:[%s8053_s14 + $0xf8] sm:$0xff] }
0x1e19   :  { %6277 = vmatprep.subr.bf16.mxu0 %v6276_v54 }
0x1e1a   :  { %6279 = vmatpush3.bf16.msra.mxu0 %v6276_v54  ;;  %v6320_v54 = vpack.c.bf16 %v5290_v21, %v5289_v11 }
0x1e1b   :  { %6281 = vmatprep.subr.bf16.mxu0 %v6280_v38 }
0x1e1e   :  { %6283 = vmatpush3.bf16.msra.mxu0 %v6280_v38 }
0x1e7b   :  { %v4415_v45 = vpop.permute.xlu1 %4414 }
0x1e7c   :  { %v4413_v39 = vpop.permute.xlu0 %4412  ;;  %v4433_v22 = vsel %vm2112_vm14, %v4429_v9, %v4415_v45  ;;  %v4636_v45 = vld [vmem:[#allocation2 + $0x68] sm:$0xff] }
0x1e7d   :  { %v4432_v41 = vsel %vm2112_vm14, %v4428_v51, %v4413_v39  ;;  %v6284_v15 = vpack.c.bf16 %v4636_v45, %v4635_v46  ;;  %v4637_v51 = vld [vmem:[#allocation2 + $0x70] sm:$0xff]  ;;  %v4638_v39 = vld [vmem:[#allocation2 + $0x78] sm:$0xff] }
0x1e7e   :  { %5895 = vmatprep.mubr.msk.f32.mxu1 %vm231_vm6, %v4432_v41  ;;  %v6288_v9 = vpack.c.bf16 %v4638_v39, %v4637_v51  ;;  %v5275_v41 = vld [vmem:[%s8053_s14 + $0x80] sm:$0xff] }
0x1e7f   :  { %v4387_v62 = vpop.permute.xlu1 %4386  ;;  %5896 = vmatmul.mubr.msk.f32.vlgmr.msra.gmra.mrb[44].mxu1 %vm231_vm6, %v4433_v22  ;;  %6285 = vmatprep.subr.bf16.mxu0 %v6284_v15  ;;  %v5276_v22 = vld [vmem:[%s8053_s14 + $0x88] sm:$0xff] }
0x1e80   :  { %v4385_v5 = vpop.permute.xlu0 %4384  ;;  %v4427_v47 = vsel %vm442_vm7, %v7671_v58, %v4387_v62  ;;  %6287 = vmatpush3.bf16.msra.mxu0 %v6284_v15  ;;  %v6292_v62 = vpack.c.bf16 %v5276_v22, %v5275_v41 }
0x1e81   :  { %v4426_v6 = vsel %vm442_vm7, %v7673_v59, %v4385_v5  ;;  %v5260_v59 = vld [vmem:[%s8048_s9 + $0x1] ss:$0 sm:$0xff]  ;;  %6289 = vmatprep.subr.bf16.mxu0 %v6288_v9 }
0x1e82   :  { %6293 = vmatprep.subr.bf16.mxu1 %v6292_v62 }
0x1e83   :  { %v4403_v32 = vpop.permute.xlu1 %4402  ;;  %6295 = vmatpush3.bf16.msra.mxu1 %v6292_v62 }
0x1e84   :  { %v4401_v43 = vpop.permute.xlu0 %4400  ;;  %v4431_v44 = vsel %vm2107_vm13, %v4427_v47, %v4403_v32  ;;  %6291 = vmatpush3.bf16.msra.mxu0 %v6288_v9 }
0x1e85   :  { %v4430_v49 = vsel %vm2107_vm13, %v4426_v6, %v4401_v43 }
0x1e87   :  { %v4419_v42 = vpop.permute.xlu1 %4418 }
0x1e88   :  { %v4417_v50 = vpop.permute.xlu0 %4416  ;;  %v4435_v18 = vsel %vm2112_vm14, %v4431_v44, %v4419_v42 }
0x1e89   :  { %v4434_v17 = vsel %vm2112_vm14, %v4430_v49, %v4417_v50 }
0x1e8a   :  { %5898 = vmatprep.mubr.msk.f32.mxu1 %vm231_vm6, %v4434_v17  ;;  %v5267_v17 = vld [vmem:[%s8049_s10 + $0x1] ss:$0 sm:$0xff] }
0x1e8b   :  { %5899 = vmatmul.mubr.msk.f32.gmra.mrb[46].mxu1 %vm231_vm6, %v4435_v18 }
0x1f52   :  { %v5897_v24 = vpop.f32.mrb[44].mxu1 }
0x1f53   :  { %v4537_v26 = vadd.f32 %v5897_v24, %v5260_v59  ;;  %v4531_v58 = vpop.f32.mrb[45].mxu1 }
0x1f54   :  { %v4532_v1 = vadd.f32 %v5260_v59, %v4531_v58 }
0x1f55   :  { %v4551_v29 = vadd.f32 %v4537_v26, %v7551_v28 }
0x1f56   :  { %v4550_v2 = vadd.f32 %v4532_v1, %v7546_v40 }
0x1f57   :  { %v4561_v8 = vsel %vm231_vm6, %v4551_v29, 0.0 }
0x1f58   :  { %4562 = vadd.xlane.f32.xlu1 %v4561_v8  ;;  %v4558_v20 = vsel %vm231_vm6, %v4550_v2, 0.0 }
0x1f59   :  { %4559 = vadd.xlane.f32.xlu0 %v4558_v20 }
0x1f5e   :  { %v5900_v57 = vpop.f32.mrb[46].mxu1 }
0x1f5f   :  { %v4541_v55 = vpop.f32.mrb[47].mxu1  ;;  %v4547_v35 = vadd.f32 %v5900_v57, %v5260_v59 }
0x1f60   :  { %v4542_v60 = vadd.f32 %v5260_v59, %v4541_v55 }
0x1f61   :  { %v4553_v63 = vadd.f32 %v4547_v35, %v7563_v19 }
0x1f62   :  { %v4552_v34 = vadd.f32 %v4542_v60, %v7558_v13 }
0x1f63   :  { %v4567_v28 = vsel %vm231_vm6, %v4553_v63, 0.0 }
0x1f64   :  { %v4564_v16 = vsel %vm231_vm6, %v4552_v34, 0.0 }
0x1f65   :  { %4565 = vadd.xlane.f32.xlu0 %v4564_v16 }
0x1f69   :  { %4568 = vadd.xlane.f32.xlu0 %v4567_v28 }
0x1fe5   :  { %v4563_v40 = vpop.xlane.xlu1 %4562 }
0x1fe6   :  { %v4571_v3 = vmul.f32 0.015625, %v4563_v40  ;;  %v4560_v53 = vpop.xlane.xlu0 %4559 }
0x1fe7   :  { %v4570_v37 = vmul.f32 0.015625, %v4560_v53  ;;  %v5277_v53 = vld [vmem:[%s8053_s14 + $0x90] sm:$0xff] }
0x1fe8   :  { %v4575_v56 = vsub.f32 %v4551_v29, %v4571_v3  ;;  %v5268_v29 = vld [vmem:[%s8050_s11 + $0x1] ss:$0 sm:$0xff] }
0x1fe9   :  { %v4574_v23 = vsub.f32 %v4550_v2, %v4570_v37  ;;  %v5278_v37 = vld [vmem:[%s8053_s14 + $0x98] sm:$0xff] }
0x1fea   :  { %v4579_v4 = vmul.f32 %v4575_v56, %v4575_v56 }
0x1feb   :  { %v4578_v36 = vmul.f32 %v4574_v23, %v4574_v23 }
0x1fec   :  { %v4585_v33 = vsel %vm231_vm6, %v4579_v4, 0.0  ;;  %v5280_v4 = vld [vmem:[%s8053_s14 + $0xa8] sm:$0xff] }
0x1fed   :  { %4586 = vadd.xlane.f32.xlu0 %v4585_v33  ;;  %v4582_v13 = vsel %vm231_vm6, %v4578_v36, 0.0  ;;  %v5281_v33 = vld [vmem:[%s8053_s14 + $0xb0] sm:$0xff] }
0x1fee   :  { %4583 = vadd.xlane.f32.xlu1 %v4582_v13  ;;  %v5282_v13 = vld [vmem:[%s8053_s14 + $0xb8] sm:$0xff] }
0x1ff2   :  { %v4566_v19 = vpop.xlane.xlu0 %4565 }
0x1ff3   :  { %v4572_v10 = vmul.f32 0.015625, %v4566_v19  ;;  %v6304_v19 = vpack.c.bf16 %v5282_v13, %v5281_v33  ;;  %v5292_v13 = vld [vmem:[%s8054_s15 + $0x1] ss:$0 sm:$0xff] }
0x1ff5   :  { %v7876_v25 = vsub.f32 %v4552_v34, %v4572_v10  ;;  %v5283_v10 = vld [vmem:[%s8053_s14 + $0xc0] sm:$0xff] }
0x1ff6   :  { %v4569_v52 = vpop.xlane.xlu0 %4568 }
0x1ff7   :  { %v4573_v61 = vmul.f32 0.015625, %v4569_v52  ;;  %v4580_v14 = vmul.f32 %v7876_v25, %v7876_v25 }
0x1ff9   :  { %v7880_v48 = vsub.f32 %v4553_v63, %v4573_v61  ;;  %v4588_v31 = vsel %vm231_vm6, %v4580_v14, 0.0  ;;  %v5285_v61 = vld [vmem:[%s8053_s14 + $0xd0] sm:$0xff]  ;;  %v5286_v14 = vld [vmem:[%s8053_s14 + $0xd8] sm:$0xff] }
0x1ffa   :  { %4589 = vadd.xlane.f32.xlu1 %v4588_v31  ;;  %v5287_v31 = vld [vmem:[%s8053_s14 + $0xe0] sm:$0xff] }
0x1ffb   :  { %v4581_v0 = vmul.f32 %v7880_v48, %v7880_v48 }
0x1ffd   :  { %v4591_v12 = vsel %vm231_vm6, %v4581_v0, 0.0  ;;  %v5288_v0 = vld [vmem:[%s8053_s14 + $0xe8] sm:$0xff] }
0x1ffe   :  { %4592 = vadd.xlane.f32.xlu0 %v4591_v12  ;;  %v6316_v12 = vpack.c.bf16 %v5288_v0, %v5287_v31 }
0x207a   :  { %v4587_v5 = vpop.xlane.xlu0 %4586 }
0x207b   :  { %v4595_v32 = vmul.f32 0.015625, %v4587_v5  ;;  %v4584_v43 = vpop.xlane.xlu1 %4583 }
0x207c   :  { %v4594_v6 = vmul.f32 0.015625, %v4584_v43 }
0x207d   :  { %v4599_v42 = vadd.f32 1e-12, %v4595_v32 }
0x207e   :  { %v4598_v47 = vadd.f32 1e-12, %v4594_v6 }
0x207f   :  { %6653 = vrsqrt.f32 %v4599_v42 }
0x2080   :  { %6655 = vrsqrt.f32 %v4598_v47 }
0x2087   :  { %v4590_v49 = vpop.xlane.xlu1 %4589 }
0x2088   :  { %v4596_v50 = vmul.f32 0.015625, %v4590_v49 }
0x2089   :  { %v6654_v44 = vpop.eup %6653 }
0x208a   :  { %v6656_v18 = vpop.eup %6655  ;;  %v4607_v59 = vmul.f32 %v6654_v44, %v4575_v56  ;;  %v4600_v24 = vadd.f32 1e-12, %v4596_v50  ;;  %v6296_v56 = vpack.c.bf16 %v5278_v37, %v5277_v53 }
0x208b   :  { %v4593_v26 = vpop.xlane.xlu0 %4592  ;;  %v4606_v58 = vmul.f32 %v6656_v18, %v4574_v23  ;;  %v5279_v23 = vld [vmem:[%s8053_s14 + $0xa0] sm:$0xff] }
0x208c   :  { %6657 = vrsqrt.f32 %v4600_v24  ;;  %v4597_v1 = vmul.f32 0.015625, %v4593_v26  ;;  %v4617_v2 = vmul.f32 %v5267_v17, %v4607_v59  ;;  %6297 = vmatprep.subr.bf16.mxu1 %v6296_v56  ;;  %v6300_v36 = vpack.c.bf16 %v5280_v4, %v5279_v23 }
0x208d   :  { %v4616_v8 = vmul.f32 %v5267_v17, %v4606_v58  ;;  %6299 = vmatpush3.bf16.msra.mxu1 %v6296_v56 }
0x208e   :  { %v4601_v20 = vadd.f32 1e-12, %v4597_v1  ;;  %v7900_v55 = vadd.f32 %v5268_v29, %v4617_v2  ;;  %6301 = vmatprep.subr.bf16.mxu1 %v6300_v36 }
0x208f   :  { %v7898_v57 = vadd.f32 %v5268_v29, %v4616_v8 }
0x2090   :  { %6659 = vrsqrt.f32 %v4601_v20 }
0x2091   :  { %5917 = vmatprep.mubr.msk.f32.mxu0 %vm231_vm6, %v7898_v57  ;;  %6303 = vmatpush3.bf16.msra.mxu1 %v6300_v36 }
0x2092   :  { %5918 = vmatmul.mubr.msk.f32.vlgmr.msra.gmra.mrb[52].mxu0 %vm231_vm6, %v7900_v55  ;;  %6305 = vmatprep.subr.bf16.mxu1 %v6304_v19 }
0x2095   :  { %6307 = vmatpush3.bf16.msra.mxu1 %v6304_v19 }
0x2096   :  { %v6658_v35 = vpop.eup %6657 }
0x2097   :  { %v4608_v60 = vmul.f32 %v6658_v35, %v7876_v25  ;;  %v5284_v25 = vld [vmem:[%s8053_s14 + $0xc8] sm:$0xff] }
0x2098   :  { %v6308_v52 = vpack.c.bf16 %v5284_v25, %v5283_v10 }
0x2099   :  { %v4618_v34 = vmul.f32 %v5267_v17, %v4608_v60 }
0x209a   :  { %v6660_v63 = vpop.eup %6659  ;;  %6309 = vmatprep.subr.bf16.mxu1 %v6308_v52 }
0x209b   :  { %v7907_v16 = vadd.f32 %v5268_v29, %v4618_v34  ;;  %v4609_v28 = vmul.f32 %v6660_v63, %v7880_v48  ;;  %6311 = vmatpush3.bf16.msra.mxu1 %v6308_v52  ;;  %v6312_v48 = vpack.c.bf16 %v5286_v14, %v5285_v61 }
0x209d   :  { %5920 = vmatprep.mubr.msk.f32.mxu0 %vm231_vm6, %v7907_v16  ;;  %v4619_v40 = vmul.f32 %v5267_v17, %v4609_v28  ;;  %6313 = vmatprep.subr.bf16.mxu1 %v6312_v48 }
0x209f   :  { %v7912_v3 = vadd.f32 %v5268_v29, %v4619_v40  ;;  %6315 = vmatpush3.bf16.msra.mxu1 %v6312_v48 }
0x20a0   :  { %6317 = vmatprep.subr.bf16.mxu1 %v6316_v12 }
0x20a1   :  { %5921 = vmatmul.mubr.msk.f32.gmra.mrb[54].mxu0 %vm231_vm6, %v7912_v3 }
0x20a2   :  { %5977 = vmatprep.mubr.msk.f32.mxu0 %vm6738_vm15, %v6729_v7  ;;  %v4998_v7 = vld [vmem:[%s8057_s18 + $0x38] sm:$0xff] }
0x20a3   :  { %6319 = vmatpush3.bf16.msra.mxu1 %v6316_v12 }
0x20a4   :  { %6321 = vmatprep.subr.bf16.mxu1 %v6320_v54 }
0x20a7   :  { %6323 = vmatpush3.bf16.msra.mxu1 %v6320_v54 }
0x2165   :  { %v5919_v30 = vpop.f32.mrb[52].mxu0 }
0x2166   :  { %v4731_v38 = vadd.f32 %v5919_v30, %v5270_v27  ;;  %v4725_v46 = vpop.f32.mrb[53].mxu0 }
0x2167   :  { %v4726_v45 = vadd.f32 %v5270_v27, %v4725_v46 }
0x2168   :  { %v4749_v15 = vmul.f32 0.044715, %v4731_v38  ;;  %v4745_v35 = vmul.f32 0.5, %v4731_v38 }
0x2169   :  { %v4748_v51 = vmul.f32 0.044715, %v4726_v45  ;;  %v4744_v2 = vmul.f32 0.5, %v4726_v45 }
0x216a   :  { %v4753_v39 = vmul.f32 %v4749_v15, %v4731_v38 }
0x216b   :  { %v4752_v9 = vmul.f32 %v4748_v51, %v4726_v45 }
0x216c   :  { %v4757_v41 = vmul.f32 %v4753_v39, %v4731_v38 }
0x216d   :  { %v4756_v22 = vmul.f32 %v4752_v9, %v4726_v45 }
0x216e   :  { %v4761_v62 = vadd.f32 %v4757_v41, %v4731_v38 }
0x216f   :  { %v4760_v5 = vadd.f32 %v4756_v22, %v4726_v45 }
0x2170   :  { %v4765_v32 = vmul.f32 0.7978846, %v4761_v62 }
0x2171   :  { %v4764_v43 = vmul.f32 0.7978846, %v4760_v5 }
0x2172   :  { %6661 = vtanh.f32 %v4765_v32 }
0x2173   :  { %6663 = vtanh.f32 %v4764_v43 }
0x2174   :  { %v5922_v6 = vpop.f32.mrb[54].mxu0 }
0x2175   :  { %v4741_v42 = vadd.f32 %v5922_v6, %v5270_v27  ;;  %v4735_v47 = vpop.f32.mrb[55].mxu0 }
0x2176   :  { %v4736_v49 = vadd.f32 %v5270_v27, %v4735_v47 }
0x2177   :  { %v4751_v50 = vmul.f32 0.044715, %v4741_v42  ;;  %v4747_v4 = vmul.f32 0.5, %v4741_v42 }
0x2178   :  { %v4750_v44 = vmul.f32 0.044715, %v4736_v49  ;;  %v4746_v56 = vmul.f32 0.5, %v4736_v49 }
0x2179   :  { %v4755_v17 = vmul.f32 %v4751_v50, %v4741_v42  ;;  %v4991_v50 = vld [vmem:[%s8057_s18] sm:$0xff] }
0x217a   :  { %v4754_v18 = vmul.f32 %v4750_v44, %v4736_v49  ;;  %v4992_v44 = vld [vmem:[%s8057_s18 + $0x8] sm:$0xff] }
0x217b   :  { %v4759_v59 = vmul.f32 %v4755_v17, %v4741_v42  ;;  %v4993_v17 = vld [vmem:[%s8057_s18 + $0x10] sm:$0xff] }
0x217c   :  { %v6662_v24 = vpop.eup %6661  ;;  %v4758_v26 = vmul.f32 %v4754_v18, %v4736_v49  ;;  %v6737_v18 = vmov 0.0|0.0  }
0x217d   :  { %v6664_v58 = vpop.eup %6663  ;;  %v4773_v1 = vadd.f32 1.0, %v6662_v24  ;;  %v4763_v29 = vadd.f32 %v4759_v59, %v4741_v42  ;;  %6324 = vmatprep.subr.bf16.mxu0 %v6737_v18  ;;  %v6325_v59 = vpack.c.bf16 %v4992_v44, %v4991_v50  ;;  %v4994_v24 = vld [vmem:[%s8057_s18 + $0x18] sm:$0xff]  ;;  %v5297_v50 = vld [vmem:[%s8058_s19] ss:$0 sm:$0xff] }
0x217e   :  { %v4772_v8 = vadd.f32 1.0, %v6664_v58  ;;  %v4762_v20 = vadd.f32 %v4758_v26, %v4736_v49  ;;  %v6328_v26 = vpack.c.bf16 %v4994_v24, %v4993_v17  ;;  %v4995_v58 = vld [vmem:[%s8057_s18 + $0x20] sm:$0xff] }
0x217f   :  { %v4767_v60 = vmul.f32 0.7978846, %v4763_v29  ;;  %v4777_v28 = vmul.f32 %v4773_v1, %v4745_v35  ;;  %6326 = vmatpush3.bf16.msra.mxu0 %v6325_v59  ;;  %v4996_v1 = vld [vmem:[%s8057_s18 + $0x28] sm:$0xff] }
0x2180   :  { %v4776_v34 = vmul.f32 %v4772_v8, %v4744_v2  ;;  %v4766_v63 = vmul.f32 0.7978846, %v4762_v20  ;;  %6327 = vmatprep.subr.bf16.mxu0 %v6737_v18  ;;  %v6331_v29 = vpack.c.bf16 %v4996_v1, %v4995_v58  ;;  %v4997_v2 = vld [vmem:[%s8057_s18 + $0x30] sm:$0xff] }
0x2181   :  { %6665 = vtanh.f32 %v4767_v60  ;;  %v6334_v8 = vpack.c.bf16 %v4998_v7, %v4997_v2 }
0x2182   :  { %5955 = vmatprep.mubr.f32.mxu1 %v4776_v34  ;;  %6667 = vtanh.f32 %v4766_v63 }
0x2183   :  { %5956 = vmatmul.mubr.f32.vlgmr.msra.gmra.mrb[48].mxu1 %v4777_v28  ;;  %6329 = vmatpush3.bf16.msra.mxu0 %v6328_v26 }
0x2184   :  { %6330 = vmatprep.subr.bf16.mxu0 %v6737_v18 }
0x2187   :  { %6332 = vmatpush3.bf16.msra.mxu0 %v6331_v29 }
0x2188   :  { %6333 = vmatprep.subr.bf16.mxu0 %v6737_v18 }
0x218b   :  { %v6666_v40 = vpop.eup %6665  ;;  %6335 = vmatpush3.bf16.msra.mxu0 %v6334_v8 }
0x218c   :  { %v6668_v53 = vpop.eup %6667  ;;  %v4775_v37 = vadd.f32 1.0, %v6666_v40 }
0x218d   :  { %v4774_v23 = vadd.f32 1.0, %v6668_v53  ;;  %v5295_v53 = vld [vmem:[%s8055_s16 + $0x1] ss:$0 sm:$0xff] }
0x218e   :  { %v4779_v33 = vmul.f32 %v4775_v37, %v4747_v4 }
0x218f   :  { %v4778_v36 = vmul.f32 %v4774_v23, %v4746_v56 }
0x2191   :  { %5958 = vmatprep.mubr.f32.mxu1 %v4778_v36 }
0x2192   :  { %5959 = vmatmul.mubr.f32.gmra.mrb[50].mxu1 %v4779_v33  ;;  %v5296_v33 = vld [vmem:[%s8056_s17 + $0x1] ss:$0 sm:$0xff] }
0x2256   :  { %v5957_v19 = vpop.f32.mrb[48].mxu1 }
0x2257   :  { %v4877_v10 = vadd.f32 %v5957_v19, %v5292_v13  ;;  %v4871_v25 = vpop.f32.mrb[49].mxu1 }
0x2258   :  { %v4872_v52 = vadd.f32 %v5292_v13, %v4871_v25 }
0x2259   :  { %v4891_v61 = vadd.f32 %v4877_v10, %v7900_v55 }
0x225a   :  { %v4890_v14 = vadd.f32 %v4872_v52, %v7898_v57 }
0x225b   :  { %v4901_v48 = vsel %vm231_vm6, %v4891_v61, 0.0 }
0x225c   :  { %4902 = vadd.xlane.f32.xlu0 %v4901_v48  ;;  %v4898_v31 = vsel %vm231_vm6, %v4890_v14, 0.0 }
0x225d   :  { %4899 = vadd.xlane.f32.xlu1 %v4898_v31 }
0x2265   :  { %v5960_v0 = vpop.f32.mrb[50].mxu1 }
0x2266   :  { %v4887_v12 = vadd.f32 %v5960_v0, %v5292_v13  ;;  %v4881_v11 = vpop.f32.mrb[51].mxu1 }
0x2267   :  { %v4882_v21 = vadd.f32 %v5292_v13, %v4881_v11 }
0x2268   :  { %v4893_v54 = vadd.f32 %v4887_v12, %v7912_v3 }
0x2269   :  { %v4892_v27 = vadd.f32 %v4882_v21, %v7907_v16 }
0x226a   :  { %v4907_v30 = vsel %vm231_vm6, %v4893_v54, 0.0 }
0x226b   :  { %4908 = vadd.xlane.f32.xlu0 %v4907_v30  ;;  %v4904_v55 = vsel %vm231_vm6, %v4892_v27, 0.0 }
0x226c   :  { %4905 = vadd.xlane.f32.xlu1 %v4904_v55 }
0x22e9   :  { %v4903_v57 = vpop.xlane.xlu0 %4902 }
0x22ea   :  { %v4911_v38 = vmul.f32 0.015625, %v4903_v57  ;;  %v4900_v46 = vpop.xlane.xlu1 %4899 }
0x22eb   :  { %v4910_v45 = vmul.f32 0.015625, %v4900_v46 }
0x22ec   :  { %v4915_v15 = vsub.f32 %v4891_v61, %v4911_v38 }
0x22ed   :  { %v4914_v51 = vsub.f32 %v4890_v14, %v4910_v45 }
0x22ee   :  { %v4919_v39 = vmul.f32 %v4915_v15, %v4915_v15 }
0x22ef   :  { %v4918_v9 = vmul.f32 %v4914_v51, %v4914_v51 }
0x22f0   :  { %v4925_v41 = vsel %vm231_vm6, %v4919_v39, 0.0 }
0x22f1   :  { %4926 = vadd.xlane.f32.xlu0 %v4925_v41  ;;  %v4922_v3 = vsel %vm231_vm6, %v4918_v9, 0.0 }
0x22f2   :  { %4923 = vadd.xlane.f32.xlu1 %v4922_v3 }
0x22f8   :  { %v4909_v16 = vpop.xlane.xlu0 %4908 }
0x22f9   :  { %v4913_v22 = vmul.f32 0.015625, %v4909_v16  ;;  %v4906_v62 = vpop.xlane.xlu1 %4905 }
0x22fa   :  { %v4912_v5 = vmul.f32 0.015625, %v4906_v62 }
0x22fb   :  { %v7974_v32 = vsub.f32 %v4893_v54, %v4913_v22 }
0x22fc   :  { %v7976_v43 = vsub.f32 %v4892_v27, %v4912_v5 }
0x22fd   :  { %v4921_v6 = vmul.f32 %v7974_v32, %v7974_v32 }
0x22fe   :  { %v4920_v42 = vmul.f32 %v7976_v43, %v7976_v43 }
0x22ff   :  { %v4931_v47 = vsel %vm231_vm6, %v4921_v6, 0.0 }
0x2300   :  { %4932 = vadd.xlane.f32.xlu0 %v4931_v47  ;;  %v4928_v49 = vsel %vm231_vm6, %v4920_v42, 0.0 }
0x2301   :  { %4929 = vadd.xlane.f32.xlu1 %v4928_v49 }
0x237e   :  { %v4927_v20 = vpop.xlane.xlu0 %4926 }
0x237f   :  { %v4935_v35 = vmul.f32 0.015625, %v4927_v20  ;;  %v4924_v60 = vpop.xlane.xlu1 %4923 }
0x2380   :  { %v4934_v34 = vmul.f32 0.015625, %v4924_v60 }
0x2381   :  { %v4939_v63 = vadd.f32 1e-12, %v4935_v35 }
0x2382   :  { %v4938_v28 = vadd.f32 1e-12, %v4934_v34 }
0x2383   :  { %6669 = vrsqrt.f32 %v4939_v63 }
0x2384   :  { %6671 = vrsqrt.f32 %v4938_v28 }
0x238d   :  { %v6670_v40 = vpop.eup %6669  ;;  %v4933_v37 = vpop.xlane.xlu0 %4932 }
0x238e   :  { %v6672_v56 = vpop.eup %6671  ;;  %v4947_v23 = vmul.f32 %v6670_v40, %v4915_v15  ;;  %v4937_v4 = vmul.f32 0.015625, %v4933_v37  ;;  %v4930_v36 = vpop.xlane.xlu1 %4929 }
0x238f   :  { %v4946_v13 = vmul.f32 %v6672_v56, %v4914_v51  ;;  %v4936_v19 = vmul.f32 0.015625, %v4930_v36 }
0x2390   :  { %v4957_v10 = vmul.f32 %v5295_v53, %v4947_v23  ;;  %v4941_v25 = vadd.f32 1e-12, %v4937_v4 }
0x2391   :  { %v4956_v52 = vmul.f32 %v5295_v53, %v4946_v13  ;;  %v4940_v61 = vadd.f32 1e-12, %v4936_v19 }
0x2392   :  { %v4967_v14 = vadd.f32 %v5296_v33, %v4957_v10  ;;  %6673 = vrsqrt.f32 %v4941_v25 }
0x2393   :  { %v4966_v48 = vadd.f32 %v5296_v33, %v4956_v52  ;;  %6675 = vrsqrt.f32 %v4940_v61 }
0x2394   :  { %v4971_v31 = vsel %vm231_vm6, %v4967_v14, 0.0 }
0x2395   :  { %v4970_v0 = vsel %vm231_vm6, %v4966_v48, 0.0 }
0x2396   :  { %v4972_v12 = vadd.f32 %v4971_v31, %v4970_v0 }
0x2398   :  { %v4973_v11 = vrot.slane %v4972_v12, 4 }
0x239a   :  { %v4974_v57 = vadd.f32 %v4973_v11, %v4972_v12 }
0x239c   :  { %v6674_v21 = vpop.eup %6673  ;;  %v4975_v51 = vrot.slane %v4974_v57, 2 }
0x239d   :  { %v6676_v54 = vpop.eup %6675  ;;  %v4949_v27 = vmul.f32 %v6674_v21, %v7974_v32 }
0x239e   :  { %v4948_v30 = vmul.f32 %v6676_v54, %v7976_v43  ;;  %v4976_v41 = vadd.f32 %v4975_v51, %v4974_v57 }
0x239f   :  { %v4959_v55 = vmul.f32 %v5295_v53, %v4949_v27 }
0x23a0   :  { %v4958_v38 = vmul.f32 %v5295_v53, %v4948_v30  ;;  %v4977_v22 = vrot.slane %v4976_v41, 1 }
0x23a1   :  { %v4969_v46 = vadd.f32 %v5296_v33, %v4959_v55 }
0x23a2   :  { %v4968_v45 = vadd.f32 %v5296_v33, %v4958_v38  ;;  %v4978_v32 = vadd.f32 %v4977_v22, %v4976_v41 }
0x23a3   :  { %v4980_v15 = vsel %vm231_vm6, %v4969_v46, 0.0 }
0x23a4   :  { %v4979_v39 = vsel %vm231_vm6, %v4968_v45, 0.0  ;;  %v4989_v42 = vmul.f32 0.0625, %v4978_v32 }
0x23a5   :  { %v4981_v9 = vadd.f32 %v4980_v15, %v4979_v39 }
0x23a7   :  { %v4982_v3 = vrot.slane %v4981_v9, 4 }
0x23a9   :  { %v4983_v16 = vadd.f32 %v4982_v3, %v4981_v9 }
0x23ab   :  { %v4984_v62 = vrot.slane %v4983_v16, 2 }
0x23ad   :  { %v4985_v5 = vadd.f32 %v4984_v62, %v4983_v16 }
0x23af   :  { %v4986_v6 = vrot.slane %v4985_v5, 1 }
0x23b1   :  { %v4987_v43 = vadd.f32 %v4986_v6, %v4985_v5 }
0x23b3   :  { %v4990_v47 = vmul.f32 0.0625, %v4987_v43 }
0x23b5   :  { %v5009_v49 = vsel %vm5008_vm0, %v4990_v47, %v4989_v42 }
0x23b6   :  { %5978 = vmatmul.mubr.msk.f32.vlgmr.msra.gmra.mrb[56].mxu0 %vm231_vm6, %v5009_v49 }
0x2489   :  { %v5078_v44 = vpop.f32.mrb[56].mxu0 }
0x248a   :  { %v5079_v17 = vadd.f32 %v5297_v50, %v5078_v44  ;;  %v5979_v18 = vpop.f32.mrb[57].mxu0 }
0x248c   :  { %5084 = vrot.lane.b32.xlu1 %v5079_v17, %s6730_s25 }
0x24fe   :  { %v5085_v59 = vpop.permute.xlu1 %5084 }
0x24ff   :  { %v5087_v24 = vsel %vm231_vm6, %v5009_v49, %v5085_v59 }
0x2500   :  { %5088 = vst [vmem:[#allocation5] sm:$0x3] %v5087_v24 }
0x2501   :  { %6710 = shalt.err (!%p6707_p12)
}
0x2502   :  { %s6711_s13 = scalar_lea.hbm %s8059_s20, 32 }
0x2503   :  { %p6712_p13 = scmp.ne.s32.totalorder %s8059_s20, %s6711_s13  ;;  %p6715_p0 = scmp.lt.u32.totalorder %s6711_s13, %s8059_s20 }
0x2505   :  { %p6717_p1 = pnand %p6715_p0, %p6712_p13 }
0x2507   :  { %6720 = shalt.err (!%p6717_p1)
}
0x2508   :  { %5098 = dma.vmem_to_hbm [thread:$0]  %s5096_s21, 32, %s8059_s20, [#allocation4]  }
0x2509   :  { %6723 = dma.done.wait [#allocation4], 32  }
0x250a   :  { %6724 = vsyncadd [#allocation4], 4294967264 }
0x250b   :  { %5102 = vsyncpa [#allocation3], 1 }
0x250c   :  { %5103 = vsyncpa [#allocation4], 1 }

</bundles_post_ra>
